<compile_context>
chip_gen: v5e
topology: v5e:2x2
jax: 0.10.0
libtpu: 0.0.40
codegen_flags: <defaults>
</compile_context>

<pallas_src>
import functools

import jax
import jax.numpy as jnp
from jax.experimental import pallas as pl
from jax.experimental.pallas import tpu as pltpu


def bottleneck_kernel(x_ref, xt_ref, xb_ref,
                      w1_ref, s1_ref, b1_ref,
                      w2_ref, s2_ref, b2_ref,
                      w3_ref, s3_ref, b3_ref,
                      out_ref, pad_ref, *, band, W, Cin, P, dil):
    """One (batch, row-band) tile per grid step.
    conv1/bn1/relu -> conv2(3x3 dilated)/bn2/relu -> conv3/bn3 -> +x -> relu."""
    f32 = jnp.float32
    bf16 = jnp.bfloat16
    b = pl.program_id(1)
    m = band * W

    def conv1_bn_relu(x_rows, rows):
        h = jnp.dot(x_rows.astype(bf16).reshape(rows * W, Cin), w1_ref[...],
                    preferred_element_type=f32)
        h = jnp.maximum(h * s1_ref[...] + b1_ref[...], 0.0)
        return h.astype(bf16).reshape(rows, W, P)

    # Zero the whole padded-h1 buffer (full-vreg stores, cheap).  The interior
    # and in-image halo rows are overwritten below; true image borders (top
    # halo of band 0, bottom halo of the last band, left/right columns) keep
    # the zeros -> matches conv2's padding=dilation semantics.
    pad_ref[...] = jnp.zeros_like(pad_ref)

    # This band's rows: conv1 + bn1 + relu.
    pad_ref[dil:dil + band, dil:dil + W, :] = conv1_bn_relu(x_ref[0], band)

    # dil halo rows above / below, recomputed from the neighbouring bands' x.
    @pl.when(b > 0)
    def _():
        pad_ref[0:dil, dil:dil + W, :] = conv1_bn_relu(xt_ref[0], dil)

    @pl.when(b + 1 < pl.num_programs(1))
    def _():
        pad_ref[dil + band:2 * dil + band, dil:dil + W, :] = conv1_bn_relu(
            xb_ref[0], dil)

    # conv2 (3x3, dilation=dil, padding=dil, stride=1): nine accumulating MXU
    # matmuls read directly from static views of pad_ref (no im2col scratch).
    h2 = jnp.zeros((m, P), f32)
    for ky in range(3):
        for kx in range(3):
            tap = pad_ref[ky * dil:ky * dil + band,
                          kx * dil:kx * dil + W, :].reshape(m, P)
            h2 = h2 + jnp.dot(tap, w2_ref[ky, kx], preferred_element_type=f32)
    h2 = jnp.maximum(h2 * s2_ref[...] + b2_ref[...], 0.0).astype(bf16)

    # conv3 (1x1, expansion 4) + bn3 + identity residual + relu, in P-wide
    # output-channel chunks: bounds live f32 vregs, keeps stores lane-dense.
    for c in range(0, 4 * P, P):
        h3 = jnp.dot(h2, w3_ref[:, c:c + P], preferred_element_type=f32)
        h3 = h3 * s3_ref[:, c:c + P] + b3_ref[:, c:c + P]
        res = x_ref[0, :, :, c:c + P].astype(f32).reshape(m, P)
        out_ref[0, :, :, c:c + P] = jnp.maximum(h3 + res, 0.0).reshape(
            band, W, P).astype(out_ref.dtype)


def _const_spec(a):
    """Whole-array block, constant index map, single VMEM buffer (Buffered(1))."""
    idx = lambda n, b, _nd=a.ndim: (0,) * _nd
    try:
        return pl.BlockSpec(a.shape, idx, pipeline_mode=pl.Buffered(1))
    except TypeError:  # BlockSpec without pipeline_mode support
        return pl.BlockSpec(a.shape, idx)


def bottleneck_forward(x, params, dilation=1, band_rows=8):
    """x: (N, H, W, Cin) with Cin == planes * 4 (identity residual).

    Activations are streamed HBM<->VMEM in bf16 (the kernel is HBM-bound);
    BN / residual / ReLU are computed in f32 inside the kernel."""
    N, H, W, Cin = x.shape
    P = params["w1"].shape[1]
    assert Cin == 4 * P, "identity residual requires inplanes == planes * 4"
    d = int(dilation)
    assert H % d == 0

    # Row-band height: several grid steps per image (pipeline depth, megacore
    # balance) while staying a multiple of dil and a divisor of H.
    band = H
    for cand in (band_rows, band_rows // 2, 2 * band_rows):
        if cand and cand < H and H % cand == 0 and cand % d == 0:
            band = cand
            break
    assert H % band == 0 and band % d == 0
    nbands = H // band
    rpb = band // d                     # band height in halo-block (d-row) units

    bf16 = jnp.bfloat16
    x = x.astype(bf16)
    w1 = params["w1"].astype(bf16)      # (Cin, P)
    w2 = params["w2"].astype(bf16)      # (3, 3, P, P)  HWIO
    w3 = params["w3"].astype(bf16)      # (P, 4P)

    kernel = functools.partial(bottleneck_kernel,
                               band=band, W=W, Cin=Cin, P=P, dil=d)

    x_band_spec = pl.BlockSpec((1, band, W, Cin), lambda n, b: (n, b, 0, 0))
    # dil-row halo windows from the neighbouring bands; clamped at the image
    # borders (the clamped data is ignored there — pl.when keeps zeros).
    x_top_spec = pl.BlockSpec(
        (1, d, W, Cin), lambda n, b: (n, jnp.maximum(b * rpb - 1, 0), 0, 0))
    x_bot_spec = pl.BlockSpec(
        (1, d, W, Cin),
        lambda n, b: (n, jnp.minimum((b + 1) * rpb, H // d - 1), 0, 0))

    in_specs = [
        x_band_spec, x_top_spec, x_bot_spec,
        _const_spec(w1), _const_spec(params["s1"]), _const_spec(params["b1"]),
        _const_spec(w2), _const_spec(params["s2"]), _const_spec(params["b2"]),
        _const_spec(w3), _const_spec(params["s3"]), _const_spec(params["b3"]),
    ]
    out_specs = pl.BlockSpec((1, band, W, 4 * P), lambda n, b: (n, b, 0, 0))

    # VMEM budget from actual buffer sizes (+ headroom), not a fixed constant.
    bpe = 2
    stream = (band * W * Cin + 2 * d * W * Cin + band * W * 4 * P) * bpe
    weights = (Cin * P + 9 * P * P + P * 4 * P) * bpe + 6 * 4 * P * 4
    scratch = (band + 2 * d) * (W + 2 * d) * P * bpe
    vmem_limit = 2 * stream + 2 * weights + scratch + (32 << 20)

    flops = 2 * N * H * W * (Cin * P + 9 * P * P + P * 4 * P)
    bytes_accessed = (x.size + N * H * W * 4 * P) * bpe \
        + (w1.size + w2.size + w3.size) * bpe + 6 * 4 * P * 4

    return pl.pallas_call(
        kernel,
        out_shape=jax.ShapeDtypeStruct((N, H, W, 4 * P), bf16),
        grid=(N, nbands),
        in_specs=in_specs,
        out_specs=out_specs,
        scratch_shapes=[
            pltpu.VMEM((band + 2 * d, W + 2 * d, P), bf16),   # padded h1 band
        ],
        compiler_params=pltpu.CompilerParams(
            dimension_semantics=("parallel", "parallel"),
            vmem_limit_bytes=int(vmem_limit)),
        cost_estimate=pl.CostEstimate(
            flops=int(flops), transcendentals=0,
            bytes_accessed=int(bytes_accessed)),
    )(x, x, x, w1, params["s1"], params["b1"],
      w2, params["s2"], params["b2"],
      w3, params["s3"], params["b3"])


# ------------------------- pure-JAX reference -------------------------------
def bottleneck_ref(x, params, dilation=1):
    """Mirrors the kernel's cast points exactly: bf16 matmul operands / h1 /
    h2 / residual, f32 accumulation, f32 BN — the dilated conv is expanded
    into the same nine shifted-tap matmuls the kernel performs."""
    d = dilation
    bf16 = jnp.bfloat16
    f32 = jnp.float32
    N, H, W, Cin = x.shape
    P = params["w1"].shape[1]
    xb = x.astype(bf16)

    h1 = jnp.einsum("nhwc,cp->nhwp", xb, params["w1"].astype(bf16),
                    preferred_element_type=f32)
    h1 = jnp.maximum(h1 * params["s1"][0] + params["b1"][0], 0.0).astype(bf16)

    hp = jnp.pad(h1, ((0, 0), (d, d), (d, d), (0, 0)))
    w2 = params["w2"].astype(bf16)
    h2 = jnp.zeros((N, H, W, P), f32)
    for ky in range(3):
        for kx in range(3):
            tap = hp[:, ky * d:ky * d + H, kx * d:kx * d + W, :]
            h2 = h2 + jnp.einsum("nhwc,cp->nhwp", tap, w2[ky, kx],
                                 preferred_element_type=f32)
    h2 = jnp.maximum(h2 * params["s2"][0] + params["b2"][0], 0.0).astype(bf16)

    h3 = jnp.einsum("nhwc,cp->nhwp", h2, params["w3"].astype(bf16),
                    preferred_element_type=f32)
    h3 = h3 * params["s3"][0] + params["b3"][0]
    return jnp.maximum(h3 + xb.astype(f32), 0.0)


def make_params(key, inplanes, planes):
    """Deterministic synthetic weights; BN folded to (scale, bias)."""
    ks = jax.random.split(key, 6)
    eps = 1e-5

    def bn(k, c):
        kg, kb, km, kv = jax.random.split(k, 4)
        gamma = 1.0 + 0.1 * jax.random.normal(kg, (c,), jnp.float32)
        beta = 0.1 * jax.random.normal(kb, (c,), jnp.float32)
        mean = 0.1 * jax.random.normal(km, (c,), jnp.float32)
        var = jax.random.uniform(kv, (c,), jnp.float32, 0.5, 1.5)
        scale = gamma / jnp.sqrt(var + eps)
        bias = beta - mean * scale
        return scale[None, :], bias[None, :]

    s1, b1 = bn(ks[3], planes)
    s2, b2 = bn(ks[4], planes)
    s3, b3 = bn(ks[5], planes * 4)
    return {
        "w1": 0.1 * jax.random.normal(ks[0], (inplanes, planes), jnp.float32),
        "w2": 0.1 * jax.random.normal(ks[1], (3, 3, planes, planes), jnp.float32),
        "w3": 0.1 * jax.random.normal(ks[2], (planes, planes * 4), jnp.float32),
        "s1": s1, "b1": b1, "s2": s2, "b2": b2, "s3": s3, "b3": b3,
    }


if __name__ == "__main__":
    # Small spatial/batch, lane-dense channels: batch=2, 16x16, planes=128 ->
    # inplanes = planes*4 = 512.  Row bands of 8 rows -> grid (2, 2).
    N, H, W = 2, 16, 16
    planes = 128
    inplanes = planes * 4

    key = jax.random.PRNGKey(0)
    kx, kp = jax.random.split(key)
    x = jax.random.normal(kx, (N, H, W, inplanes), jnp.float32)
    params = make_params(kp, inplanes, planes)

    for dilation in (1, 2):
        out = jax.block_until_ready(
            bottleneck_forward(x, params, dilation=dilation))
        ref = jax.block_until_ready(
            bottleneck_ref(x, params, dilation=dilation))
        assert out.shape == (N, H, W, planes * 4)
        out_f32 = out.astype(jnp.float32)
        err = float(jnp.max(jnp.abs(out_f32 - ref)))
        # bf16 activations end-to-end: rtol covers bf16 rounding of the large
        # outputs, atol covers accumulation-order / intermediate-rounding
        # differences near the ReLU boundary.
        assert jnp.allclose(out_f32, ref, atol=1.5e-1, rtol=5e-2), (
            f"mismatch vs reference (dilation={dilation}), max abs err {err}")

    print("KERNEL_OK")
</pallas_src>

<mosaic_0001>
module attributes {stable_mosaic.version = 11 : i64} {
  func.func @bottleneck_kernel(%arg0: i32, %arg1: i32, %arg2: memref<1x8x16x512xbf16, #tpu.memory_space<vmem>>, %arg3: memref<1x1x16x512xbf16, #tpu.memory_space<vmem>>, %arg4: memref<1x1x16x512xbf16, #tpu.memory_space<vmem>>, %arg5: memref<512x128xbf16, #tpu.memory_space<vmem>>, %arg6: memref<1x128xf32, #tpu.memory_space<vmem>>, %arg7: memref<1x128xf32, #tpu.memory_space<vmem>>, %arg8: memref<3x3x128x128xbf16, #tpu.memory_space<vmem>>, %arg9: memref<1x128xf32, #tpu.memory_space<vmem>>, %arg10: memref<1x128xf32, #tpu.memory_space<vmem>>, %arg11: memref<128x512xbf16, #tpu.memory_space<vmem>>, %arg12: memref<1x512xf32, #tpu.memory_space<vmem>>, %arg13: memref<1x512xf32, #tpu.memory_space<vmem>>, %arg14: memref<1x8x16x512xbf16, #tpu.memory_space<vmem>>, %arg15: memref<10x18x128xbf16, #tpu.memory_space<vmem>>) attributes {dimension_semantics = [#tpu.dimension_semantics<parallel>, #tpu.dimension_semantics<parallel>], iteration_bounds = array<i64: 2, 2>, scalar_prefetch = 0 : i64, scratch_operands = 1 : i64, tpu.core_type = #tpu.core_type<tc>, window_params = [{transform_indices = @transform_0, window_bounds = array<i64: 1, 8, 16, 512>}, {transform_indices = @transform_1, window_bounds = array<i64: 1, 1, 16, 512>}, {transform_indices = @transform_2, window_bounds = array<i64: 1, 1, 16, 512>}, {pipeline_mode = #tpu.pipeline_mode<synchronous>, transform_indices = @transform_3, window_bounds = array<i64: 512, 128>}, {pipeline_mode = #tpu.pipeline_mode<synchronous>, transform_indices = @transform_4, window_bounds = array<i64: 1, 128>}, {pipeline_mode = #tpu.pipeline_mode<synchronous>, transform_indices = @transform_5, window_bounds = array<i64: 1, 128>}, {pipeline_mode = #tpu.pipeline_mode<synchronous>, transform_indices = @transform_6, window_bounds = array<i64: 3, 3, 128, 128>}, {pipeline_mode = #tpu.pipeline_mode<synchronous>, transform_indices = @transform_7, window_bounds = array<i64: 1, 128>}, {pipeline_mode = #tpu.pipeline_mode<synchronous>, transform_indices = @transform_8, window_bounds = array<i64: 1, 128>}, {pipeline_mode = #tpu.pipeline_mode<synchronous>, transform_indices = @transform_9, window_bounds = array<i64: 128, 512>}, {pipeline_mode = #tpu.pipeline_mode<synchronous>, transform_indices = @transform_10, window_bounds = array<i64: 1, 512>}, {pipeline_mode = #tpu.pipeline_mode<synchronous>, transform_indices = @transform_11, window_bounds = array<i64: 1, 512>}, {transform_indices = @transform_12, window_bounds = array<i64: 1, 8, 16, 512>}]} {
    %cst = arith.constant 0.000000e+00 : bf16
    %0 = vector.broadcast %cst : bf16 to vector<10x18x128xbf16>
    %c0 = arith.constant 0 : index
    %c0_0 = arith.constant 0 : index
    %c0_1 = arith.constant 0 : index
    %1 = vector.load %arg15[%c0, %c0_0, %c0_1] : memref<10x18x128xbf16, #tpu.memory_space<vmem>>, vector<10x18x128xbf16>
    tpu.vector_store %arg15[%c0, %c0_0, %c0_1], %0 {strides = array<i32>} : memref<10x18x128xbf16, #tpu.memory_space<vmem>>, vector<10x18x128xbf16>,
    %c0_2 = arith.constant 0 : index
    %c0_3 = arith.constant 0 : index
    %c0_4 = arith.constant 0 : index
    %c0_5 = arith.constant 0 : index
    %2 = vector.load %arg2[%c0_2, %c0_3, %c0_4, %c0_5] : memref<1x8x16x512xbf16, #tpu.memory_space<vmem>>, vector<1x8x16x512xbf16>
    %3 = vector.shape_cast %2 : vector<1x8x16x512xbf16> to vector<8x16x512xbf16>
    %4 = vector.shape_cast %3 : vector<8x16x512xbf16> to vector<128x512xbf16>
    %c0_6 = arith.constant 0 : index
    %c0_7 = arith.constant 0 : index
    %5 = vector.load %arg5[%c0_6, %c0_7] : memref<512x128xbf16, #tpu.memory_space<vmem>>, vector<512x128xbf16>
    %cst_8 = arith.constant dense<0.000000e+00> : vector<128x128xf32>
    %6 = tpu.matmul %4, %5, %cst_8 {dimension_numbers = #tpu.dot_dimension_numbers<[1], [0], [0], [1], [0, 0, 1, 1], [], []>} : vector<128x512xbf16>, vector<512x128xbf16>, vector<128x128xf32> -> vector<128x128xf32>
    %c0_9 = arith.constant 0 : index
    %c0_10 = arith.constant 0 : index
    %7 = vector.load %arg6[%c0_9, %c0_10] : memref<1x128xf32, #tpu.memory_space<vmem>>, vector<1x128xf32>
    %8 = vector.broadcast %7 : vector<1x128xf32> to vector<128x128xf32>
    %9 = arith.mulf %6, %8 : vector<128x128xf32>
    %c0_11 = arith.constant 0 : index
    %c0_12 = arith.constant 0 : index
    %10 = vector.load %arg7[%c0_11, %c0_12] : memref<1x128xf32, #tpu.memory_space<vmem>>, vector<1x128xf32>
    %11 = vector.broadcast %10 : vector<1x128xf32> to vector<128x128xf32>
    %12 = arith.addf %9, %11 : vector<128x128xf32>
    %cst_13 = arith.constant 0.000000e+00 : f32
    %13 = vector.broadcast %cst_13 : f32 to vector<128x128xf32>
    %14 = arith.maximumf %12, %13 : vector<128x128xf32>
    %15 = arith.truncf %14 : vector<128x128xf32> to vector<128x128xbf16>
    %16 = vector.shape_cast %15 : vector<128x128xbf16> to vector<8x16x128xbf16>
    %c1 = arith.constant 1 : index
    %c1_14 = arith.constant 1 : index
    %c0_15 = arith.constant 0 : index
    %17 = vector.load %arg15[%c1, %c1_14, %c0_15] : memref<10x18x128xbf16, #tpu.memory_space<vmem>>, vector<8x16x128xbf16>
    tpu.vector_store %arg15[%c1, %c1_14, %c0_15], %16 {strides = array<i32>} : memref<10x18x128xbf16, #tpu.memory_space<vmem>>, vector<8x16x128xbf16>,
    %c0_i32 = arith.constant 0 : i32
    %18 = arith.cmpi sgt, %arg1, %c0_i32 : i32
    %19 = arith.extui %18 : i1 to i32
    %c0_i32_16 = arith.constant 0 : i32
    %20 = arith.cmpi ne, %19, %c0_i32_16 : i32
    scf.if %20 {
      %c0_156 = arith.constant 0 : index
      %c0_157 = arith.constant 0 : index
      %c0_158 = arith.constant 0 : index
      %c0_159 = arith.constant 0 : index
      %169 = vector.load %arg3[%c0_156, %c0_157, %c0_158, %c0_159] : memref<1x1x16x512xbf16, #tpu.memory_space<vmem>>, vector<1x1x16x512xbf16>
      %170 = vector.shape_cast %169 : vector<1x1x16x512xbf16> to vector<1x16x512xbf16>
      %171 = vector.shape_cast %170 : vector<1x16x512xbf16> to vector<16x512xbf16>
      %c0_160 = arith.constant 0 : index
      %c0_161 = arith.constant 0 : index
      %172 = vector.load %arg5[%c0_160, %c0_161] : memref<512x128xbf16, #tpu.memory_space<vmem>>, vector<512x128xbf16>
      %cst_162 = arith.constant dense<0.000000e+00> : vector<16x128xf32>
      %173 = tpu.matmul %171, %172, %cst_162 {dimension_numbers = #tpu.dot_dimension_numbers<[1], [0], [0], [1], [0, 0, 1, 1], [], []>} : vector<16x512xbf16>, vector<512x128xbf16>, vector<16x128xf32> -> vector<16x128xf32>
      %c0_163 = arith.constant 0 : index
      %c0_164 = arith.constant 0 : index
      %174 = vector.load %arg6[%c0_163, %c0_164] : memref<1x128xf32, #tpu.memory_space<vmem>>, vector<1x128xf32>
      %175 = vector.broadcast %174 : vector<1x128xf32> to vector<16x128xf32>
      %176 = arith.mulf %173, %175 : vector<16x128xf32>
      %c0_165 = arith.constant 0 : index
      %c0_166 = arith.constant 0 : index
      %177 = vector.load %arg7[%c0_165, %c0_166] : memref<1x128xf32, #tpu.memory_space<vmem>>, vector<1x128xf32>
      %178 = vector.broadcast %177 : vector<1x128xf32> to vector<16x128xf32>
      %179 = arith.addf %176, %178 : vector<16x128xf32>
      %cst_167 = arith.constant 0.000000e+00 : f32
      %180 = vector.broadcast %cst_167 : f32 to vector<16x128xf32>
      %181 = arith.maximumf %179, %180 : vector<16x128xf32>
      %182 = arith.truncf %181 : vector<16x128xf32> to vector<16x128xbf16>
      %183 = vector.shape_cast %182 : vector<16x128xbf16> to vector<1x16x128xbf16>
      %c0_168 = arith.constant 0 : index
      %c1_169 = arith.constant 1 : index
      %c0_170 = arith.constant 0 : index
      %184 = vector.load %arg15[%c0_168, %c1_169, %c0_170] : memref<10x18x128xbf16, #tpu.memory_space<vmem>>, vector<1x16x128xbf16>
      tpu.vector_store %arg15[%c0_168, %c1_169, %c0_170], %183 {strides = array<i32>} : memref<10x18x128xbf16, #tpu.memory_space<vmem>>, vector<1x16x128xbf16>,
    } else {
    }
    %c1_i32 = arith.constant 1 : i32
    %21 = arith.addi %arg1, %c1_i32 : i32
    %c2_i32 = arith.constant 2 : i32
    %22 = arith.cmpi slt, %21, %c2_i32 : i32
    %23 = arith.extui %22 : i1 to i32
    %c0_i32_17 = arith.constant 0 : i32
    %24 = arith.cmpi ne, %23, %c0_i32_17 : i32
    scf.if %24 {
      %c0_156 = arith.constant 0 : index
      %c0_157 = arith.constant 0 : index
      %c0_158 = arith.constant 0 : index
      %c0_159 = arith.constant 0 : index
      %169 = vector.load %arg4[%c0_156, %c0_157, %c0_158, %c0_159] : memref<1x1x16x512xbf16, #tpu.memory_space<vmem>>, vector<1x1x16x512xbf16>
      %170 = vector.shape_cast %169 : vector<1x1x16x512xbf16> to vector<1x16x512xbf16>
      %171 = vector.shape_cast %170 : vector<1x16x512xbf16> to vector<16x512xbf16>
      %c0_160 = arith.constant 0 : index
      %c0_161 = arith.constant 0 : index
      %172 = vector.load %arg5[%c0_160, %c0_161] : memref<512x128xbf16, #tpu.memory_space<vmem>>, vector<512x128xbf16>
      %cst_162 = arith.constant dense<0.000000e+00> : vector<16x128xf32>
      %173 = tpu.matmul %171, %172, %cst_162 {dimension_numbers = #tpu.dot_dimension_numbers<[1], [0], [0], [1], [0, 0, 1, 1], [], []>} : vector<16x512xbf16>, vector<512x128xbf16>, vector<16x128xf32> -> vector<16x128xf32>
      %c0_163 = arith.constant 0 : index
      %c0_164 = arith.constant 0 : index
      %174 = vector.load %arg6[%c0_163, %c0_164] : memref<1x128xf32, #tpu.memory_space<vmem>>, vector<1x128xf32>
      %175 = vector.broadcast %174 : vector<1x128xf32> to vector<16x128xf32>
      %176 = arith.mulf %173, %175 : vector<16x128xf32>
      %c0_165 = arith.constant 0 : index
      %c0_166 = arith.constant 0 : index
      %177 = vector.load %arg7[%c0_165, %c0_166] : memref<1x128xf32, #tpu.memory_space<vmem>>, vector<1x128xf32>
      %178 = vector.broadcast %177 : vector<1x128xf32> to vector<16x128xf32>
      %179 = arith.addf %176, %178 : vector<16x128xf32>
      %cst_167 = arith.constant 0.000000e+00 : f32
      %180 = vector.broadcast %cst_167 : f32 to vector<16x128xf32>
      %181 = arith.maximumf %179, %180 : vector<16x128xf32>
      %182 = arith.truncf %181 : vector<16x128xf32> to vector<16x128xbf16>
      %183 = vector.shape_cast %182 : vector<16x128xbf16> to vector<1x16x128xbf16>
      %c9 = arith.constant 9 : index
      %c1_168 = arith.constant 1 : index
      %c0_169 = arith.constant 0 : index
      %184 = vector.load %arg15[%c9, %c1_168, %c0_169] : memref<10x18x128xbf16, #tpu.memory_space<vmem>>, vector<1x16x128xbf16>
      tpu.vector_store %arg15[%c9, %c1_168, %c0_169], %183 {strides = array<i32>} : memref<10x18x128xbf16, #tpu.memory_space<vmem>>, vector<1x16x128xbf16>,
    } else {
    }
    %cst_18 = arith.constant 0.000000e+00 : f32
    %25 = vector.broadcast %cst_18 : f32 to vector<128x128xf32>
    %c0_19 = arith.constant 0 : index
    %c0_20 = arith.constant 0 : index
    %c0_21 = arith.constant 0 : index
    %26 = vector.load %arg15[%c0_19, %c0_20, %c0_21] : memref<10x18x128xbf16, #tpu.memory_space<vmem>>, vector<8x16x128xbf16>
    %27 = vector.shape_cast %26 : vector<8x16x128xbf16> to vector<128x128xbf16>
    %c0_22 = arith.constant 0 : index
    %c0_23 = arith.constant 0 : index
    %c0_24 = arith.constant 0 : index
    %c0_25 = arith.constant 0 : index
    %28 = vector.load %arg8[%c0_22, %c0_23, %c0_24, %c0_25] : memref<3x3x128x128xbf16, #tpu.memory_space<vmem>>, vector<1x1x128x128xbf16>
    %29 = vector.shape_cast %28 : vector<1x1x128x128xbf16> to vector<128x128xbf16>
    %cst_26 = arith.constant dense<0.000000e+00> : vector<128x128xf32>
    %30 = tpu.matmul %27, %29, %cst_26 {dimension_numbers = #tpu.dot_dimension_numbers<[1], [0], [0], [1], [0, 0, 1, 1], [], []>} : vector<128x128xbf16>, vector<128x128xbf16>, vector<128x128xf32> -> vector<128x128xf32>
    %31 = arith.addf %25, %30 : vector<128x128xf32>
    %c0_27 = arith.constant 0 : index
    %c1_28 = arith.constant 1 : index
    %c0_29 = arith.constant 0 : index
    %32 = vector.load %arg15[%c0_27, %c1_28, %c0_29] : memref<10x18x128xbf16, #tpu.memory_space<vmem>>, vector<8x16x128xbf16>
    %33 = vector.shape_cast %32 : vector<8x16x128xbf16> to vector<128x128xbf16>
    %c0_30 = arith.constant 0 : index
    %c1_31 = arith.constant 1 : index
    %c0_32 = arith.constant 0 : index
    %c0_33 = arith.constant 0 : index
    %34 = vector.load %arg8[%c0_30, %c1_31, %c0_32, %c0_33] : memref<3x3x128x128xbf16, #tpu.memory_space<vmem>>, vector<1x1x128x128xbf16>
    %35 = vector.shape_cast %34 : vector<1x1x128x128xbf16> to vector<128x128xbf16>
    %cst_34 = arith.constant dense<0.000000e+00> : vector<128x128xf32>
    %36 = tpu.matmul %33, %35, %cst_34 {dimension_numbers = #tpu.dot_dimension_numbers<[1], [0], [0], [1], [0, 0, 1, 1], [], []>} : vector<128x128xbf16>, vector<128x128xbf16>, vector<128x128xf32> -> vector<128x128xf32>
    %37 = arith.addf %31, %36 : vector<128x128xf32>
    %c0_35 = arith.constant 0 : index
    %c2 = arith.constant 2 : index
    %c0_36 = arith.constant 0 : index
    %38 = vector.load %arg15[%c0_35, %c2, %c0_36] : memref<10x18x128xbf16, #tpu.memory_space<vmem>>, vector<8x16x128xbf16>
    %39 = vector.shape_cast %38 : vector<8x16x128xbf16> to vector<128x128xbf16>
    %c0_37 = arith.constant 0 : index
    %c2_38 = arith.constant 2 : index
    %c0_39 = arith.constant 0 : index
    %c0_40 = arith.constant 0 : index
    %40 = vector.load %arg8[%c0_37, %c2_38, %c0_39, %c0_40] : memref<3x3x128x128xbf16, #tpu.memory_space<vmem>>, vector<1x1x128x128xbf16>
    %41 = vector.shape_cast %40 : vector<1x1x128x128xbf16> to vector<128x128xbf16>
    %cst_41 = arith.constant dense<0.000000e+00> : vector<128x128xf32>
    %42 = tpu.matmul %39, %41, %cst_41 {dimension_numbers = #tpu.dot_dimension_numbers<[1], [0], [0], [1], [0, 0, 1, 1], [], []>} : vector<128x128xbf16>, vector<128x128xbf16>, vector<128x128xf32> -> vector<128x128xf32>
    %43 = arith.addf %37, %42 : vector<128x128xf32>
    %c1_42 = arith.constant 1 : index
    %c0_43 = arith.constant 0 : index
    %c0_44 = arith.constant 0 : index
    %44 = vector.load %arg15[%c1_42, %c0_43, %c0_44] : memref<10x18x128xbf16, #tpu.memory_space<vmem>>, vector<8x16x128xbf16>
    %45 = vector.shape_cast %44 : vector<8x16x128xbf16> to vector<128x128xbf16>
    %c1_45 = arith.constant 1 : index
    %c0_46 = arith.constant 0 : index
    %c0_47 = arith.constant 0 : index
    %c0_48 = arith.constant 0 : index
    %46 = vector.load %arg8[%c1_45, %c0_46, %c0_47, %c0_48] : memref<3x3x128x128xbf16, #tpu.memory_space<vmem>>, vector<1x1x128x128xbf16>
    %47 = vector.shape_cast %46 : vector<1x1x128x128xbf16> to vector<128x128xbf16>
    %cst_49 = arith.constant dense<0.000000e+00> : vector<128x128xf32>
    %48 = tpu.matmul %45, %47, %cst_49 {dimension_numbers = #tpu.dot_dimension_numbers<[1], [0], [0], [1], [0, 0, 1, 1], [], []>} : vector<128x128xbf16>, vector<128x128xbf16>, vector<128x128xf32> -> vector<128x128xf32>
    %49 = arith.addf %43, %48 : vector<128x128xf32>
    %c1_50 = arith.constant 1 : index
    %c1_51 = arith.constant 1 : index
    %c0_52 = arith.constant 0 : index
    %50 = vector.load %arg15[%c1_50, %c1_51, %c0_52] : memref<10x18x128xbf16, #tpu.memory_space<vmem>>, vector<8x16x128xbf16>
    %51 = vector.shape_cast %50 : vector<8x16x128xbf16> to vector<128x128xbf16>
    %c1_53 = arith.constant 1 : index
    %c1_54 = arith.constant 1 : index
    %c0_55 = arith.constant 0 : index
    %c0_56 = arith.constant 0 : index
    %52 = vector.load %arg8[%c1_53, %c1_54, %c0_55, %c0_56] : memref<3x3x128x128xbf16, #tpu.memory_space<vmem>>, vector<1x1x128x128xbf16>
    %53 = vector.shape_cast %52 : vector<1x1x128x128xbf16> to vector<128x128xbf16>
    %cst_57 = arith.constant dense<0.000000e+00> : vector<128x128xf32>
    %54 = tpu.matmul %51, %53, %cst_57 {dimension_numbers = #tpu.dot_dimension_numbers<[1], [0], [0], [1], [0, 0, 1, 1], [], []>} : vector<128x128xbf16>, vector<128x128xbf16>, vector<128x128xf32> -> vector<128x128xf32>
    %55 = arith.addf %49, %54 : vector<128x128xf32>
    %c1_58 = arith.constant 1 : index
    %c2_59 = arith.constant 2 : index
    %c0_60 = arith.constant 0 : index
    %56 = vector.load %arg15[%c1_58, %c2_59, %c0_60] : memref<10x18x128xbf16, #tpu.memory_space<vmem>>, vector<8x16x128xbf16>
    %57 = vector.shape_cast %56 : vector<8x16x128xbf16> to vector<128x128xbf16>
    %c1_61 = arith.constant 1 : index
    %c2_62 = arith.constant 2 : index
    %c0_63 = arith.constant 0 : index
    %c0_64 = arith.constant 0 : index
    %58 = vector.load %arg8[%c1_61, %c2_62, %c0_63, %c0_64] : memref<3x3x128x128xbf16, #tpu.memory_space<vmem>>, vector<1x1x128x128xbf16>
    %59 = vector.shape_cast %58 : vector<1x1x128x128xbf16> to vector<128x128xbf16>
    %cst_65 = arith.constant dense<0.000000e+00> : vector<128x128xf32>
    %60 = tpu.matmul %57, %59, %cst_65 {dimension_numbers = #tpu.dot_dimension_numbers<[1], [0], [0], [1], [0, 0, 1, 1], [], []>} : vector<128x128xbf16>, vector<128x128xbf16>, vector<128x128xf32> -> vector<128x128xf32>
    %61 = arith.addf %55, %60 : vector<128x128xf32>
    %c2_66 = arith.constant 2 : index
    %c0_67 = arith.constant 0 : index
    %c0_68 = arith.constant 0 : index
    %62 = vector.load %arg15[%c2_66, %c0_67, %c0_68] : memref<10x18x128xbf16, #tpu.memory_space<vmem>>, vector<8x16x128xbf16>
    %63 = vector.shape_cast %62 : vector<8x16x128xbf16> to vector<128x128xbf16>
    %c2_69 = arith.constant 2 : index
    %c0_70 = arith.constant 0 : index
    %c0_71 = arith.constant 0 : index
    %c0_72 = arith.constant 0 : index
    %64 = vector.load %arg8[%c2_69, %c0_70, %c0_71, %c0_72] : memref<3x3x128x128xbf16, #tpu.memory_space<vmem>>, vector<1x1x128x128xbf16>
    %65 = vector.shape_cast %64 : vector<1x1x128x128xbf16> to vector<128x128xbf16>
    %cst_73 = arith.constant dense<0.000000e+00> : vector<128x128xf32>
    %66 = tpu.matmul %63, %65, %cst_73 {dimension_numbers = #tpu.dot_dimension_numbers<[1], [0], [0], [1], [0, 0, 1, 1], [], []>} : vector<128x128xbf16>, vector<128x128xbf16>, vector<128x128xf32> -> vector<128x128xf32>
    %67 = arith.addf %61, %66 : vector<128x128xf32>
    %c2_74 = arith.constant 2 : index
    %c1_75 = arith.constant 1 : index
    %c0_76 = arith.constant 0 : index
    %68 = vector.load %arg15[%c2_74, %c1_75, %c0_76] : memref<10x18x128xbf16, #tpu.memory_space<vmem>>, vector<8x16x128xbf16>
    %69 = vector.shape_cast %68 : vector<8x16x128xbf16> to vector<128x128xbf16>
    %c2_77 = arith.constant 2 : index
    %c1_78 = arith.constant 1 : index
    %c0_79 = arith.constant 0 : index
    %c0_80 = arith.constant 0 : index
    %70 = vector.load %arg8[%c2_77, %c1_78, %c0_79, %c0_80] : memref<3x3x128x128xbf16, #tpu.memory_space<vmem>>, vector<1x1x128x128xbf16>
    %71 = vector.shape_cast %70 : vector<1x1x128x128xbf16> to vector<128x128xbf16>
    %cst_81 = arith.constant dense<0.000000e+00> : vector<128x128xf32>
    %72 = tpu.matmul %69, %71, %cst_81 {dimension_numbers = #tpu.dot_dimension_numbers<[1], [0], [0], [1], [0, 0, 1, 1], [], []>} : vector<128x128xbf16>, vector<128x128xbf16>, vector<128x128xf32> -> vector<128x128xf32>
    %73 = arith.addf %67, %72 : vector<128x128xf32>
    %c2_82 = arith.constant 2 : index
    %c2_83 = arith.constant 2 : index
    %c0_84 = arith.constant 0 : index
    %74 = vector.load %arg15[%c2_82, %c2_83, %c0_84] : memref<10x18x128xbf16, #tpu.memory_space<vmem>>, vector<8x16x128xbf16>
    %75 = vector.shape_cast %74 : vector<8x16x128xbf16> to vector<128x128xbf16>
    %c2_85 = arith.constant 2 : index
    %c2_86 = arith.constant 2 : index
    %c0_87 = arith.constant 0 : index
    %c0_88 = arith.constant 0 : index
    %76 = vector.load %arg8[%c2_85, %c2_86, %c0_87, %c0_88] : memref<3x3x128x128xbf16, #tpu.memory_space<vmem>>, vector<1x1x128x128xbf16>
    %77 = vector.shape_cast %76 : vector<1x1x128x128xbf16> to vector<128x128xbf16>
    %cst_89 = arith.constant dense<0.000000e+00> : vector<128x128xf32>
    %78 = tpu.matmul %75, %77, %cst_89 {dimension_numbers = #tpu.dot_dimension_numbers<[1], [0], [0], [1], [0, 0, 1, 1], [], []>} : vector<128x128xbf16>, vector<128x128xbf16>, vector<128x128xf32> -> vector<128x128xf32>
    %79 = arith.addf %73, %78 : vector<128x128xf32>
    %c0_90 = arith.constant 0 : index
    %c0_91 = arith.constant 0 : index
    %80 = vector.load %arg9[%c0_90, %c0_91] : memref<1x128xf32, #tpu.memory_space<vmem>>, vector<1x128xf32>
    %81 = vector.broadcast %80 : vector<1x128xf32> to vector<128x128xf32>
    %82 = arith.mulf %79, %81 : vector<128x128xf32>
    %c0_92 = arith.constant 0 : index
    %c0_93 = arith.constant 0 : index
    %83 = vector.load %arg10[%c0_92, %c0_93] : memref<1x128xf32, #tpu.memory_space<vmem>>, vector<1x128xf32>
    %84 = vector.broadcast %83 : vector<1x128xf32> to vector<128x128xf32>
    %85 = arith.addf %82, %84 : vector<128x128xf32>
    %cst_94 = arith.constant 0.000000e+00 : f32
    %86 = vector.broadcast %cst_94 : f32 to vector<128x128xf32>
    %87 = arith.maximumf %85, %86 : vector<128x128xf32>
    %88 = arith.truncf %87 : vector<128x128xf32> to vector<128x128xbf16>
    %c0_95 = arith.constant 0 : index
    %c0_96 = arith.constant 0 : index
    %89 = vector.load %arg11[%c0_95, %c0_96] : memref<128x512xbf16, #tpu.memory_space<vmem>>, vector<128x128xbf16>
    %cst_97 = arith.constant dense<0.000000e+00> : vector<128x128xf32>
    %90 = tpu.matmul %88, %89, %cst_97 {dimension_numbers = #tpu.dot_dimension_numbers<[1], [0], [0], [1], [0, 0, 1, 1], [], []>} : vector<128x128xbf16>, vector<128x128xbf16>, vector<128x128xf32> -> vector<128x128xf32>
    %c0_98 = arith.constant 0 : index
    %c0_99 = arith.constant 0 : index
    %91 = vector.load %arg12[%c0_98, %c0_99] : memref<1x512xf32, #tpu.memory_space<vmem>>, vector<1x128xf32>
    %92 = vector.broadcast %91 : vector<1x128xf32> to vector<128x128xf32>
    %93 = arith.mulf %90, %92 : vector<128x128xf32>
    %c0_100 = arith.constant 0 : index
    %c0_101 = arith.constant 0 : index
    %94 = vector.load %arg13[%c0_100, %c0_101] : memref<1x512xf32, #tpu.memory_space<vmem>>, vector<1x128xf32>
    %95 = vector.broadcast %94 : vector<1x128xf32> to vector<128x128xf32>
    %96 = arith.addf %93, %95 : vector<128x128xf32>
    %c0_102 = arith.constant 0 : index
    %c0_103 = arith.constant 0 : index
    %c0_104 = arith.constant 0 : index
    %c0_105 = arith.constant 0 : index
    %97 = vector.load %arg2[%c0_102, %c0_103, %c0_104, %c0_105] : memref<1x8x16x512xbf16, #tpu.memory_space<vmem>>, vector<1x8x16x128xbf16>
    %98 = vector.shape_cast %97 : vector<1x8x16x128xbf16> to vector<8x16x128xbf16>
    %99 = arith.extf %98 : vector<8x16x128xbf16> to vector<8x16x128xf32>
    %100 = vector.shape_cast %99 : vector<8x16x128xf32> to vector<128x128xf32>
    %101 = arith.addf %96, %100 : vector<128x128xf32>
    %cst_106 = arith.constant 0.000000e+00 : f32
    %102 = vector.broadcast %cst_106 : f32 to vector<128x128xf32>
    %103 = arith.maximumf %101, %102 : vector<128x128xf32>
    %104 = vector.shape_cast %103 : vector<128x128xf32> to vector<8x16x128xf32>
    %105 = arith.truncf %104 : vector<8x16x128xf32> to vector<8x16x128xbf16>
    %c0_107 = arith.constant 0 : index
    %c0_108 = arith.constant 0 : index
    %c0_109 = arith.constant 0 : index
    %c0_110 = arith.constant 0 : index
    %106 = vector.load %arg14[%c0_107, %c0_108, %c0_109, %c0_110] : memref<1x8x16x512xbf16, #tpu.memory_space<vmem>>, vector<1x8x16x128xbf16>
    %107 = vector.shape_cast %106 : vector<1x8x16x128xbf16> to vector<8x16x128xbf16>
    %108 = vector.shape_cast %105 : vector<8x16x128xbf16> to vector<1x8x16x128xbf16>
    tpu.vector_store %arg14[%c0_107, %c0_108, %c0_109, %c0_110], %108 {strides = array<i32>} : memref<1x8x16x512xbf16, #tpu.memory_space<vmem>>, vector<1x8x16x128xbf16>,
    %c0_111 = arith.constant 0 : index
    %c128 = arith.constant 128 : index
    %109 = vector.load %arg11[%c0_111, %c128] : memref<128x512xbf16, #tpu.memory_space<vmem>>, vector<128x128xbf16>
    %cst_112 = arith.constant dense<0.000000e+00> : vector<128x128xf32>
    %110 = tpu.matmul %88, %109, %cst_112 {dimension_numbers = #tpu.dot_dimension_numbers<[1], [0], [0], [1], [0, 0, 1, 1], [], []>} : vector<128x128xbf16>, vector<128x128xbf16>, vector<128x128xf32> -> vector<128x128xf32>
    %c0_113 = arith.constant 0 : index
    %c128_114 = arith.constant 128 : index
    %111 = vector.load %arg12[%c0_113, %c128_114] : memref<1x512xf32, #tpu.memory_space<vmem>>, vector<1x128xf32>
    %112 = vector.broadcast %111 : vector<1x128xf32> to vector<128x128xf32>
    %113 = arith.mulf %110, %112 : vector<128x128xf32>
    %c0_115 = arith.constant 0 : index
    %c128_116 = arith.constant 128 : index
    %114 = vector.load %arg13[%c0_115, %c128_116] : memref<1x512xf32, #tpu.memory_space<vmem>>, vector<1x128xf32>
    %115 = vector.broadcast %114 : vector<1x128xf32> to vector<128x128xf32>
    %116 = arith.addf %113, %115 : vector<128x128xf32>
    %c0_117 = arith.constant 0 : index
    %c0_118 = arith.constant 0 : index
    %c0_119 = arith.constant 0 : index
    %c128_120 = arith.constant 128 : index
    %117 = vector.load %arg2[%c0_117, %c0_118, %c0_119, %c128_120] : memref<1x8x16x512xbf16, #tpu.memory_space<vmem>>, vector<1x8x16x128xbf16>
    %118 = vector.shape_cast %117 : vector<1x8x16x128xbf16> to vector<8x16x128xbf16>
    %119 = arith.extf %118 : vector<8x16x128xbf16> to vector<8x16x128xf32>
    %120 = vector.shape_cast %119 : vector<8x16x128xf32> to vector<128x128xf32>
    %121 = arith.addf %116, %120 : vector<128x128xf32>
    %cst_121 = arith.constant 0.000000e+00 : f32
    %122 = vector.broadcast %cst_121 : f32 to vector<128x128xf32>
    %123 = arith.maximumf %121, %122 : vector<128x128xf32>
    %124 = vector.shape_cast %123 : vector<128x128xf32> to vector<8x16x128xf32>
    %125 = arith.truncf %124 : vector<8x16x128xf32> to vector<8x16x128xbf16>
    %c0_122 = arith.constant 0 : index
    %c0_123 = arith.constant 0 : index
    %c0_124 = arith.constant 0 : index
    %c128_125 = arith.constant 128 : index
    %126 = vector.load %arg14[%c0_122, %c0_123, %c0_124, %c128_125] : memref<1x8x16x512xbf16, #tpu.memory_space<vmem>>, vector<1x8x16x128xbf16>
    %127 = vector.shape_cast %126 : vector<1x8x16x128xbf16> to vector<8x16x128xbf16>
    %128 = vector.shape_cast %125 : vector<8x16x128xbf16> to vector<1x8x16x128xbf16>
    tpu.vector_store %arg14[%c0_122, %c0_123, %c0_124, %c128_125], %128 {strides = array<i32>} : memref<1x8x16x512xbf16, #tpu.memory_space<vmem>>, vector<1x8x16x128xbf16>,
    %c0_126 = arith.constant 0 : index
    %c256 = arith.constant 256 : index
    %129 = vector.load %arg11[%c0_126, %c256] : memref<128x512xbf16, #tpu.memory_space<vmem>>, vector<128x128xbf16>
    %cst_127 = arith.constant dense<0.000000e+00> : vector<128x128xf32>
    %130 = tpu.matmul %88, %129, %cst_127 {dimension_numbers = #tpu.dot_dimension_numbers<[1], [0], [0], [1], [0, 0, 1, 1], [], []>} : vector<128x128xbf16>, vector<128x128xbf16>, vector<128x128xf32> -> vector<128x128xf32>
    %c0_128 = arith.constant 0 : index
    %c256_129 = arith.constant 256 : index
    %131 = vector.load %arg12[%c0_128, %c256_129] : memref<1x512xf32, #tpu.memory_space<vmem>>, vector<1x128xf32>
    %132 = vector.broadcast %131 : vector<1x128xf32> to vector<128x128xf32>
    %133 = arith.mulf %130, %132 : vector<128x128xf32>
    %c0_130 = arith.constant 0 : index
    %c256_131 = arith.constant 256 : index
    %134 = vector.load %arg13[%c0_130, %c256_131] : memref<1x512xf32, #tpu.memory_space<vmem>>, vector<1x128xf32>
    %135 = vector.broadcast %134 : vector<1x128xf32> to vector<128x128xf32>
    %136 = arith.addf %133, %135 : vector<128x128xf32>
    %c0_132 = arith.constant 0 : index
    %c0_133 = arith.constant 0 : index
    %c0_134 = arith.constant 0 : index
    %c256_135 = arith.constant 256 : index
    %137 = vector.load %arg2[%c0_132, %c0_133, %c0_134, %c256_135] : memref<1x8x16x512xbf16, #tpu.memory_space<vmem>>, vector<1x8x16x128xbf16>
    %138 = vector.shape_cast %137 : vector<1x8x16x128xbf16> to vector<8x16x128xbf16>
    %139 = arith.extf %138 : vector<8x16x128xbf16> to vector<8x16x128xf32>
    %140 = vector.shape_cast %139 : vector<8x16x128xf32> to vector<128x128xf32>
    %141 = arith.addf %136, %140 : vector<128x128xf32>
    %cst_136 = arith.constant 0.000000e+00 : f32
    %142 = vector.broadcast %cst_136 : f32 to vector<128x128xf32>
    %143 = arith.maximumf %141, %142 : vector<128x128xf32>
    %144 = vector.shape_cast %143 : vector<128x128xf32> to vector<8x16x128xf32>
    %145 = arith.truncf %144 : vector<8x16x128xf32> to vector<8x16x128xbf16>
    %c0_137 = arith.constant 0 : index
    %c0_138 = arith.constant 0 : index
    %c0_139 = arith.constant 0 : index
    %c256_140 = arith.constant 256 : index
    %146 = vector.load %arg14[%c0_137, %c0_138, %c0_139, %c256_140] : memref<1x8x16x512xbf16, #tpu.memory_space<vmem>>, vector<1x8x16x128xbf16>
    %147 = vector.shape_cast %146 : vector<1x8x16x128xbf16> to vector<8x16x128xbf16>
    %148 = vector.shape_cast %145 : vector<8x16x128xbf16> to vector<1x8x16x128xbf16>
    tpu.vector_store %arg14[%c0_137, %c0_138, %c0_139, %c256_140], %148 {strides = array<i32>} : memref<1x8x16x512xbf16, #tpu.memory_space<vmem>>, vector<1x8x16x128xbf16>,
    %c0_141 = arith.constant 0 : index
    %c384 = arith.constant 384 : index
    %149 = vector.load %arg11[%c0_141, %c384] : memref<128x512xbf16, #tpu.memory_space<vmem>>, vector<128x128xbf16>
    %cst_142 = arith.constant dense<0.000000e+00> : vector<128x128xf32>
    %150 = tpu.matmul %88, %149, %cst_142 {dimension_numbers = #tpu.dot_dimension_numbers<[1], [0], [0], [1], [0, 0, 1, 1], [], []>} : vector<128x128xbf16>, vector<128x128xbf16>, vector<128x128xf32> -> vector<128x128xf32>
    %c0_143 = arith.constant 0 : index
    %c384_144 = arith.constant 384 : index
    %151 = vector.load %arg12[%c0_143, %c384_144] : memref<1x512xf32, #tpu.memory_space<vmem>>, vector<1x128xf32>
    %152 = vector.broadcast %151 : vector<1x128xf32> to vector<128x128xf32>
    %153 = arith.mulf %150, %152 : vector<128x128xf32>
    %c0_145 = arith.constant 0 : index
    %c384_146 = arith.constant 384 : index
    %154 = vector.load %arg13[%c0_145, %c384_146] : memref<1x512xf32, #tpu.memory_space<vmem>>, vector<1x128xf32>
    %155 = vector.broadcast %154 : vector<1x128xf32> to vector<128x128xf32>
    %156 = arith.addf %153, %155 : vector<128x128xf32>
    %c0_147 = arith.constant 0 : index
    %c0_148 = arith.constant 0 : index
    %c0_149 = arith.constant 0 : index
    %c384_150 = arith.constant 384 : index
    %157 = vector.load %arg2[%c0_147, %c0_148, %c0_149, %c384_150] : memref<1x8x16x512xbf16, #tpu.memory_space<vmem>>, vector<1x8x16x128xbf16>
    %158 = vector.shape_cast %157 : vector<1x8x16x128xbf16> to vector<8x16x128xbf16>
    %159 = arith.extf %158 : vector<8x16x128xbf16> to vector<8x16x128xf32>
    %160 = vector.shape_cast %159 : vector<8x16x128xf32> to vector<128x128xf32>
    %161 = arith.addf %156, %160 : vector<128x128xf32>
    %cst_151 = arith.constant 0.000000e+00 : f32
    %162 = vector.broadcast %cst_151 : f32 to vector<128x128xf32>
    %163 = arith.maximumf %161, %162 : vector<128x128xf32>
    %164 = vector.shape_cast %163 : vector<128x128xf32> to vector<8x16x128xf32>
    %165 = arith.truncf %164 : vector<8x16x128xf32> to vector<8x16x128xbf16>
    %c0_152 = arith.constant 0 : index
    %c0_153 = arith.constant 0 : index
    %c0_154 = arith.constant 0 : index
    %c384_155 = arith.constant 384 : index
    %166 = vector.load %arg14[%c0_152, %c0_153, %c0_154, %c384_155] : memref<1x8x16x512xbf16, #tpu.memory_space<vmem>>, vector<1x8x16x128xbf16>
    %167 = vector.shape_cast %166 : vector<1x8x16x128xbf16> to vector<8x16x128xbf16>
    %168 = vector.shape_cast %165 : vector<8x16x128xbf16> to vector<1x8x16x128xbf16>
    tpu.vector_store %arg14[%c0_152, %c0_153, %c0_154, %c384_155], %168 {strides = array<i32>} : memref<1x8x16x512xbf16, #tpu.memory_space<vmem>>, vector<1x8x16x128xbf16>,
    return
  }
  func.func @transform_0(%arg0: i32, %arg1: i32) -> (i32, i32, i32, i32) {
    %c0_i32 = arith.constant 0 : i32
    %c0_i32_0 = arith.constant 0 : i32
    %c0_i32_1 = arith.constant 0 : i32
    return %arg0, %arg1, %c0_i32, %c0_i32_0 : i32, i32, i32, i32
  }
  func.func @transform_1(%arg0: i32, %arg1: i32) -> (i32, i32, i32, i32) {
    %c8_i32 = arith.constant 8 : i32
    %0 = arith.muli %arg1, %c8_i32 : i32
    %c1_i32 = arith.constant 1 : i32
    %1 = arith.subi %0, %c1_i32 : i32
    %c0_i32 = arith.constant 0 : i32
    %2 = arith.maxsi %1, %c0_i32 : i32
    %c0_i32_0 = arith.constant 0 : i32
    %c0_i32_1 = arith.constant 0 : i32
    %c0_i32_2 = arith.constant 0 : i32
    return %arg0, %2, %c0_i32_0, %c0_i32_1 : i32, i32, i32, i32
  }
  func.func @transform_2(%arg0: i32, %arg1: i32) -> (i32, i32, i32, i32) {
    %c1_i32 = arith.constant 1 : i32
    %0 = arith.addi %arg1, %c1_i32 : i32
    %c8_i32 = arith.constant 8 : i32
    %1 = arith.muli %0, %c8_i32 : i32
    %c15_i32 = arith.constant 15 : i32
    %2 = arith.minsi %1, %c15_i32 : i32
    %c0_i32 = arith.constant 0 : i32
    %c0_i32_0 = arith.constant 0 : i32
    %c0_i32_1 = arith.constant 0 : i32
    return %arg0, %2, %c0_i32, %c0_i32_0 : i32, i32, i32, i32
  }
  func.func @transform_3(%arg0: i32, %arg1: i32) -> (i32, i32) {
    %c0_i32 = arith.constant 0 : i32
    %c0_i32_0 = arith.constant 0 : i32
    %c0_i32_1 = arith.constant 0 : i32
    return %c0_i32, %c0_i32_0 : i32, i32
  }
  func.func @transform_4(%arg0: i32, %arg1: i32) -> (i32, i32) {
    %c0_i32 = arith.constant 0 : i32
    %c0_i32_0 = arith.constant 0 : i32
    %c0_i32_1 = arith.constant 0 : i32
    return %c0_i32, %c0_i32_0 : i32, i32
  }
  func.func @transform_5(%arg0: i32, %arg1: i32) -> (i32, i32) {
    %c0_i32 = arith.constant 0 : i32
    %c0_i32_0 = arith.constant 0 : i32
    %c0_i32_1 = arith.constant 0 : i32
    return %c0_i32, %c0_i32_0 : i32, i32
  }
  func.func @transform_6(%arg0: i32, %arg1: i32) -> (i32, i32, i32, i32) {
    %c0_i32 = arith.constant 0 : i32
    %c0_i32_0 = arith.constant 0 : i32
    %c0_i32_1 = arith.constant 0 : i32
    %c0_i32_2 = arith.constant 0 : i32
    %c0_i32_3 = arith.constant 0 : i32
    return %c0_i32, %c0_i32_0, %c0_i32_1, %c0_i32_2 : i32, i32, i32, i32
  }
  func.func @transform_7(%arg0: i32, %arg1: i32) -> (i32, i32) {
    %c0_i32 = arith.constant 0 : i32
    %c0_i32_0 = arith.constant 0 : i32
    %c0_i32_1 = arith.constant 0 : i32
    return %c0_i32, %c0_i32_0 : i32, i32
  }
  func.func @transform_8(%arg0: i32, %arg1: i32) -> (i32, i32) {
    %c0_i32 = arith.constant 0 : i32
    %c0_i32_0 = arith.constant 0 : i32
    %c0_i32_1 = arith.constant 0 : i32
    return %c0_i32, %c0_i32_0 : i32, i32
  }
  func.func @transform_9(%arg0: i32, %arg1: i32) -> (i32, i32) {
    %c0_i32 = arith.constant 0 : i32
    %c0_i32_0 = arith.constant 0 : i32
    %c0_i32_1 = arith.constant 0 : i32
    return %c0_i32, %c0_i32_0 : i32, i32
  }
  func.func @transform_10(%arg0: i32, %arg1: i32) -> (i32, i32) {
    %c0_i32 = arith.constant 0 : i32
    %c0_i32_0 = arith.constant 0 : i32
    %c0_i32_1 = arith.constant 0 : i32
    return %c0_i32, %c0_i32_0 : i32, i32
  }
  func.func @transform_11(%arg0: i32, %arg1: i32) -> (i32, i32) {
    %c0_i32 = arith.constant 0 : i32
    %c0_i32_0 = arith.constant 0 : i32
    %c0_i32_1 = arith.constant 0 : i32
    return %c0_i32, %c0_i32_0 : i32, i32
  }
  func.func @transform_12(%arg0: i32, %arg1: i32) -> (i32, i32, i32, i32) {
    %c0_i32 = arith.constant 0 : i32
    %c0_i32_0 = arith.constant 0 : i32
    %c0_i32_1 = arith.constant 0 : i32
    return %arg0, %arg1, %c0_i32, %c0_i32_0 : i32, i32, i32, i32
  }
}

</mosaic_0001>

<bundles_post_ra>
// kernel: tpu_custom_call.1
= control target key start
LH: loop header
LB: loop body
LE: loop exit
PB: predicated region body
PF: predicated region fallthrough
CT: control target
= control target key end

     0   :  { %s9854_s0 = inlined_call_operand.hbm [shape: bf16[2,16,16,512], index: 0, kind: input, shape index: {}]   ;;  %s9855_s1 = inlined_call_operand.hbm [shape: bf16[2,16,16,512], index: 1, kind: input, shape index: {}]   ;;  %s9856_s2 = inlined_call_operand.hbm [shape: bf16[2,16,16,512], index: 2, kind: input, shape index: {}]   ;;  %s9857_s3 = inlined_call_operand.hbm [shape: bf16[512,128], index: 3, kind: input, shape index: {}]   ;;  %s9858_s4 = inlined_call_operand.hbm [shape: f32[1,128], index: 4, kind: input, shape index: {}]   ;;  %s9859_s5 = inlined_call_operand.hbm [shape: f32[1,128], index: 5, kind: input, shape index: {}]   ;;  %s9860_s6 = inlined_call_operand.hbm [shape: bf16[3,3,128,128], index: 6, kind: input, shape index: {}]   ;;  %s9861_s7 = inlined_call_operand.hbm [shape: f32[1,128], index: 7, kind: input, shape index: {}]   ;;  %s9862_s8 = inlined_call_operand.hbm [shape: f32[1,128], index: 8, kind: input, shape index: {}]   ;;  %s9863_s9 = inlined_call_operand.hbm [shape: bf16[128,512], index: 9, kind: input, shape index: {}]   ;;  %s9864_s10 = inlined_call_operand.vmem [shape: f32[1,512], index: 10, kind: input, shape index: {}]   ;;  %s9865_s11 = inlined_call_operand.vmem [shape: f32[1,512], index: 11, kind: input, shape index: {}]   ;;  %s9866_s12 = inlined_call_operand.hbm [shape: bf16[2,16,16,512], index: 12, kind: output, shape index: {}]  }
   0x1   :  { %9893 = sst [smem:[#allocation46_spill]] %s9854_s0 }
   0x2   :  { %9894 = sst [smem:[#allocation47_spill]] %s9855_s1 }
   0x3   :  { %9895 = sst [smem:[#allocation48_spill]] %s9856_s2 }
   0x4   :  { %9896 = sst [smem:[#allocation49_spill]] %s9857_s3 }
   0x5   :  { %9897 = sst [smem:[#allocation50_spill]] %s9858_s4 }
   0x6   :  { %9898 = sst [smem:[#allocation51_spill]] %s9859_s5 }
   0x7   :  { %9899 = sst [smem:[#allocation52_spill]] %s9860_s6 }
   0x8   :  { %9900 = sst [smem:[#allocation53_spill]] %s9861_s7 }
   0x9   :  { %9901 = sst [smem:[#allocation54_spill]] %s9862_s8 }
   0xa   :  { %9902 = sst [smem:[#allocation55_spill]] %s9863_s9 }
   0xb   :  { %9903 = sst [smem:[#allocation56_spill]] %s9864_s10 }
   0xc   :  { %9904 = sst [smem:[#allocation57_spill]] %s9865_s11 }
   0xd   :  { %9905 = sst [smem:[#allocation58_spill]] %s9866_s12 }
   0xe   :  { %17 = vsyncpa [#allocation4], 0 }
   0xf   :  { %19 = vsyncpa [#allocation4 + $0x1], 0 }
  0x10   :  { %20 = vsyncpa [#allocation7], 0 }
  0x11   :  { %22 = vsyncpa [#allocation7 + $0x1], 0 }
  0x12   :  { %23 = vsyncpa [#allocation10], 0 }
  0x13   :  { %24 = vsyncpa [#allocation13], 0 }
  0x14   :  { %25 = vsyncpa [#allocation16], 0 }
  0x15   :  { %26 = vsyncpa [#allocation19], 0 }
  0x16   :  { %27 = vsyncpa [#allocation5], 0 }
  0x17   :  { %29 = vsyncpa [#allocation5 + $0x1], 0  ;;  %s8351_s21 = smov 0   ;;  %s8353_s22 = smov 0  }
  0x18   :  { %s8355_s23 = smov 0   ;;  %s8357_s24 = smov 0  }
  0x19   :  { %s8359_s25 = smov 0   ;;  %s8361_s26 = smov 0  }
  0x1a   :  { %s8363_s27 = smov 0   ;;  %s8365_s28 = smov 0  }
  0x1b   :  { %s8367_s29 = smov 0   ;;  %s8369_s30 = smov 0  }
  0x1c   :  { %s8371_s13 = smov 0   ;;  %s8373_s14 = smov 0  }
  0x1d   :  { %s8375_s15 = smov 0   ;;  %s8377_s16 = smov 0  }
  0x1e LB: > { %9906 = sst [smem:[#allocation29_spill]] %s8218_s21  ;;  %s8422_s17 = sadd.s32 4294967295, %s8270_s16   ;;  %s8270_s16 = sphi %s8377_s16, %s35_s16   ;;  %s8266_s15 = sphi %s8375_s15, %s9985_s15   ;;  %s8262_s14 = sphi %s8373_s14, %s9984_s14   ;;  %s8258_s13 = sphi %s8371_s13, %s9983_s13   ;;  %s8254_s30 = sphi %s8369_s30, %s9982_s30   ;;  %s8250_s29 = sphi %s8367_s29, %s9989_s29   ;;  %s8246_s28 = sphi %s8365_s28, %s9988_s28   ;;  %s8242_s27 = sphi %s8363_s27, %s9987_s27   ;;  %s8238_s26 = sphi %s8361_s26, %s9981_s26   ;;  %s8234_s25 = sphi %s8359_s25, %s9980_s25   ;;  %s8230_s24 = sphi %s8357_s24, %s9979_s24   ;;  %s8226_s23 = sphi %s8355_s23, %s9986_s23   ;;  %s8222_s22 = sphi %s8353_s22, %s9978_s22   ;;  %s8218_s21 = sphi %s8351_s21, %s9977_s21  }
  0x1f   : > { %9907 = sst [smem:[#allocation30_spill]] %s8222_s22  ;;  %p6133_p0 = scmp.ge.s32.totalorder %s8270_s16, 1 }
  0x20   : > { %9908 = sst [smem:[#allocation31_spill]] %s8226_s23  ;;  %p70_p1 = scmp.eq.s32.totalorder %s8422_s17, 0 }
  0x21   : > { %9909 = sst [smem:[#allocation32_spill]] %s8234_s25  ;;  %p369_p2 = scmp.lt.s32.totalorder %s8270_s16, 5 }
  0x22   : > { %9910 = sst [smem:[#allocation33_spill]] %s8238_s26  ;;  %s9871_s19 = smov 64  }
  0x23   : > { %9911 = sst [smem:[#allocation34_spill]] %s8254_s30  ;;  %p8430_p3 = pnand %p6133_p0, %p369_p2 }
  0x24   : > { %9912 = sst [smem:[#allocation35_spill]] %s8258_s13  ;;  %s8272_s13 = smov [#allocation9]  }
  0x25   : > { %9913 = sst [smem:[#allocation36_spill]] %s8262_s14  ;;  %p7591_p4 = pneg %p8430_p3 }
  0x26   : > { %9914 = sst [smem:[#allocation37_spill]] %s8266_s15  ;;  %s382_s11 = sshll.u32 %s8272_s13, 4  ;;  %s383_s11 = int_to_ptr.vmem [resolvable:$true] %s382_s11 }
  0x27   : > { %s9915_s3 = sld [smem:[#allocation49_spill]]  ;;  %p8438_p5 = pnand %p7591_p4, %p70_p1 }
  0x28   : > { %s9916_s12 = scalar_select %p8430_p3, 1, 0 }
  0x29   : > { %s9919_s5 = sld [smem:[#allocation51_spill]]  ;;  %s8275_s13 = smov [#allocation12]  }
  0x2a   : > { %9917 = sst [smem:[#allocation38_spill]] %s9916_s12  ;;  %s409_s12 = sshll.u32 %s8275_s13, 4  ;;  %s410_s12 = int_to_ptr.vmem [resolvable:$true] %s409_s12 }
  0x2b   : > { %s9920_s7 = sld [smem:[#allocation53_spill]]  ;;  %p64_p7 = scmp.eq.s32.totalorder %s8270_s16, 0 }
  0x2c   : > { %s6127_s13 = sshll.u32 %s8262_s14, 3  ;;  %p99_p12 = scmp.ne.s32.totalorder %s8238_s26, %s8234_s25 }
  0x2d   : > { %s380_s20 = sshll.u32 %s9915_s3, 4  ;;  %s9872_s3 = smov 4   ;;  %s381_s20 = int_to_ptr.hbm [resolvable:$true] %s380_s20 }
  0x2e   : > { %7594 = dma.hbm_to_vmem [thread:$0]  (!%p8438_p5), %s381_s20, 4096, %s383_s11, [#allocation10], %s9871_s19, %s9871_s19, %s9872_s3  }
  0x2f   : > { %s407_s18 = sshll.u32 %s9919_s5, 4  ;;  %s8276_s5 = smov [#allocation15]   ;;  %s408_s18 = int_to_ptr.hbm [resolvable:$true] %s407_s18 }
  0x30   : > { %7600 = dma.hbm_to_vmem [thread:$0]  (!%p8438_p5), %s408_s18, 16, %s410_s12, [#allocation13]  }
  0x31   : > { %s433_s0 = sshll.u32 %s9920_s7, 4  ;;  %s435_s21 = sshll.u32 %s8276_s5, 4  ;;  %s434_s0 = int_to_ptr.hbm [resolvable:$true] %s433_s0  ;;  %s436_s21 = int_to_ptr.vmem [resolvable:$true] %s435_s21 }
  0x32   : > { %7606 = dma.hbm_to_vmem [thread:$0]  (!%p8438_p5), %s434_s0, 16, %s436_s21, [#allocation16]  }
  0x33   : > { %s44_s11 = sadd.s32 1, %s8262_s14  ;;  %s47_s20 = sadd.s32 1, %s8266_s15 }
  0x34   : > { %p45_p6 = scmp.ge.s32.totalorder %s44_s11, 2  ;;  %s6128_s5 = sadd.s32 4294967295, %s6127_s13 }
  0x35   : > { %p81_p9 = scmp.gt.s32.totalorder %s6128_s5, 0  ;;  %s92_s21 = sadd.s32 1, %s8238_s26 }
  0x36   : > { %s9991_s11 = smov (%p45_p6, %s44_s11), 0  ;;  %s9993_s20 = smov (!%p45_p6, %s47_s20), %s8266_s15 }
  0x37   : > { %9921 = sst [smem:[#allocation39_spill]] %s9991_s11  ;;  %s52_s12 = ssub.s32 %s8262_s14, %s9991_s11 }
  0x38   : > { %p49_p8 = scmp.ge.s32.totalorder %s9993_s20, 2  ;;  %s6129_s0 = sshll.u32 %s9991_s11, 3 }
  0x39   : > { %s9997_s5 = smov (!%p81_p9, %s6128_s5), 0  ;;  %s6130_s2 = sadd.s32 4294967295, %s6129_s0 }
  0x3a   : > { %s9995_s20 = smov (%p49_p8, %s9993_s20), 0  ;;  %p85_p10 = scmp.gt.s32.totalorder %s6130_s2, 0 }
  0x3b   : > { %9922 = sst [smem:[#allocation40_spill]] %s9995_s20  ;;  %s8472_s18 = ssub.s32 %s8266_s15, %s9995_s20 }
  0x3c   : > { %9923 = sst [smem:[#allocation41_spill]] %s8472_s18  ;;  %s8475_s30 = sor.u32 %s52_s12, %s8472_s18 }
  0x3d   : > { %p54_p11 = scmp.eq.s32.totalorder %s8475_s30, 0  ;;  %s9999_s2 = smov (!%p85_p10, %s6130_s2), 0 }
  0x3e   : > { %p8482_p13 = por %p99_p12, %p64_p7  ;;  %p105_p0 = scmp.ne.s32.totalorder %s8234_s25, %s8230_s24 }
  0x3f   : > { %s88_s3 = ssub.s32 %s9997_s5, %s9999_s2  ;;  %s8488_s7 = sadd.s32 8, %s6127_s13 }
  0x40   : > { %9925 = sst [smem:[#allocation42_spill]] %s8488_s7  ;;  %s89_s12 = sor.u32 %s88_s3, %s8472_s18 }
  0x41   : > { %p8493_p2 = por %p105_p0, %p70_p1  ;;  %p90_p4 = scmp.eq.s32.totalorder %s89_s12, 0 }
  0x42   : > { %p117_p6 = scmp.lt.s32.totalorder %s8488_s7, 15  ;;  %s8498_s11 = sadd.s32 8, %s6129_s0 }
  0x43   : > { %s9926_s20 = scalar_select %p8493_p2, 1, 0 }
  0x44   : > { %9928 = sst [smem:[#allocation44_spill]] %s8498_s11  ;;  %p9892_p9 = scmp.lt.s32.totalorder %s8270_s16, 4 }
  0x45   : > { %9927 = sst [smem:[#allocation43_spill]] %s9926_s20  ;;  %s8506_s24 = sshll.u32 %s8266_s15, 7 }
  0x46   : > { %s8501_s22 = scalar_select %p90_p4, %s8238_s26, %s92_s21  }
  0x47   : > { %s503_s3 = sand.u32 1, %s8270_s16   ;;  %s505_s13 = sand.u32 1, %s8238_s26  }
  0x48   : > { %9929 = sst [smem:[#allocation45_spill]] %s8501_s22  ;;  %s6147_s2 = sshll.u32 %s505_s13, 5 }
  0x49   : > { %s6150_s25 = sshll.u32 %s9997_s5, 3  ;;  %s507_s20 = scalar_lea.vmem [#allocation6], %s6147_s2 }
  0x4a   : > { %s516_s18 = sadd.s32 %s6150_s25, %s8506_s24  ;;  %s521_s12 = sshll.u32 %s507_s20, 4  ;;  %s522_s12 = int_to_ptr.vmem [resolvable:$true] %s521_s12 }
  0x4b   : > { %s6152_s7 = sshll.u32 %s516_s18, 2  ;;  %s9930_s1 = sld [smem:[#allocation47_spill]] }
  0x4c   : > { %p7617_p10 = pnand %p9892_p9, %p8482_p13  ;;  %s9931_s4 = sld [smem:[#allocation50_spill]] }
  0x4d   : > { %s8521_s5 = scalar_lea.sflag [#allocation7], %s503_s3  ;;  %s9887_s25 = smov 256  }
  0x4e   : > { %s9889_s20 = smov 16   ;;  %s9932_s6 = sld [smem:[#allocation52_spill]] }
  0x4f   : > { %s9933_s8 = sld [smem:[#allocation54_spill]]  ;;  %s8280_s2 = smov [#allocation14]  }
  0x50   : > { %s9935_s0 = smov 64   ;;  %s9936_s9 = sld [smem:[#allocation55_spill]] }
  0x51   : > { %s518_s21 = scalar_lea.hbm %s9930_s1, %s6152_s7  ;;  %s8279_s7 = smov [#allocation11]  }
  0x52   : > { %s519_s15 = sshll.u32 %s518_s21, 4  ;;  %s395_s26 = sshll.u32 %s9931_s4, 4  ;;  %s520_s15 = int_to_ptr.hbm [resolvable:$true] %s519_s15  ;;  %s396_s26 = int_to_ptr.hbm [resolvable:$true] %s395_s26 }
  0x53   : > { %7619 = dma.hbm_to_vmem [thread:$0]  (!%p7617_p10), %s520_s15, 512, %s522_s12, %s8521_s5, %s9887_s25, %s9887_s25, %s9889_s20  }
  0x54   : > { %s397_s23 = sshll.u32 %s8279_s7, 4  ;;  %s418_s22 = sshll.u32 %s9932_s6, 4  ;;  %s398_s23 = int_to_ptr.vmem [resolvable:$true] %s397_s23  ;;  %s419_s22 = int_to_ptr.hbm [resolvable:$true] %s418_s22 }
  0x55   : > { %7597 = dma.hbm_to_vmem [thread:$0]  (!%p8438_p5), %s396_s26, 16, %s398_s23, [#allocation10]  }
  0x56   : > { %s445_s13 = sshll.u32 %s9933_s8, 4  ;;  %s420_s15 = sshll.u32 %s8280_s2, 4  ;;  %s446_s13 = int_to_ptr.hbm [resolvable:$true] %s445_s13  ;;  %s421_s15 = int_to_ptr.vmem [resolvable:$true] %s420_s15 }
  0x57   : > { %s9934_s12 = smov 4   ;;  %s8281_s26 = smov [#allocation17]  }
  0x58   : > { %7603 = dma.hbm_to_vmem [thread:$0]  (!%p8438_p5), %s419_s22, 9216, %s421_s15, [#allocation13], %s9935_s0, %s9935_s0, %s9934_s12  }
  0x59   : > { %s447_s21 = sshll.u32 %s8281_s26, 4  ;;  %s456_s19 = sshll.u32 %s9936_s9, 4  ;;  %s448_s21 = int_to_ptr.vmem [resolvable:$true] %s447_s21  ;;  %s457_s19 = int_to_ptr.hbm [resolvable:$true] %s456_s19 }
  0x5a   : > { %7609 = dma.hbm_to_vmem [thread:$0]  (!%p8438_p5), %s446_s13, 16, %s448_s21, [#allocation16]  }
  0x5b   : > { %s8282_s18 = smov [#allocation18]   ;;  %s6126_s22 = sadd.s32 4294967294, %s8270_s16  }
  0x5c   : > { %s458_s11 = sshll.u32 %s8282_s18, 4  ;;  %s56_s3 = sadd.s32 1, %s8250_s29  ;;  %s459_s11 = int_to_ptr.vmem [resolvable:$true] %s458_s11 }
  0x5d   : > { %7612 = dma.hbm_to_vmem [thread:$0]  (!%p8438_p5), %s457_s19, 4096, %s459_s11, [#allocation19], %s9887_s25, %s9887_s25, %s9889_s20  }
  0x5e   : > { %p63_p12 = scmp.ne.s32.totalorder %s8250_s29, %s8246_s28  ;;  %p69_p0 = scmp.ne.s32.totalorder %s8246_s28, %s8242_s27 }
  0x5f   : > { %s8557_s2 = scalar_select %p54_p11, %s8250_s29, %s56_s3  }
  0x60   : > { %p8561_p13 = por %p64_p7, %p63_p12  ;;  %p356_p4 = scmp.eq.s32.totalorder %s8422_s17, 3 }
  0x61   : > { %p362_p10 = scmp.eq.s32.totalorder %s6126_s22, 3  ;;  %p8570_p8 = por %p70_p1, %p69_p0 }
  0x62   : > { %s478_s13 = sand.u32 1, %s8250_s29   ;;  %s9939_s12 = sld [smem:[#allocation31_spill]] }
  0x63   : > { %p8575_p5 = por %p356_p4, %p63_p12  ;;  %s9941_s0 = sld [smem:[#allocation42_spill]] }
  0x64   : > { %p8579_p11 = por %p362_p10, %p69_p0  ;;  %s9943_s21 = sld [smem:[#allocation44_spill]] }
  0x65   : > { %s6142_s7 = sshll.u32 %s478_s13, 8  ;;  %s9944_s23 = sld [smem:[#allocation30_spill]] }
  0x66   : > { %s7263_s19 = sshll.u32 %s8262_s14, 6  ;;  %s9945_s18 = sld [smem:[#allocation29_spill]] }
  0x67   : > { %s488_s11 = sadd.s32 %s7263_s19, %s8506_s24  ;;  %s482_s22 = scalar_lea.vmem [#allocation3], %s6142_s7 }
  0x68   : > { %s493_s3 = sshll.u32 %s482_s22, 4  ;;  %s9946_s25 = sld [smem:[#allocation41_spill]]  ;;  %s494_s3 = int_to_ptr.vmem [resolvable:$true] %s493_s3 }
  0x69   : > { %s6146_s20 = sshll.u32 %s488_s11, 2  ;;  %s9947_s6 = sld [smem:[#allocation46_spill]] }
  0x6a   : > { %p7614_p12 = pnand %p9892_p9, %p8561_p13  ;;  %s479_s14 = scalar_lea.sflag [#allocation4], %s478_s13 }
  0x6b   : > { %s9948_s19 = smov 16   ;;  %s9949_s7 = smov 256  }
  0x6c   : > { %s128_s11 = sadd.s32 1, %s9939_s12  ;;  %s10001_s0 = smov (!%p117_p6, %s9941_s0), 15 }
  0x6d   : > { %p9950_p0 = scmp.lt.s32.totalorder %s9943_s21, 15  ;;  %p135_p4 = scmp.ne.s32.totalorder %s9939_s12, %s9944_s23 }
  0x6e   : > { %p141_p10 = scmp.ne.s32.totalorder %s9944_s23, %s9945_s18  ;;  %s533_s4 = sand.u32 1, %s9939_s12  }
  0x6f   : > { %s490_s8 = scalar_lea.hbm %s9947_s6, %s6146_s20  ;;  %s10003_s21 = smov (!%p9950_p0, %s9943_s21), 15 }
  0x70   : > { %s491_s9 = sshll.u32 %s490_s8, 4  ;;  %s124_s1 = ssub.s32 %s10001_s0, %s10003_s21  ;;  %s492_s9 = int_to_ptr.hbm [resolvable:$true] %s491_s9 }
  0x71   : > { %7616 = dma.hbm_to_vmem [thread:$0]  (!%p7614_p12), %s492_s9, 4096, %s494_s3, %s479_s14, %s9949_s7, %s9949_s7, %s9948_s19  }
  0x72   : > { %s125_s6 = sor.u32 %s124_s1, %s9946_s25  ;;  %p8610_p13 = por %p135_p4, %p64_p7 }
  0x73   : > { %p126_p9 = scmp.eq.s32.totalorder %s125_s6, 0  ;;  %p8616_p12 = por %p141_p10, %p70_p1 }
  0x74   : > { %s6153_s14 = sshll.u32 %s533_s4, 5  ;;  %s6155_s20 = sshll.u32 %s10001_s0, 3 }
  0x75   : > { %s10005_s12 = smov (!%p126_p9, %s9939_s12), %s128_s11  ;;  %s544_s15 = sadd.s32 %s6155_s20, %s8506_s24 }
  0x76   : > { %s6157_s13 = sshll.u32 %s544_s15, 2  ;;  %s535_s25 = scalar_lea.vmem [#allocation8], %s6153_s14 }
  0x77   : > { %s549_s21 = sshll.u32 %s535_s25, 4  ;;  %s9953_s22 = sld [smem:[#allocation48_spill]]  ;;  %s550_s21 = int_to_ptr.vmem [resolvable:$true] %s549_s21 }
  0x78   : > { %p9954_p7 = scmp.lt.s32.totalorder %s8270_s16, 4  ;;  %s8638_s24 = sand.u32 (!%p8430_p3), 1, %s8246_s28  }
  0x79   : > { %s6159_s11 = sshll.u32 (!%p8430_p3), %s8638_s24, 8  ;;  %s564_s4 = scalar_lea.sflag (!%p8430_p3), [#allocation4], %s8638_s24 }
  0x7a   : > { %p7620_p6 = pnand %p9954_p7, %p8610_p13  ;;  %s8644_s6 = scalar_lea.vmem (!%p8430_p3), [#allocation3], %s6159_s11 }
  0x7b   : > { %561 = sbr.rel (%p8430_p3) target bundleno = 1481 (0x5c9), region = 68 }
  0x7d   : > { %s546_s3 = scalar_lea.hbm %s9953_s22, %s6157_s13 }
  0x7e   : > { %s547_s1 = sshll.u32 %s546_s3, 4  ;;  %s548_s1 = int_to_ptr.hbm [resolvable:$true] %s547_s1 }
  0x7f   : > { %7622 = dma.hbm_to_vmem [thread:$0]  (!%p7620_p6), %s548_s1, 512, %s550_s21, %s8521_s5, %s9949_s7, %s9949_s7, %s9948_s19  }
  0x80   : > { %8185 = dma.done.wait (%p8570_p8), %s564_s4, 4096  }
  0x81   : > { %8187 = vsyncadd (%p8570_p8), %s564_s4, 4294963200  ;;  %s9956_s5 = sld [smem:[#allocation32_spill]]  ;;  %s573_s7 = sand.u32 1, %s8422_s17  }
  0x82   : > { %s574_s20 = scalar_lea.sflag [#allocation7], %s573_s7 }
  0x87   : > { %s575_s8 = sand.u32 1, %s9956_s5  }
  0x88   : > { %s6160_s14 = sshll.u32 %s575_s8, 5 }
  0x89   : > { %s8652_s15 = scalar_lea.vmem [#allocation6], %s6160_s14 }
  0x8a   : > { %8189 = dma.done.wait (%p8493_p2), %s574_s20, 512  }
  0x8b   : > { %8191 = vsyncadd (%p8493_p2), %s574_s20, 4294966784  ;;  %s9958_s13 = sld [smem:[#allocation30_spill]] }
  0x91   : > { %s585_s25 = sand.u32 1, %s9958_s13  }
  0x92   : > { %s6161_s21 = sshll.u32 %s585_s25, 5 }
  0x93   : > { %s8659_s10 = scalar_lea.vmem [#allocation8], %s6161_s21 }
  0x94   : > { %8193 = dma.done.wait (%p8616_p12), %s574_s20, 512  }
  0x95   : > { %8195 = vsyncadd (%p8616_p12), %s574_s20, 4294966784 }
  0x96   : > { %8197 = dma.done.wait (%p70_p1), [#allocation10], 4112  }
  0x97   : > { %8199 = vsyncadd (%p70_p1), [#allocation10], 4294963184 }
  0x98   : > { %8201 = dma.done.wait (%p70_p1), [#allocation13], 9232  }
  0x99   : > { %8203 = vsyncadd (%p70_p1), [#allocation13], 4294958064 }
  0x9a   : > { %8205 = dma.done.wait (%p70_p1), [#allocation16], 32  }
  0x9b   : > { %8207 = vsyncadd (%p70_p1), [#allocation16], 4294967264 }
  0x9c   : > { %8209 = dma.done.wait (%p70_p1), [#allocation19], 4096  }
  0x9d   : > { %8211 = vsyncadd (%p70_p1), [#allocation19], 4294963200  ;;  %v8283_v0 = vmov 0   ;;  %v7305_v1 = vld [vmem:[#allocation9 + $0x38] sm:$0xff]  ;;  %v7304_v5 = vld [vmem:[#allocation9 + $0x30] sm:$0xff]  ;;  %vm1595_vm0 = vcmask 1043456  }
  0x9e   : > { %685 = vst [vmem:[#allocation2] sm:$0xf] %v8283_v0  ;;  %v7313_v2 = vld [vmem:[#allocation9 + $0x78] sm:$0xff]  ;;  %1163 = vmatpush.bf16.msra.mxu0 %v7305_v1  ;;  %v7312_v6 = vld [vmem:[#allocation9 + $0x70] sm:$0xff]  ;;  %v7303_v9 = vld [vmem:[#allocation9 + $0x28] sm:$0xff]  ;;  %vm1602_vm5 = vcmask 1040384  }
  0x9f   : > { %686 = vst [vmem:[#allocation2 + $0x4] sm:$0xf] %v8283_v0  ;;  %v7321_v3 = vld [vmem:[#allocation9 + $0xb8] sm:$0xff]  ;;  %1212 = vmatpush.bf16.msra.mxu1 %v7313_v2  ;;  %v7320_v7 = vld [vmem:[#allocation9 + $0xb0] sm:$0xff]  ;;  %v7311_v10 = vld [vmem:[#allocation9 + $0x68] sm:$0xff]  ;;  %s8873_s17 = scalar_lea.vmem [#allocation20], %s6159_s11 }
  0xa0   : > { %687 = vst [vmem:[#allocation2 + $0x8] sm:$0x1] %v8283_v0  ;;  %v7329_v4 = vld [vmem:[#allocation9 + $0xf8] sm:$0xff]  ;;  %1261 = vmatpush.bf16.msra.mxu2 %v7321_v3  ;;  %v7328_v8 = vld [vmem:[#allocation9 + $0xf0] sm:$0xff]  ;;  %v7319_v11 = vld [vmem:[#allocation9 + $0xa8] sm:$0xff]  ;;  %s9965_s9 = sld [smem:[#allocation34_spill]] }
  0xa1   : > { %712 = vst [vmem:[#allocation2 + $0x6c] sm:$0xf] %v8283_v0  ;;  %1310 = vmatpush.bf16.msra.mxu3 %v7329_v4  ;;  %v7327_v12 = vld [vmem:[#allocation9 + $0xe8] sm:$0xff]  ;;  %v7302_v13 = vld [vmem:[#allocation9 + $0x20] sm:$0xff]  ;;  %v7301_v17 = vld [vmem:[#allocation9 + $0x18] sm:$0xff] }
  0xa2   : > { %713 = vst [vmem:[#allocation2 + $0x70] sm:$0xf] %v8283_v0  ;;  %1164 = vmatpush.bf16.msra.mxu0 %v7304_v5  ;;  %v7310_v14 = vld [vmem:[#allocation9 + $0x60] sm:$0xff]  ;;  %v7309_v18 = vld [vmem:[#allocation9 + $0x58] sm:$0xff]  ;;  %v7300_v21 = vld [vmem:[#allocation9 + $0x10] sm:$0xff] }
  0xa3   : > { %714 = vst [vmem:[#allocation2 + $0x74] sm:$0x1] %v8283_v0  ;;  %1213 = vmatpush.bf16.msra.mxu1 %v7312_v6  ;;  %v7318_v15 = vld [vmem:[#allocation9 + $0xa0] sm:$0xff]  ;;  %v7317_v19 = vld [vmem:[#allocation9 + $0x98] sm:$0xff]  ;;  %v7308_v22 = vld [vmem:[#allocation9 + $0x50] sm:$0xff] }
  0xa4   : > { %688 = vst [vmem:[#allocation2 + $0xc] sm:$0xf] %v8283_v0  ;;  %1262 = vmatpush.bf16.msra.mxu2 %v7320_v7  ;;  %v7326_v16 = vld [vmem:[#allocation9 + $0xe0] sm:$0xff]  ;;  %v7325_v20 = vld [vmem:[#allocation9 + $0xd8] sm:$0xff]  ;;  %v7316_v23 = vld [vmem:[#allocation9 + $0x90] sm:$0xff] }
  0xa5   : > { %689 = vst [vmem:[#allocation2 + $0x10] sm:$0xf] %v8283_v0  ;;  %1311 = vmatpush.bf16.msra.mxu3 %v7328_v8  ;;  %v7324_v24 = vld [vmem:[#allocation9 + $0xd0] sm:$0xff]  ;;  %v7299_v25 = vld [vmem:[#allocation9 + $0x8] sm:$0xff]  ;;  %v7298_v29 = vld [vmem:[#allocation9] sm:$0xff] }
  0xa6   : > { %690 = vst [vmem:[#allocation2 + $0x14] sm:$0x1] %v8283_v0  ;;  %1165 = vmatpush.bf16.msra.mxu0 %v7303_v9  ;;  %v7307_v26 = vld [vmem:[#allocation9 + $0x48] sm:$0xff]  ;;  %v7306_v30 = vld [vmem:[#allocation9 + $0x40] sm:$0xff]  ;;  %v7268_v34 = vld [vmem:[%s8644_s6 + $0xc] sm:$0xf0] }
  0xa7   : > { %691 = vst [vmem:[#allocation2 + $0x18] sm:$0xf] %v8283_v0  ;;  %1214 = vmatpush.bf16.msra.mxu1 %v7311_v10  ;;  %v7315_v27 = vld [vmem:[#allocation9 + $0x88] sm:$0xff]  ;;  %v7314_v31 = vld [vmem:[#allocation9 + $0x80] sm:$0xff]  ;;  %v6174_v36 = vld [vmem:[%s8644_s6 + $0x10] sm:$0xf0] }
  0xa8   : > { %692 = vst [vmem:[#allocation2 + $0x1c] sm:$0xf] %v8283_v0  ;;  %1263 = vmatpush.bf16.msra.mxu2 %v7319_v11  ;;  %v7323_v28 = vld [vmem:[#allocation9 + $0xc8] sm:$0xff]  ;;  %v7322_v32 = vld [vmem:[#allocation9 + $0xc0] sm:$0xff]  ;;  %v7269_v38 = vld [vmem:[%s8644_s6 + $0x14] sm:$0xf0] }
  0xa9   : > { %693 = vst [vmem:[#allocation2 + $0x20] sm:$0x1] %v8283_v0  ;;  %1312 = vmatpush.bf16.msra.mxu3 %v7327_v12  ;;  %v6172_v33 = vld [vmem:[%s8644_s6] sm:$0xf]  ;;  %v7266_v35 = vld [vmem:[%s8644_s6 + $0x4] sm:$0xf] }
  0xaa   : > { %694 = vst [vmem:[#allocation2 + $0x24] sm:$0xf] %v8283_v0  ;;  %1166 = vmatpush.bf16.msra.mxu0 %v7302_v13  ;;  %v6180_v37 = vld [vmem:[%s8644_s6 + $0x8] sm:$0xf]  ;;  %v7267_v39 = vld [vmem:[%s8644_s6 + $0xc] sm:$0xf]  ;;  %v6173_v41 = vor.u32 %v7268_v34, %v6172_v33  ;;  %v6177_v42 = vor.u32 %v7266_v35, %v6174_v36 }
  0xab   : > { %695 = vst [vmem:[#allocation2 + $0x28] sm:$0xf] %v8283_v0  ;;  %1215 = vmatpush.bf16.msra.mxu1 %v7310_v14  ;;  %v6182_v40 = vld [vmem:[%s8644_s6 + $0x18] sm:$0xf0]  ;;  %v6181_v43 = vor.u32 %v7269_v38, %v6180_v37  ;;  %v6188_v45 = vld [vmem:[%s8644_s6 + $0x20] sm:$0xf] }
  0xac   : > { %696 = vst [vmem:[#allocation2 + $0x2c] sm:$0x1] %v8283_v0  ;;  %1264 = vmatpush.bf16.msra.mxu2 %v7318_v15  ;;  %v6185_v44 = vor.u32 %v7267_v39, %v6182_v40  ;;  %v7272_v46 = vld [vmem:[%s8644_s6 + $0x2c] sm:$0xf0]  ;;  %v7270_v47 = vld [vmem:[%s8644_s6 + $0x24] sm:$0xf] }
  0xad   : > { %697 = vst [vmem:[#allocation2 + $0x30] sm:$0xf] %v8283_v0  ;;  %1313 = vmatpush.bf16.msra.mxu3 %v7326_v16  ;;  %v6190_v48 = vld [vmem:[%s8644_s6 + $0x30] sm:$0xf0]  ;;  %v6196_v49 = vld [vmem:[%s8644_s6 + $0x28] sm:$0xf]  ;;  %v6189_v53 = vor.u32 %v7272_v46, %v6188_v45 }
  0xae   : > { %698 = vst [vmem:[#allocation2 + $0x34] sm:$0xf] %v8283_v0  ;;  %1167 = vmatpush.bf16.msra.mxu0 %v7301_v17  ;;  %v7273_v50 = vld [vmem:[%s8644_s6 + $0x34] sm:$0xf0]  ;;  %v7271_v51 = vld [vmem:[%s8644_s6 + $0x2c] sm:$0xf]  ;;  %v6193_v54 = vor.u32 %v7270_v47, %v6190_v48 }
  0xaf   : > { %699 = vst [vmem:[#allocation2 + $0x38] sm:$0x1] %v8283_v0  ;;  %1216 = vmatpush.bf16.msra.mxu1 %v7309_v18  ;;  %v6198_v52 = vld [vmem:[%s8644_s6 + $0x38] sm:$0xf0]  ;;  %v6197_v55 = vor.u32 %v7273_v50, %v6196_v49  ;;  %v6204_v57 = vld [vmem:[%s8644_s6 + $0x40] sm:$0xf] }
  0xb0   : > { %700 = vst [vmem:[#allocation2 + $0x3c] sm:$0xf] %v8283_v0  ;;  %1265 = vmatpush.bf16.msra.mxu2 %v7317_v19  ;;  %v6201_v56 = vor.u32 %v7271_v51, %v6198_v52  ;;  %v7276_v58 = vld [vmem:[%s8644_s6 + $0x4c] sm:$0xf0]  ;;  %v7274_v59 = vld [vmem:[%s8644_s6 + $0x44] sm:$0xf] }
  0xb1   : > { %701 = vst [vmem:[#allocation2 + $0x40] sm:$0xf] %v8283_v0  ;;  %1314 = vmatpush.bf16.msra.mxu3 %v7325_v20  ;;  %v6206_v60 = vld [vmem:[%s8644_s6 + $0x50] sm:$0xf0]  ;;  %v6212_v61 = vld [vmem:[%s8644_s6 + $0x48] sm:$0xf]  ;;  %v6205_v1 = vor.u32 %v7276_v58, %v6204_v57 }
  0xb2   : > { %702 = vst [vmem:[#allocation2 + $0x44] sm:$0x1] %v8283_v0  ;;  %1168 = vmatpush.bf16.msra.mxu0 %v7300_v21  ;;  %v7277_v62 = vld [vmem:[%s8644_s6 + $0x54] sm:$0xf0]  ;;  %v7275_v63 = vld [vmem:[%s8644_s6 + $0x4c] sm:$0xf]  ;;  %v6209_v2 = vor.u32 %v7274_v59, %v6206_v60 }
  0xb3   : > { %703 = vst [vmem:[#allocation2 + $0x48] sm:$0xf] %v8283_v0  ;;  %1217 = vmatpush.bf16.msra.mxu1 %v7308_v22  ;;  %v6213_v3 = vor.u32 %v7277_v62, %v6212_v61  ;;  %v6220_v5 = vld [vmem:[%s8644_s6 + $0x60] sm:$0xf]  ;;  %v7280_v6 = vld [vmem:[%s8644_s6 + $0x6c] sm:$0xf0] }
  0xb4   : > { %704 = vst [vmem:[#allocation2 + $0x4c] sm:$0xf] %v8283_v0  ;;  %1266 = vmatpush.bf16.msra.mxu2 %v7316_v23  ;;  %v7278_v7 = vld [vmem:[%s8644_s6 + $0x64] sm:$0xf]  ;;  %v6222_v8 = vld [vmem:[%s8644_s6 + $0x70] sm:$0xf0]  ;;  %v6221_v13 = vor.u32 %v7280_v6, %v6220_v5 }
  0xb5   : > { %705 = vst [vmem:[#allocation2 + $0x50] sm:$0x1] %v8283_v0  ;;  %1315 = vmatpush.bf16.msra.mxu3 %v7324_v24  ;;  %v6228_v9 = vld [vmem:[%s8644_s6 + $0x68] sm:$0xf]  ;;  %v7281_v10 = vld [vmem:[%s8644_s6 + $0x74] sm:$0xf0]  ;;  %v6225_v14 = vor.u32 %v7278_v7, %v6222_v8 }
  0xb6   : > { %706 = vst [vmem:[#allocation2 + $0x54] sm:$0xf] %v8283_v0  ;;  %1169 = vmatpush.bf16.msra.mxu0 %v7299_v25  ;;  %v7279_v11 = vld [vmem:[%s8644_s6 + $0x6c] sm:$0xf]  ;;  %v6230_v12 = vld [vmem:[%s8644_s6 + $0x78] sm:$0xf0]  ;;  %v6229_v15 = vor.u32 %v7281_v10, %v6228_v9 }
  0xb7   : > { %707 = vst [vmem:[#allocation2 + $0x58] sm:$0xf] %v8283_v0  ;;  %1218 = vmatpush.bf16.msra.mxu1 %v7307_v26  ;;  %v6233_v16 = vor.u32 %v7279_v11, %v6230_v12  ;;  %v6236_v17 = vld [vmem:[%s8644_s6 + $0x80] sm:$0xf]  ;;  %v7284_v18 = vld [vmem:[%s8644_s6 + $0x8c] sm:$0xf0] }
  0xb8   : > { %708 = vst [vmem:[#allocation2 + $0x5c] sm:$0x1] %v8283_v0  ;;  %1267 = vmatpush.bf16.msra.mxu2 %v7315_v27  ;;  %v7282_v19 = vld [vmem:[%s8644_s6 + $0x84] sm:$0xf]  ;;  %v6238_v20 = vld [vmem:[%s8644_s6 + $0x90] sm:$0xf0]  ;;  %v6237_v25 = vor.u32 %v7284_v18, %v6236_v17 }
  0xb9   : > { %709 = vst [vmem:[#allocation2 + $0x60] sm:$0xf] %v8283_v0  ;;  %1316 = vmatpush.bf16.msra.mxu3 %v7323_v28  ;;  %v6244_v21 = vld [vmem:[%s8644_s6 + $0x88] sm:$0xf]  ;;  %v7285_v22 = vld [vmem:[%s8644_s6 + $0x94] sm:$0xf0]  ;;  %v6241_v26 = vor.u32 %v7282_v19, %v6238_v20 }
  0xba   : > { %710 = vst [vmem:[#allocation2 + $0x64] sm:$0xf] %v8283_v0  ;;  %1170 = vmatpush.bf16.msra.mxu0 %v7298_v29  ;;  %v7283_v23 = vld [vmem:[%s8644_s6 + $0x8c] sm:$0xf]  ;;  %v6246_v24 = vld [vmem:[%s8644_s6 + $0x98] sm:$0xf0]  ;;  %v6245_v27 = vor.u32 %v7285_v22, %v6244_v21 }
  0xbb   : > { %711 = vst [vmem:[#allocation2 + $0x68] sm:$0x1] %v8283_v0  ;;  %1219 = vmatpush.bf16.msra.mxu1 %v7306_v30  ;;  %v6214_v0 = vld [vmem:[%s8644_s6 + $0x58] sm:$0xf0]  ;;  %v6249_v28 = vor.u32 %v7283_v23, %v6246_v24  ;;  %v6252_v29 = vld [vmem:[%s8644_s6 + $0xa0] sm:$0xf] }
  0xbc   : > { %1268 = vmatpush.bf16.msra.mxu2 %v7314_v31  ;;  %v6217_v4 = vor.u32 %v7275_v63, %v6214_v0  ;;  %v7288_v30 = vld [vmem:[%s8644_s6 + $0xac] sm:$0xf0]  ;;  %v7286_v31 = vld [vmem:[%s8644_s6 + $0xa4] sm:$0xf]  ;;  %v6260_v33 = vld [vmem:[%s8644_s6 + $0xa8] sm:$0xf] }
  0xbd   : > { %1317 = vmatpush.bf16.msra.mxu3 %v7322_v32  ;;  %1171 = vmatmul.bf16.vlgmr.msra.gmra.mxu0 %v6173_v41  ;;  %v6254_v32 = vld [vmem:[%s8644_s6 + $0xb0] sm:$0xf0]  ;;  %v7289_v34 = vld [vmem:[%s8644_s6 + $0xb4] sm:$0xf0]  ;;  %v7287_v35 = vld [vmem:[%s8644_s6 + $0xac] sm:$0xf]  ;;  %v6253_v37 = vor.u32 %v7288_v30, %v6252_v29 }
  0xbe   : > { %1220 = vmatmul.bf16.vlgmr.msra.gmra.mxu1 %v6177_v42  ;;  %v6262_v36 = vld [vmem:[%s8644_s6 + $0xb8] sm:$0xf0]  ;;  %v6257_v38 = vor.u32 %v7286_v31, %v6254_v32  ;;  %v6261_v39 = vor.u32 %v7289_v34, %v6260_v33  ;;  %v6268_v41 = vld [vmem:[%s8644_s6 + $0xc0] sm:$0xf]  ;;  %v7292_v42 = vld [vmem:[%s8644_s6 + $0xcc] sm:$0xf0] }
  0xbf   : > { %1269 = vmatmul.bf16.vlgmr.msra.gmra.mxu2 %v6181_v43  ;;  %v6265_v40 = vor.u32 %v7287_v35, %v6262_v36  ;;  %v7290_v43 = vld [vmem:[%s8644_s6 + $0xc4] sm:$0xf]  ;;  %v6276_v45 = vld [vmem:[%s8644_s6 + $0xc8] sm:$0xf]  ;;  %v7293_v46 = vld [vmem:[%s8644_s6 + $0xd4] sm:$0xf0]  ;;  %v6269_v49 = vor.u32 %v7292_v42, %v6268_v41 }
  0xc0   : > { %1318 = vmatmul.bf16.vlgmr.msra.gmra.mxu3 %v6185_v44  ;;  %v6270_v44 = vld [vmem:[%s8644_s6 + $0xd0] sm:$0xf0]  ;;  %v7291_v47 = vld [vmem:[%s8644_s6 + $0xcc] sm:$0xf]  ;;  %v6278_v48 = vld [vmem:[%s8644_s6 + $0xd8] sm:$0xf0]  ;;  %v6277_v51 = vor.u32 %v7293_v46, %v6276_v45 }
  0xc1   : > { %v6273_v50 = vor.u32 %v7290_v43, %v6270_v44  ;;  %v6281_v52 = vor.u32 %v7291_v47, %v6278_v48  ;;  %v6292_v57 = vld [vmem:[%s8644_s6 + $0xe8] sm:$0xf]  ;;  %v7297_v58 = vld [vmem:[%s8644_s6 + $0xf4] sm:$0xf0]  ;;  %v7295_v59 = vld [vmem:[%s8644_s6 + $0xec] sm:$0xf] }
  0xc2   : > { %v6294_v60 = vld [vmem:[%s8644_s6 + $0xf8] sm:$0xf0]  ;;  %v6293_v63 = vor.u32 %v7297_v58, %v6292_v57  ;;  %v8775_v7 = vld [vmem:[#allocation11] ss:$0 sm:$0xff]  ;;  %v8777_v11 = vld [vmem:[#allocation12] ss:$0 sm:$0xff] }
  0xc3   : > { %v6297_v0 = vor.u32 %v7295_v59, %v6294_v60  ;;  %vm1596_vm1 = vsmask.f32 7938  ;;  %v1598_v30 = vld [vmem:[#allocation2 + $0xc] sm:$0xf]  ;;  %vm1431_vm3 = vsmask.f32 256 }
  0xc4   : > { %vm8783_vm2 = vmand %vm1595_vm0, %vm1596_vm1  ;;  %vm1432_vm4 = vsmask.f32 4368  ;;  %p6426_p1 = scmp.le.s32.totalorder %s9965_s9, 0 }
  0xc5   : > { %vm8790_vm6 = vmor %vm1431_vm3, %vm1432_vm4 }
  0xc6   : > { %vm8795_vm7 = vmand %vm1602_vm5, %vm1431_vm3 }
  0xcd   : > { %1176 = vmatmul.bf16.gmra.mxu0 %v6189_v53  ;;  %v6284_v53 = vld [vmem:[%s8644_s6 + $0xe0] sm:$0xf] }
  0xce   : > { %1225 = vmatmul.bf16.gmra.mxu1 %v6193_v54  ;;  %v7296_v54 = vld [vmem:[%s8644_s6 + $0xec] sm:$0xf0] }
  0xcf   : > { %1274 = vmatmul.bf16.gmra.mxu2 %v6197_v55  ;;  %v7294_v55 = vld [vmem:[%s8644_s6 + $0xe4] sm:$0xf]  ;;  %v6285_v61 = vor.u32 %v7296_v54, %v6284_v53 }
  0xd0   : > { %1323 = vmatmul.bf16.gmra.mxu3 %v6201_v56  ;;  %v6286_v56 = vld [vmem:[%s8644_s6 + $0xf0] sm:$0xf0] }
  0xd1   : > { %v6289_v62 = vor.u32 %v7294_v55, %v6286_v56 }
  0xdd   : > { %1181 = vmatmul.bf16.gmra.mxu0 %v6205_v1 }
  0xde   : > { %1230 = vmatmul.bf16.gmra.mxu1 %v6209_v2 }
  0xdf   : > { %1279 = vmatmul.bf16.gmra.mxu2 %v6213_v3 }
  0xe0   : > { %1328 = vmatmul.bf16.gmra.mxu3 %v6217_v4 }
  0xed   : > { %1186 = vmatmul.bf16.gmra.mxu0 %v6221_v13 }
  0xee   : > { %1235 = vmatmul.bf16.gmra.mxu1 %v6225_v14 }
  0xef   : > { %1284 = vmatmul.bf16.gmra.mxu2 %v6229_v15 }
  0xf0   : > { %1333 = vmatmul.bf16.gmra.mxu3 %v6233_v16 }
  0xfd   : > { %1191 = vmatmul.bf16.gmra.mxu0 %v6237_v25 }
  0xfe   : > { %1240 = vmatmul.bf16.gmra.mxu1 %v6241_v26 }
  0xff   : > { %1289 = vmatmul.bf16.gmra.mxu2 %v6245_v27 }
 0x100   : > { %1338 = vmatmul.bf16.gmra.mxu3 %v6249_v28 }
 0x10d   : > { %1196 = vmatmul.bf16.gmra.mxu0 %v6253_v37 }
 0x10e   : > { %1245 = vmatmul.bf16.gmra.mxu1 %v6257_v38 }
 0x10f   : > { %1294 = vmatmul.bf16.gmra.mxu2 %v6261_v39 }
 0x110   : > { %1343 = vmatmul.bf16.gmra.mxu3 %v6265_v40 }
 0x11d   : > { %1201 = vmatmul.bf16.gmra.mxu0 %v6269_v49 }
 0x11e   : > { %1250 = vmatmul.bf16.gmra.mxu1 %v6273_v50  ;;  %v1604_v50 = vld [vmem:[#allocation2 + $0x14] sm:$0x1] }
 0x11f   : > { %1299 = vmatmul.bf16.gmra.mxu2 %v6277_v51 }
 0x120   : > { %1348 = vmatmul.bf16.gmra.mxu3 %v6281_v52 }
 0x12d   : > { %1206 = vmatmul.bf16.gmra.mxu0 %v6285_v61 }
 0x12e   : > { %1255 = vmatmul.bf16.gmra.mxu1 %v6289_v62 }
 0x12f   : > { %1304 = vmatmul.bf16.gmra.mxu2 %v6293_v63 }
 0x130   : > { %1353 = vmatmul.bf16.gmra.mxu3 %v6297_v0 }
 0x13a   : > { %v1172_v1 = vpop.f32.mrf.mxu0 }
 0x13b   : > { %v1221_v2 = vpop.f32.mrf.mxu1 }
 0x13c   : > { %v1222_v3 = vadd.f32 %v1221_v2, %v1172_v1 }
 0x142   : > { %v1270_v4 = vpop.f32.mrf.mxu2  ;;  %v1174_v8 = vpop.f32.mrf.mxu0 }
 0x143   : > { %v1319_v5 = vpop.f32.mrf.mxu3  ;;  %v1271_v6 = vadd.f32 %v1270_v4, %v1222_v3  ;;  %v1223_v9 = vpop.f32.mrf.mxu1 }
 0x144   : > { %v1224_v14 = vadd.f32 %v1223_v9, %v1174_v8 }
 0x145   : > { %v1320_v10 = vadd.f32 %v1319_v5, %v1271_v6  ;;  %v1607_v5 = vld [vmem:[#allocation2 + $0x18] sm:$0xf] }
 0x147   : > { %v1363_v12 = vmul.f32 %v8775_v7, %v1320_v10 }
 0x149   : > { %v1383_v13 = vadd.f32 %v8777_v11, %v1363_v12 }
 0x14a   : > { %v1272_v15 = vpop.f32.mrf.mxu2  ;;  %v1177_v19 = vpop.f32.mrf.mxu0 }
 0x14b   : > { %v1321_v16 = vpop.f32.mrf.mxu3  ;;  %v1399_v17 = vmax.f32 %v1383_v13, 0.0  ;;  %v1273_v18 = vadd.f32 %v1272_v15, %v1224_v14  ;;  %v1226_v20 = vpop.f32.mrf.mxu1 }
 0x14c   : > { %v1227_v25 = vadd.f32 %v1226_v20, %v1177_v19 }
 0x14d   : > { %v1415_v21 = vpack.c.bf16 %v1399_v17, %v1399_v17  ;;  %v1322_v22 = vadd.f32 %v1321_v16, %v1273_v18 }
 0x14f   : > { %v1435_v23 = vshrl.u32 %v1415_v21, 16  ;;  %v1364_v24 = vmul.f32 %v8775_v7, %v1322_v22  ;;  %v1438_v27 = vshll.u32 %v1415_v21, 16 }
 0x151   : > { %v1437_v26 = vrot.slane %v1435_v23, 7  ;;  %v1384_v28 = vadd.f32 %v8777_v11, %v1364_v24 }
 0x152   : > { %v1275_v31 = vpop.f32.mrf.mxu2  ;;  %v1179_v36 = vpop.f32.mrf.mxu0 }
 0x153   : > { %v1324_v32 = vpop.f32.mrf.mxu3  ;;  %v1440_v33 = vor.u32 %v1438_v27, %v1437_v26  ;;  %v1400_v34 = vmax.f32 %v1384_v28, 0.0  ;;  %v1276_v35 = vadd.f32 %v1275_v31, %v1227_v25  ;;  %v1228_v37 = vpop.f32.mrf.mxu1  ;;  %v1441_v48 = vrot.slane %v1437_v26, 4  ;;  %v1611_v25 = vld [vmem:[#allocation2 + $0x20] sm:$0x1] }
 0x154   : > { %v1229_v47 = vadd.f32 %v1228_v37, %v1179_v36 }
 0x155   : > { %v1599_v38 = vsel %vm8783_vm2, %v1440_v33, %v1598_v30  ;;  %v1416_v39 = vpack.c.bf16 %v1400_v34, %v1400_v34  ;;  %v1325_v40 = vadd.f32 %v1324_v32, %v1276_v35 }
 0x156   : > { %1600 = vst [vmem:[#allocation2 + $0xc] sm:$0xf] %v1599_v38 }
 0x157   : > { %v1443_v41 = vshrl.u32 %v1416_v39, 16  ;;  %v1365_v42 = vmul.f32 %v8775_v7, %v1325_v40  ;;  %v1446_v45 = vshll.u32 %v1416_v39, 16 }
 0x159   : > { %v1445_v44 = vrot.slane %v1443_v41, 7  ;;  %v1385_v46 = vadd.f32 %v8777_v11, %v1365_v42 }
 0x15a   : > { %v1277_v51 = vpop.f32.mrf.mxu2  ;;  %v1182_v57 = vpop.f32.mrf.mxu0 }
 0x15b   : > { %v1326_v52 = vpop.f32.mrf.mxu3  ;;  %v1448_v53 = vor.u32 %v1446_v45, %v1445_v44  ;;  %v1450_v54 = vrot.slane %v1445_v44, 4  ;;  %v1401_v55 = vmax.f32 %v1385_v46, 0.0  ;;  %v1278_v56 = vadd.f32 %v1277_v51, %v1229_v47  ;;  %v1231_v58 = vpop.f32.mrf.mxu1  ;;  %v1614_v46 = vld [vmem:[#allocation2 + $0x24] sm:$0xf] }
 0x15c   : > { %v1232_v1 = vadd.f32 %v1231_v58, %v1182_v57 }
 0x15d   : > { %v1449_v59 = vsel %vm8790_vm6, %v1441_v48, %v1448_v53  ;;  %v1605_v60 = vsel %vm8795_vm7, %v1450_v54, %v1604_v50  ;;  %v1417_v61 = vpack.c.bf16 %v1401_v55, %v1401_v55  ;;  %v1327_v62 = vadd.f32 %v1326_v52, %v1278_v56 }
 0x15e   : > { %1601 = vst [vmem:[#allocation2 + $0x10] sm:$0xf] %v1449_v59 }
 0x15f   : > { %1606 = vst [vmem:[#allocation2 + $0x14] sm:$0x1] %v1605_v60  ;;  %v1452_v63 = vshrl.u32 %v1417_v61, 16  ;;  %v1366_v0 = vmul.f32 %v8775_v7, %v1327_v62  ;;  %v1455_v3 = vshll.u32 %v1417_v61, 16 }
 0x161   : > { %v1454_v2 = vrot.slane %v1452_v63, 7  ;;  %v1386_v4 = vadd.f32 %v8777_v11, %v1366_v0 }
 0x162   : > { %v1280_v6 = vpop.f32.mrf.mxu2  ;;  %v1184_v13 = vpop.f32.mrf.mxu0 }
 0x163   : > { %v1329_v8 = vpop.f32.mrf.mxu3  ;;  %v1457_v9 = vor.u32 %v1455_v3, %v1454_v2  ;;  %v1402_v10 = vmax.f32 %v1386_v4, 0.0  ;;  %v1281_v12 = vadd.f32 %v1280_v6, %v1232_v1  ;;  %v1233_v14 = vpop.f32.mrf.mxu1  ;;  %v1458_v24 = vrot.slane %v1454_v2, 4  ;;  %v1618_v1 = vld [vmem:[#allocation2 + $0x2c] sm:$0x1] }
 0x164   : > { %v1234_v23 = vadd.f32 %v1233_v14, %v1184_v13 }
 0x165   : > { %v1608_v15 = vsel %vm8783_vm2, %v1457_v9, %v1607_v5  ;;  %v1418_v16 = vpack.c.bf16 %v1402_v10, %v1402_v10  ;;  %v1330_v17 = vadd.f32 %v1329_v8, %v1281_v12 }
 0x166   : > { %1609 = vst [vmem:[#allocation2 + $0x18] sm:$0xf] %v1608_v15 }
 0x167   : > { %v1460_v18 = vshrl.u32 %v1418_v16, 16  ;;  %v1367_v19 = vmul.f32 %v8775_v7, %v1330_v17  ;;  %v1463_v21 = vshll.u32 %v1418_v16, 16 }
 0x169   : > { %v1462_v20 = vrot.slane %v1460_v18, 7  ;;  %v1387_v22 = vadd.f32 %v8777_v11, %v1367_v19 }
 0x16a   : > { %v1282_v26 = vpop.f32.mrf.mxu2  ;;  %v1187_v33 = vpop.f32.mrf.mxu0 }
 0x16b   : > { %v1331_v27 = vpop.f32.mrf.mxu3  ;;  %v1465_v28 = vor.u32 %v1463_v21, %v1462_v20  ;;  %v1467_v30 = vrot.slane %v1462_v20, 4  ;;  %v1403_v31 = vmax.f32 %v1387_v22, 0.0  ;;  %v1283_v32 = vadd.f32 %v1282_v26, %v1234_v23  ;;  %v1236_v34 = vpop.f32.mrf.mxu1  ;;  %v1621_v22 = vld [vmem:[#allocation2 + $0x30] sm:$0xf] }
 0x16c   : > { %v1237_v41 = vadd.f32 %v1236_v34, %v1187_v33 }
 0x16d   : > { %v1466_v35 = vsel %vm8790_vm6, %v1458_v24, %v1465_v28  ;;  %v1612_v36 = vsel %vm8795_vm7, %v1467_v30, %v1611_v25  ;;  %v1419_v37 = vpack.c.bf16 %v1403_v31, %v1403_v31  ;;  %v1332_v38 = vadd.f32 %v1331_v27, %v1283_v32 }
 0x16e   : > { %1610 = vst [vmem:[#allocation2 + $0x1c] sm:$0xf] %v1466_v35 }
 0x16f   : > { %1613 = vst [vmem:[#allocation2 + $0x20] sm:$0x1] %v1612_v36  ;;  %v1469_v39 = vshrl.u32 %v1419_v37, 16  ;;  %v1368_v40 = vmul.f32 %v8775_v7, %v1332_v38  ;;  %v1472_v44 = vshll.u32 %v1419_v37, 16 }
 0x171   : > { %v1471_v42 = vrot.slane %v1469_v39, 7  ;;  %v1388_v45 = vadd.f32 %v8777_v11, %v1368_v40 }
 0x172   : > { %v1285_v47 = vpop.f32.mrf.mxu2  ;;  %v1189_v53 = vpop.f32.mrf.mxu0 }
 0x173   : > { %v1334_v48 = vpop.f32.mrf.mxu3  ;;  %v1474_v50 = vor.u32 %v1472_v44, %v1471_v42  ;;  %v1404_v51 = vmax.f32 %v1388_v45, 0.0  ;;  %v1286_v52 = vadd.f32 %v1285_v47, %v1237_v41  ;;  %v1238_v54 = vpop.f32.mrf.mxu1  ;;  %v1475_v0 = vrot.slane %v1471_v42, 4  ;;  %v1625_v41 = vld [vmem:[#allocation2 + $0x38] sm:$0x1] }
 0x174   : > { %v1239_v63 = vadd.f32 %v1238_v54, %v1189_v53 }
 0x175   : > { %v1615_v55 = vsel %vm8783_vm2, %v1474_v50, %v1614_v46  ;;  %v1420_v56 = vpack.c.bf16 %v1404_v51, %v1404_v51  ;;  %v1335_v57 = vadd.f32 %v1334_v48, %v1286_v52 }
 0x176   : > { %1616 = vst [vmem:[#allocation2 + $0x24] sm:$0xf] %v1615_v55 }
 0x177   : > { %v1477_v58 = vshrl.u32 %v1420_v56, 16  ;;  %v1369_v59 = vmul.f32 %v8775_v7, %v1335_v57  ;;  %v1480_v61 = vshll.u32 %v1420_v56, 16 }
 0x179   : > { %v1479_v60 = vrot.slane %v1477_v58, 7  ;;  %v1389_v62 = vadd.f32 %v8777_v11, %v1369_v59 }
 0x17a   : > { %v1287_v2 = vpop.f32.mrf.mxu2  ;;  %v1192_v9 = vpop.f32.mrf.mxu0 }
 0x17b   : > { %v1336_v3 = vpop.f32.mrf.mxu3  ;;  %v1482_v4 = vor.u32 %v1480_v61, %v1479_v60  ;;  %v1484_v5 = vrot.slane %v1479_v60, 4  ;;  %v1405_v6 = vmax.f32 %v1389_v62, 0.0  ;;  %v1288_v8 = vadd.f32 %v1287_v2, %v1239_v63  ;;  %v1241_v10 = vpop.f32.mrf.mxu1  ;;  %v1628_v62 = vld [vmem:[#allocation2 + $0x3c] sm:$0xf] }
 0x17c   : > { %v1242_v18 = vadd.f32 %v1241_v10, %v1192_v9 }
 0x17d   : > { %v1483_v12 = vsel %vm8790_vm6, %v1475_v0, %v1482_v4  ;;  %v1619_v13 = vsel %vm8795_vm7, %v1484_v5, %v1618_v1  ;;  %v1421_v14 = vpack.c.bf16 %v1405_v6, %v1405_v6  ;;  %v1337_v15 = vadd.f32 %v1336_v3, %v1288_v8 }
 0x17e   : > { %1617 = vst [vmem:[#allocation2 + $0x28] sm:$0xf] %v1483_v12 }
 0x17f   : > { %1620 = vst [vmem:[#allocation2 + $0x2c] sm:$0x1] %v1619_v13  ;;  %v1486_v16 = vshrl.u32 %v1421_v14, 16  ;;  %v1370_v17 = vmul.f32 %v8775_v7, %v1337_v15  ;;  %v1489_v20 = vshll.u32 %v1421_v14, 16 }
 0x181   : > { %v1488_v19 = vrot.slane %v1486_v16, 7  ;;  %v1390_v21 = vadd.f32 %v8777_v11, %v1370_v17 }
 0x182   : > { %v1290_v23 = vpop.f32.mrf.mxu2  ;;  %v1194_v28 = vpop.f32.mrf.mxu0 }
 0x183   : > { %v1339_v24 = vpop.f32.mrf.mxu3  ;;  %v1491_v25 = vor.u32 %v1489_v20, %v1488_v19  ;;  %v1406_v26 = vmax.f32 %v1390_v21, 0.0  ;;  %v1291_v27 = vadd.f32 %v1290_v23, %v1242_v18  ;;  %v1243_v30 = vpop.f32.mrf.mxu1  ;;  %v1492_v40 = vrot.slane %v1488_v19, 4  ;;  %v1632_v18 = vld [vmem:[#allocation2 + $0x44] sm:$0x1] }
 0x184   : > { %v1244_v39 = vadd.f32 %v1243_v30, %v1194_v28 }
 0x185   : > { %v1622_v31 = vsel %vm8783_vm2, %v1491_v25, %v1621_v22  ;;  %v1422_v32 = vpack.c.bf16 %v1406_v26, %v1406_v26  ;;  %v1340_v33 = vadd.f32 %v1339_v24, %v1291_v27 }
 0x186   : > { %1623 = vst [vmem:[#allocation2 + $0x30] sm:$0xf] %v1622_v31 }
 0x187   : > { %v1494_v34 = vshrl.u32 %v1422_v32, 16  ;;  %v1371_v35 = vmul.f32 %v8775_v7, %v1340_v33  ;;  %v1497_v37 = vshll.u32 %v1422_v32, 16 }
 0x189   : > { %v1496_v36 = vrot.slane %v1494_v34, 7  ;;  %v1391_v38 = vadd.f32 %v8777_v11, %v1371_v35 }
 0x18a   : > { %v1292_v42 = vpop.f32.mrf.mxu2  ;;  %v1197_v50 = vpop.f32.mrf.mxu0 }
 0x18b   : > { %v1341_v44 = vpop.f32.mrf.mxu3  ;;  %v1499_v45 = vor.u32 %v1497_v37, %v1496_v36  ;;  %v1501_v46 = vrot.slane %v1496_v36, 4  ;;  %v1407_v47 = vmax.f32 %v1391_v38, 0.0  ;;  %v1293_v48 = vadd.f32 %v1292_v42, %v1244_v39  ;;  %v1246_v51 = vpop.f32.mrf.mxu1  ;;  %v1635_v38 = vld [vmem:[#allocation2 + $0x48] sm:$0xf] }
 0x18c   : > { %v1247_v58 = vadd.f32 %v1246_v51, %v1197_v50 }
 0x18d   : > { %v1500_v52 = vsel %vm8790_vm6, %v1492_v40, %v1499_v45  ;;  %v1626_v53 = vsel %vm8795_vm7, %v1501_v46, %v1625_v41  ;;  %v1423_v54 = vpack.c.bf16 %v1407_v47, %v1407_v47  ;;  %v1342_v55 = vadd.f32 %v1341_v44, %v1293_v48 }
 0x18e   : > { %1624 = vst [vmem:[#allocation2 + $0x34] sm:$0xf] %v1500_v52 }
 0x18f   : > { %1627 = vst [vmem:[#allocation2 + $0x38] sm:$0x1] %v1626_v53  ;;  %v1503_v56 = vshrl.u32 %v1423_v54, 16  ;;  %v1372_v57 = vmul.f32 %v8775_v7, %v1342_v55  ;;  %v1506_v60 = vshll.u32 %v1423_v54, 16 }
 0x191   : > { %v1505_v59 = vrot.slane %v1503_v56, 7  ;;  %v1392_v61 = vadd.f32 %v8777_v11, %v1372_v57 }
 0x192   : > { %v1295_v63 = vpop.f32.mrf.mxu2  ;;  %v1199_v4 = vpop.f32.mrf.mxu0 }
 0x193   : > { %v1344_v0 = vpop.f32.mrf.mxu3  ;;  %v1508_v1 = vor.u32 %v1506_v60, %v1505_v59  ;;  %v1408_v2 = vmax.f32 %v1392_v61, 0.0  ;;  %v1296_v3 = vadd.f32 %v1295_v63, %v1247_v58  ;;  %v1248_v5 = vpop.f32.mrf.mxu1  ;;  %v1509_v17 = vrot.slane %v1505_v59, 4  ;;  %v1639_v58 = vld [vmem:[#allocation2 + $0x50] sm:$0x1] }
 0x194   : > { %v1249_v16 = vadd.f32 %v1248_v5, %v1199_v4 }
 0x195   : > { %v1629_v6 = vsel %vm8783_vm2, %v1508_v1, %v1628_v62  ;;  %v1424_v8 = vpack.c.bf16 %v1408_v2, %v1408_v2  ;;  %v1345_v9 = vadd.f32 %v1344_v0, %v1296_v3 }
 0x196   : > { %1630 = vst [vmem:[#allocation2 + $0x3c] sm:$0xf] %v1629_v6 }
 0x197   : > { %v1511_v10 = vshrl.u32 %v1424_v8, 16  ;;  %v1373_v12 = vmul.f32 %v8775_v7, %v1345_v9  ;;  %v1514_v14 = vshll.u32 %v1424_v8, 16 }
 0x199   : > { %v1513_v13 = vrot.slane %v1511_v10, 7  ;;  %v1393_v15 = vadd.f32 %v8777_v11, %v1373_v12 }
 0x19a   : > { %v1297_v19 = vpop.f32.mrf.mxu2  ;;  %v1202_v25 = vpop.f32.mrf.mxu0 }
 0x19b   : > { %v1346_v20 = vpop.f32.mrf.mxu3  ;;  %v1516_v21 = vor.u32 %v1514_v14, %v1513_v13  ;;  %v1518_v22 = vrot.slane %v1513_v13, 4  ;;  %v1409_v23 = vmax.f32 %v1393_v15, 0.0  ;;  %v1298_v24 = vadd.f32 %v1297_v19, %v1249_v16  ;;  %v1251_v26 = vpop.f32.mrf.mxu1  ;;  %v1642_v15 = vld [vmem:[#allocation2 + $0x54] sm:$0xf] }
 0x19c   : > { %v1252_v34 = vadd.f32 %v1251_v26, %v1202_v25 }
 0x19d   : > { %v1517_v27 = vsel %vm8790_vm6, %v1509_v17, %v1516_v21  ;;  %v1633_v28 = vsel %vm8795_vm7, %v1518_v22, %v1632_v18  ;;  %v1425_v30 = vpack.c.bf16 %v1409_v23, %v1409_v23  ;;  %v1347_v31 = vadd.f32 %v1346_v20, %v1298_v24 }
 0x19e   : > { %1631 = vst [vmem:[#allocation2 + $0x40] sm:$0xf] %v1517_v27 }
 0x19f   : > { %1634 = vst [vmem:[#allocation2 + $0x44] sm:$0x1] %v1633_v28  ;;  %v1520_v32 = vshrl.u32 %v1425_v30, 16  ;;  %v1374_v33 = vmul.f32 %v8775_v7, %v1347_v31  ;;  %v1523_v36 = vshll.u32 %v1425_v30, 16 }
 0x1a1   : > { %v1522_v35 = vrot.slane %v1520_v32, 7  ;;  %v1394_v37 = vadd.f32 %v8777_v11, %v1374_v33 }
 0x1a2   : > { %v1300_v39 = vpop.f32.mrf.mxu2  ;;  %v1204_v45 = vpop.f32.mrf.mxu0 }
 0x1a3   : > { %v1349_v40 = vpop.f32.mrf.mxu3  ;;  %v1525_v41 = vor.u32 %v1523_v36, %v1522_v35  ;;  %v1410_v42 = vmax.f32 %v1394_v37, 0.0  ;;  %v1301_v44 = vadd.f32 %v1300_v39, %v1252_v34  ;;  %v1253_v46 = vpop.f32.mrf.mxu1  ;;  %v1526_v57 = vrot.slane %v1522_v35, 4  ;;  %v1646_v34 = vld [vmem:[#allocation2 + $0x5c] sm:$0x1] }
 0x1a4   : > { %v1254_v56 = vadd.f32 %v1253_v46, %v1204_v45 }
 0x1a5   : > { %v1636_v47 = vsel %vm8783_vm2, %v1525_v41, %v1635_v38  ;;  %v1426_v48 = vpack.c.bf16 %v1410_v42, %v1410_v42  ;;  %v1350_v50 = vadd.f32 %v1349_v40, %v1301_v44 }
 0x1a6   : > { %1637 = vst [vmem:[#allocation2 + $0x48] sm:$0xf] %v1636_v47 }
 0x1a7   : > { %v1528_v51 = vshrl.u32 %v1426_v48, 16  ;;  %v1375_v52 = vmul.f32 %v8775_v7, %v1350_v50  ;;  %v1531_v54 = vshll.u32 %v1426_v48, 16 }
 0x1a9   : > { %v1530_v53 = vrot.slane %v1528_v51, 7  ;;  %v1395_v55 = vadd.f32 %v8777_v11, %v1375_v52  ;;  %v1649_v52 = vld [vmem:[#allocation2 + $0x60] sm:$0xf] }
 0x1aa   : > { %v1302_v59 = vpop.f32.mrf.mxu2  ;;  %v1207_v1 = vpop.f32.mrf.mxu0 }
 0x1ab   : > { %v1351_v60 = vpop.f32.mrf.mxu3  ;;  %v1533_v61 = vor.u32 %v1531_v54, %v1530_v53  ;;  %v1535_v62 = vrot.slane %v1530_v53, 4  ;;  %v1411_v63 = vmax.f32 %v1395_v55, 0.0  ;;  %v1303_v0 = vadd.f32 %v1302_v59, %v1254_v56  ;;  %v1256_v2 = vpop.f32.mrf.mxu1 }
 0x1ac   : > { %v1257_v10 = vadd.f32 %v1256_v2, %v1207_v1 }
 0x1ad   : > { %v1534_v3 = vsel %vm8790_vm6, %v1526_v57, %v1533_v61  ;;  %v1640_v4 = vsel %vm8795_vm7, %v1535_v62, %v1639_v58  ;;  %v1427_v5 = vpack.c.bf16 %v1411_v63, %v1411_v63  ;;  %v1352_v6 = vadd.f32 %v1351_v60, %v1303_v0  ;;  %v1653_v60 = vld [vmem:[#allocation2 + $0x68] sm:$0x1] }
 0x1ae   : > { %1638 = vst [vmem:[#allocation2 + $0x4c] sm:$0xf] %v1534_v3 }
 0x1af   : > { %1641 = vst [vmem:[#allocation2 + $0x50] sm:$0x1] %v1640_v4  ;;  %v1537_v8 = vshrl.u32 %v1427_v5, 16  ;;  %v1376_v9 = vmul.f32 %v8775_v7, %v1352_v6  ;;  %v1540_v13 = vshll.u32 %v1427_v5, 16 }
 0x1b1   : > { %v1539_v12 = vrot.slane %v1537_v8, 7  ;;  %v1396_v14 = vadd.f32 %v8777_v11, %v1376_v9 }
 0x1b2   : > { %v1305_v16 = vpop.f32.mrf.mxu2  ;;  %v1209_v24 = vpop.f32.mrf.mxu0 }
 0x1b3   : > { %v1354_v17 = vpop.f32.mrf.mxu3  ;;  %v1542_v18 = vor.u32 %v1540_v13, %v1539_v12  ;;  %v1412_v19 = vmax.f32 %v1396_v14, 0.0  ;;  %v1306_v20 = vadd.f32 %v1305_v16, %v1257_v10  ;;  %v1258_v25 = vpop.f32.mrf.mxu1  ;;  %v1543_v33 = vrot.slane %v1539_v12, 4 }
 0x1b4   : > { %v1259_v32 = vadd.f32 %v1258_v25, %v1209_v24 }
 0x1b5   : > { %v1643_v21 = vsel %vm8783_vm2, %v1542_v18, %v1642_v15  ;;  %v1428_v22 = vpack.c.bf16 %v1412_v19, %v1412_v19  ;;  %v1355_v23 = vadd.f32 %v1354_v17, %v1306_v20 }
 0x1b6   : > { %1644 = vst [vmem:[#allocation2 + $0x54] sm:$0xf] %v1643_v21 }
 0x1b7   : > { %v1545_v26 = vshrl.u32 %v1428_v22, 16  ;;  %v1377_v27 = vmul.f32 %v8775_v7, %v1355_v23  ;;  %v1548_v30 = vshll.u32 %v1428_v22, 16 }
 0x1b9   : > { %v1547_v28 = vrot.slane %v1545_v26, 7  ;;  %v1397_v31 = vadd.f32 %v8777_v11, %v1377_v27 }
 0x1ba   : > { %v1307_v35 = vpop.f32.mrf.mxu2 }
 0x1bb   : > { %v1550_v36 = vor.u32 %v1548_v30, %v1547_v28  ;;  %v1552_v37 = vrot.slane %v1547_v28, 4  ;;  %v1413_v38 = vmax.f32 %v1397_v31, 0.0  ;;  %v1308_v39 = vadd.f32 %v1307_v35, %v1259_v32  ;;  %v1356_v40 = vpop.f32.mrf.mxu3 }
 0x1bd   : > { %v1551_v41 = vsel %vm8790_vm6, %v1543_v33, %v1550_v36  ;;  %v1647_v42 = vsel %vm8795_vm7, %v1552_v37, %v1646_v34  ;;  %v1429_v44 = vpack.c.bf16 %v1413_v38, %v1413_v38  ;;  %v1357_v45 = vadd.f32 %v1356_v40, %v1308_v39 }
 0x1be   : > { %1645 = vst [vmem:[#allocation2 + $0x58] sm:$0xf] %v1551_v41 }
 0x1bf   : > { %1648 = vst [vmem:[#allocation2 + $0x5c] sm:$0x1] %v1647_v42  ;;  %v1554_v46 = vshrl.u32 %v1429_v44, 16  ;;  %v1378_v47 = vmul.f32 %v8775_v7, %v1357_v45  ;;  %v1557_v50 = vshll.u32 %v1429_v44, 16 }
 0x1c1   : > { %v1556_v48 = vrot.slane %v1554_v46, 7  ;;  %v1398_v51 = vadd.f32 %v8777_v11, %v1378_v47 }
 0x1c3   : > { %v1559_v53 = vor.u32 %v1557_v50, %v1556_v48  ;;  %v1414_v54 = vmax.f32 %v1398_v51, 0.0  ;;  %v1560_v61 = vrot.slane %v1556_v48, 4 }
 0x1c5   : > { %v1650_v55 = vsel %vm8783_vm2, %v1559_v53, %v1649_v52  ;;  %v1430_v56 = vpack.c.bf16 %v1414_v54, %v1414_v54 }
 0x1c6   : > { %1651 = vst [vmem:[#allocation2 + $0x60] sm:$0xf] %v1650_v55 }
 0x1c7   : > { %v1562_v57 = vshrl.u32 %v1430_v56, 16  ;;  %v1565_v59 = vshll.u32 %v1430_v56, 16 }
 0x1c9   : > { %v1564_v58 = vrot.slane %v1562_v57, 7 }
 0x1cb   : > { %v1567_v62 = vor.u32 %v1565_v59, %v1564_v58  ;;  %v1569_v7 = vrot.slane %v1564_v58, 4  ;;  %1659 = sbr.rel (%p6426_p1) target bundleno = 659 (0x293), region = 112 }
 0x1cd   : > { %v1568_v63 = vsel %vm8790_vm6, %v1560_v61, %v1567_v62  ;;  %v1654_v11 = vsel %vm8795_vm7, %v1569_v7, %v1653_v60 }
 0x1ce   : > { %1652 = vst [vmem:[#allocation2 + $0x64] sm:$0xf] %v1568_v63 }
 0x1cf   : > { %1655 = vst [vmem:[#allocation2 + $0x68] sm:$0x1] %v1654_v11 }
 0x1d0   : > { %v7341_v0 = vld [vmem:[#allocation9 + $0x38] sm:$0xff]  ;;  %v7340_v4 = vld [vmem:[#allocation9 + $0x30] sm:$0xff]  ;;  %v7339_v9 = vld [vmem:[#allocation9 + $0x28] sm:$0xff] }
 0x1d1   : > { %v7349_v1 = vld [vmem:[#allocation9 + $0x78] sm:$0xff]  ;;  %1940 = vmatpush.bf16.msra.mxu0 %v7341_v0  ;;  %v7348_v5 = vld [vmem:[#allocation9 + $0x70] sm:$0xff]  ;;  %v7347_v10 = vld [vmem:[#allocation9 + $0x68] sm:$0xff] }
 0x1d2   : > { %v7357_v2 = vld [vmem:[#allocation9 + $0xb8] sm:$0xff]  ;;  %1954 = vmatpush.bf16.msra.mxu1 %v7349_v1  ;;  %v7356_v6 = vld [vmem:[#allocation9 + $0xb0] sm:$0xff]  ;;  %v7355_v12 = vld [vmem:[#allocation9 + $0xa8] sm:$0xff] }
 0x1d3   : > { %v7365_v3 = vld [vmem:[#allocation9 + $0xf8] sm:$0xff]  ;;  %1968 = vmatpush.bf16.msra.mxu2 %v7357_v2  ;;  %v7364_v8 = vld [vmem:[#allocation9 + $0xf0] sm:$0xff]  ;;  %v7363_v13 = vld [vmem:[#allocation9 + $0xe8] sm:$0xff] }
 0x1d4   : > { %1982 = vmatpush.bf16.msra.mxu3 %v7365_v3  ;;  %v7338_v14 = vld [vmem:[#allocation9 + $0x20] sm:$0xff]  ;;  %v7337_v18 = vld [vmem:[#allocation9 + $0x18] sm:$0xff]  ;;  %v7336_v22 = vld [vmem:[#allocation9 + $0x10] sm:$0xff] }
 0x1d5   : > { %1941 = vmatpush.bf16.msra.mxu0 %v7340_v4  ;;  %v7346_v15 = vld [vmem:[#allocation9 + $0x60] sm:$0xff]  ;;  %v7345_v19 = vld [vmem:[#allocation9 + $0x58] sm:$0xff]  ;;  %v7344_v23 = vld [vmem:[#allocation9 + $0x50] sm:$0xff] }
 0x1d6   : > { %1955 = vmatpush.bf16.msra.mxu1 %v7348_v5  ;;  %v7354_v16 = vld [vmem:[#allocation9 + $0xa0] sm:$0xff]  ;;  %v7353_v20 = vld [vmem:[#allocation9 + $0x98] sm:$0xff]  ;;  %v7352_v24 = vld [vmem:[#allocation9 + $0x90] sm:$0xff] }
 0x1d7   : > { %1969 = vmatpush.bf16.msra.mxu2 %v7356_v6  ;;  %v7362_v17 = vld [vmem:[#allocation9 + $0xe0] sm:$0xff]  ;;  %v7361_v21 = vld [vmem:[#allocation9 + $0xd8] sm:$0xff]  ;;  %v7360_v25 = vld [vmem:[#allocation9 + $0xd0] sm:$0xff] }
 0x1d8   : > { %1983 = vmatpush.bf16.msra.mxu3 %v7364_v8  ;;  %v7335_v26 = vld [vmem:[#allocation9 + $0x8] sm:$0xff]  ;;  %v7334_v31 = vld [vmem:[#allocation9] sm:$0xff]  ;;  %v7332_v36 = vld [vmem:[%s8652_s15 + $0xc] sm:$0xf0] }
 0x1d9   : > { %1942 = vmatpush.bf16.msra.mxu0 %v7339_v9  ;;  %v7343_v27 = vld [vmem:[#allocation9 + $0x48] sm:$0xff]  ;;  %v7342_v32 = vld [vmem:[#allocation9 + $0x40] sm:$0xff]  ;;  %v6431_v38 = vld [vmem:[%s8652_s15 + $0x10] sm:$0xf0] }
 0x1da   : > { %1956 = vmatpush.bf16.msra.mxu1 %v7347_v10  ;;  %v7351_v28 = vld [vmem:[#allocation9 + $0x88] sm:$0xff]  ;;  %v7350_v33 = vld [vmem:[#allocation9 + $0x80] sm:$0xff]  ;;  %v7333_v40 = vld [vmem:[%s8652_s15 + $0x14] sm:$0xf0] }
 0x1db   : > { %1970 = vmatpush.bf16.msra.mxu2 %v7355_v12  ;;  %v7359_v30 = vld [vmem:[#allocation9 + $0xc8] sm:$0xff]  ;;  %v7358_v34 = vld [vmem:[#allocation9 + $0xc0] sm:$0xff]  ;;  %v6439_v42 = vld [vmem:[%s8652_s15 + $0x18] sm:$0xf0] }
 0x1dc   : > { %1984 = vmatpush.bf16.msra.mxu3 %v7363_v13  ;;  %v6429_v35 = vld [vmem:[%s8652_s15] sm:$0xf]  ;;  %v7330_v37 = vld [vmem:[%s8652_s15 + $0x4] sm:$0xf]  ;;  %v6437_v39 = vld [vmem:[%s8652_s15 + $0x8] sm:$0xf] }
 0x1dd   : > { %1943 = vmatpush.bf16.msra.mxu0 %v7338_v14  ;;  %v7331_v41 = vld [vmem:[%s8652_s15 + $0xc] sm:$0xf]  ;;  %v6430_v44 = vor.u32 %v7332_v36, %v6429_v35  ;;  %v6434_v45 = vor.u32 %v7330_v37, %v6431_v38  ;;  %v6438_v46 = vor.u32 %v7333_v40, %v6437_v39  ;;  %v7771_v55 = vld [vmem:[#allocation11] ss:$0 sm:$0xff]  ;;  %v7772_v57 = vld [vmem:[#allocation12] ss:$0 sm:$0xff] }
 0x1de   : > { %1957 = vmatpush.bf16.msra.mxu1 %v7346_v15  ;;  %v6442_v47 = vor.u32 %v7331_v41, %v6439_v42  ;;  %v2032_v9 = vld [vmem:[#allocation2] sm:$0xf] }
 0x1df   : > { %1971 = vmatpush.bf16.msra.mxu2 %v7354_v16 }
 0x1e0   : > { %1985 = vmatpush.bf16.msra.mxu3 %v7362_v17 }
 0x1e1   : > { %1944 = vmatpush.bf16.msra.mxu0 %v7337_v18  ;;  %v2036_v18 = vld [vmem:[#allocation2 + $0x8] sm:$0x1] }
 0x1e2   : > { %1958 = vmatpush.bf16.msra.mxu1 %v7345_v19 }
 0x1e3   : > { %1972 = vmatpush.bf16.msra.mxu2 %v7353_v20 }
 0x1e4   : > { %1986 = vmatpush.bf16.msra.mxu3 %v7361_v21 }
 0x1e5   : > { %1945 = vmatpush.bf16.msra.mxu0 %v7336_v22 }
 0x1e6   : > { %1959 = vmatpush.bf16.msra.mxu1 %v7344_v23 }
 0x1e7   : > { %1973 = vmatpush.bf16.msra.mxu2 %v7352_v24 }
 0x1e8   : > { %1987 = vmatpush.bf16.msra.mxu3 %v7360_v25 }
 0x1e9   : > { %1946 = vmatpush.bf16.msra.mxu0 %v7335_v26 }
 0x1ea   : > { %1960 = vmatpush.bf16.msra.mxu1 %v7343_v27 }
 0x1eb   : > { %1974 = vmatpush.bf16.msra.mxu2 %v7351_v28 }
 0x1ec   : > { %1988 = vmatpush.bf16.msra.mxu3 %v7359_v30 }
 0x1ed   : > { %1947 = vmatpush.bf16.msra.mxu0 %v7334_v31 }
 0x1ee   : > { %1961 = vmatpush.bf16.msra.mxu1 %v7342_v32 }
 0x1ef   : > { %1975 = vmatpush.bf16.msra.mxu2 %v7350_v33 }
 0x1f0   : > { %1989 = vmatpush.bf16.msra.mxu3 %v7358_v34  ;;  %1948 = vmatmul.bf16.vlgmr.msra.gmra.mxu0 %v6430_v44 }
 0x1f1   : > { %1962 = vmatmul.bf16.vlgmr.msra.gmra.mxu1 %v6434_v45 }
 0x1f2   : > { %1976 = vmatmul.bf16.vlgmr.msra.gmra.mxu2 %v6438_v46 }
 0x1f3   : > { %1990 = vmatmul.bf16.vlgmr.msra.gmra.mxu3 %v6442_v47 }
 0x26d   : > { %v1949_v48 = vpop.f32.mrf.mxu0 }
 0x26e   : > { %v1963_v50 = vpop.f32.mrf.mxu1 }
 0x26f   : > { %v1964_v51 = vadd.f32 %v1963_v50, %v1949_v48 }
 0x275   : > { %v1977_v52 = vpop.f32.mrf.mxu2  ;;  %v1951_v58 = vpop.f32.mrf.mxu0 }
 0x276   : > { %v1991_v53 = vpop.f32.mrf.mxu3  ;;  %v1978_v54 = vadd.f32 %v1977_v52, %v1964_v51  ;;  %v1965_v59 = vpop.f32.mrf.mxu1 }
 0x277   : > { %v1966_v62 = vadd.f32 %v1965_v59, %v1951_v58 }
 0x278   : > { %v1992_v56 = vadd.f32 %v1991_v53, %v1978_v54 }
 0x27a   : > { %v2000_v60 = vmul.f32 %v7771_v55, %v1992_v56 }
 0x27c   : > { %v2006_v61 = vadd.f32 %v7772_v57, %v2000_v60 }
 0x27d   : > { %v1979_v7 = vpop.f32.mrf.mxu2 }
 0x27e   : > { %v2008_v63 = vmax.f32 %v2006_v61, 0.0  ;;  %v1980_v11 = vadd.f32 %v1979_v7, %v1966_v62  ;;  %v1993_v0 = vpop.f32.mrf.mxu3 }
 0x280   : > { %v2010_v1 = vpack.c.bf16 %v2008_v63, %v2008_v63  ;;  %v1994_v2 = vadd.f32 %v1993_v0, %v1980_v11 }
 0x282   : > { %v2013_v3 = vshrl.u32 %v2010_v1, 16  ;;  %v2001_v4 = vmul.f32 %v7771_v55, %v1994_v2  ;;  %v2016_v6 = vshll.u32 %v2010_v1, 16 }
 0x284   : > { %v2015_v5 = vrot.slane %v2013_v3, 7  ;;  %v2007_v8 = vadd.f32 %v7772_v57, %v2001_v4 }
 0x286   : > { %v2018_v10 = vor.u32 %v2016_v6, %v2015_v5  ;;  %v2009_v12 = vmax.f32 %v2007_v8, 0.0  ;;  %v2019_v19 = vrot.slane %v2015_v5, 4 }
 0x288   : > { %v2033_v13 = vsel %vm8783_vm2, %v2018_v10, %v2032_v9  ;;  %v2011_v14 = vpack.c.bf16 %v2009_v12, %v2009_v12 }
 0x289   : > { %2034 = vst [vmem:[#allocation2] sm:$0xf] %v2033_v13 }
 0x28a   : > { %v2021_v15 = vshrl.u32 %v2011_v14, 16  ;;  %v2024_v17 = vshll.u32 %v2011_v14, 16 }
 0x28c   : > { %v2023_v16 = vrot.slane %v2021_v15, 7 }
 0x28e   : > { %v2026_v20 = vor.u32 %v2024_v17, %v2023_v16  ;;  %v2028_v21 = vrot.slane %v2023_v16, 4 }
 0x290   : > { %v2027_v22 = vsel %vm8790_vm6, %v2019_v19, %v2026_v20  ;;  %v2037_v23 = vsel %vm8795_vm7, %v2028_v21, %v2036_v18 }
 0x291   : > { %2035 = vst [vmem:[#allocation2 + $0x4] sm:$0xf] %v2027_v22 }
 0x292   : > { %2038 = vst [vmem:[#allocation2 + $0x8] sm:$0x1] %v2037_v23 }
 0x293 PF: > { %s9966_s23 = sld [smem:[#allocation34_spill]] }
 0x299   : > { %s2039_s18 = sadd.s32 1, %s9966_s23 }
 0x29a   : > { %p6571_p3 = scmp.ge.s32.totalorder %s2039_s18, 2 }
 0x29c   : > { %2043 = sbr.rel (%p6571_p3) target bundleno = 868 (0x364), region = 116 }
 0x2a1   : > { %v7377_v24 = vld [vmem:[#allocation9 + $0x38] sm:$0xff]  ;;  %v7376_v28 = vld [vmem:[#allocation9 + $0x30] sm:$0xff]  ;;  %v7375_v33 = vld [vmem:[#allocation9 + $0x28] sm:$0xff] }
 0x2a2   : > { %v7385_v25 = vld [vmem:[#allocation9 + $0x78] sm:$0xff]  ;;  %2324 = vmatpush.bf16.msra.mxu0 %v7377_v24  ;;  %v7384_v30 = vld [vmem:[#allocation9 + $0x70] sm:$0xff]  ;;  %v7383_v34 = vld [vmem:[#allocation9 + $0x68] sm:$0xff] }
 0x2a3   : > { %v7393_v26 = vld [vmem:[#allocation9 + $0xb8] sm:$0xff]  ;;  %2338 = vmatpush.bf16.msra.mxu1 %v7385_v25  ;;  %v7392_v31 = vld [vmem:[#allocation9 + $0xb0] sm:$0xff]  ;;  %v7391_v35 = vld [vmem:[#allocation9 + $0xa8] sm:$0xff] }
 0x2a4   : > { %v7401_v27 = vld [vmem:[#allocation9 + $0xf8] sm:$0xff]  ;;  %2352 = vmatpush.bf16.msra.mxu2 %v7393_v26  ;;  %v7400_v32 = vld [vmem:[#allocation9 + $0xf0] sm:$0xff]  ;;  %v7399_v36 = vld [vmem:[#allocation9 + $0xe8] sm:$0xff] }
 0x2a5   : > { %2366 = vmatpush.bf16.msra.mxu3 %v7401_v27  ;;  %v7374_v37 = vld [vmem:[#allocation9 + $0x20] sm:$0xff]  ;;  %v7373_v41 = vld [vmem:[#allocation9 + $0x18] sm:$0xff]  ;;  %v7372_v46 = vld [vmem:[#allocation9 + $0x10] sm:$0xff] }
 0x2a6   : > { %2325 = vmatpush.bf16.msra.mxu0 %v7376_v28  ;;  %v7382_v38 = vld [vmem:[#allocation9 + $0x60] sm:$0xff]  ;;  %v7381_v42 = vld [vmem:[#allocation9 + $0x58] sm:$0xff]  ;;  %v7380_v47 = vld [vmem:[#allocation9 + $0x50] sm:$0xff] }
 0x2a7   : > { %2339 = vmatpush.bf16.msra.mxu1 %v7384_v30  ;;  %v7390_v39 = vld [vmem:[#allocation9 + $0xa0] sm:$0xff]  ;;  %v7389_v44 = vld [vmem:[#allocation9 + $0x98] sm:$0xff]  ;;  %v7388_v48 = vld [vmem:[#allocation9 + $0x90] sm:$0xff] }
 0x2a8   : > { %2353 = vmatpush.bf16.msra.mxu2 %v7392_v31  ;;  %v7398_v40 = vld [vmem:[#allocation9 + $0xe0] sm:$0xff]  ;;  %v7397_v45 = vld [vmem:[#allocation9 + $0xd8] sm:$0xff]  ;;  %v7396_v50 = vld [vmem:[#allocation9 + $0xd0] sm:$0xff] }
 0x2a9   : > { %2367 = vmatpush.bf16.msra.mxu3 %v7400_v32  ;;  %v7371_v51 = vld [vmem:[#allocation9 + $0x8] sm:$0xff]  ;;  %v7370_v55 = vld [vmem:[#allocation9] sm:$0xff]  ;;  %v7368_v60 = vld [vmem:[%s8659_s10 + $0xc] sm:$0xf0] }
 0x2aa   : > { %2326 = vmatpush.bf16.msra.mxu0 %v7375_v33  ;;  %v7379_v52 = vld [vmem:[#allocation9 + $0x48] sm:$0xff]  ;;  %v7378_v56 = vld [vmem:[#allocation9 + $0x40] sm:$0xff]  ;;  %v6576_v62 = vld [vmem:[%s8659_s10 + $0x10] sm:$0xf0] }
 0x2ab   : > { %2340 = vmatpush.bf16.msra.mxu1 %v7383_v34  ;;  %v7387_v53 = vld [vmem:[#allocation9 + $0x88] sm:$0xff]  ;;  %v7386_v57 = vld [vmem:[#allocation9 + $0x80] sm:$0xff]  ;;  %v7369_v63 = vld [vmem:[%s8659_s10 + $0x14] sm:$0xf0] }
 0x2ac   : > { %2354 = vmatpush.bf16.msra.mxu2 %v7391_v35  ;;  %v7395_v54 = vld [vmem:[#allocation9 + $0xc8] sm:$0xff]  ;;  %v7394_v58 = vld [vmem:[#allocation9 + $0xc0] sm:$0xff]  ;;  %v6584_v0 = vld [vmem:[%s8659_s10 + $0x18] sm:$0xf0] }
 0x2ad   : > { %2368 = vmatpush.bf16.msra.mxu3 %v7399_v36  ;;  %v6574_v59 = vld [vmem:[%s8659_s10] sm:$0xf]  ;;  %v7366_v61 = vld [vmem:[%s8659_s10 + $0x4] sm:$0xf]  ;;  %v6582_v7 = vld [vmem:[%s8659_s10 + $0x8] sm:$0xf] }
 0x2ae   : > { %2327 = vmatpush.bf16.msra.mxu0 %v7374_v37  ;;  %v7367_v11 = vld [vmem:[%s8659_s10 + $0xc] sm:$0xf]  ;;  %v6575_v1 = vor.u32 %v7368_v60, %v6574_v59  ;;  %v6579_v2 = vor.u32 %v7366_v61, %v6576_v62  ;;  %v6583_v3 = vor.u32 %v7369_v63, %v6582_v7  ;;  %v7773_v13 = vld [vmem:[#allocation11] ss:$0 sm:$0xff]  ;;  %v7774_v15 = vld [vmem:[#allocation12] ss:$0 sm:$0xff] }
 0x2af   : > { %2341 = vmatpush.bf16.msra.mxu1 %v7382_v38  ;;  %v6587_v4 = vor.u32 %v7367_v11, %v6584_v0  ;;  %v2417_v33 = vld [vmem:[#allocation2 + $0x6c] sm:$0xf] }
 0x2b0   : > { %2355 = vmatpush.bf16.msra.mxu2 %v7390_v39 }
 0x2b1   : > { %2369 = vmatpush.bf16.msra.mxu3 %v7398_v40 }
 0x2b2   : > { %2328 = vmatpush.bf16.msra.mxu0 %v7373_v41  ;;  %v2421_v41 = vld [vmem:[#allocation2 + $0x74] sm:$0x1] }
 0x2b3   : > { %2342 = vmatpush.bf16.msra.mxu1 %v7381_v42 }
 0x2b4   : > { %2356 = vmatpush.bf16.msra.mxu2 %v7389_v44 }
 0x2b5   : > { %2370 = vmatpush.bf16.msra.mxu3 %v7397_v45 }
 0x2b6   : > { %2329 = vmatpush.bf16.msra.mxu0 %v7372_v46 }
 0x2b7   : > { %2343 = vmatpush.bf16.msra.mxu1 %v7380_v47 }
 0x2b8   : > { %2357 = vmatpush.bf16.msra.mxu2 %v7388_v48 }
 0x2b9   : > { %2371 = vmatpush.bf16.msra.mxu3 %v7396_v50 }
 0x2ba   : > { %2330 = vmatpush.bf16.msra.mxu0 %v7371_v51 }
 0x2bb   : > { %2344 = vmatpush.bf16.msra.mxu1 %v7379_v52 }
 0x2bc   : > { %2358 = vmatpush.bf16.msra.mxu2 %v7387_v53 }
 0x2bd   : > { %2372 = vmatpush.bf16.msra.mxu3 %v7395_v54 }
 0x2be   : > { %2331 = vmatpush.bf16.msra.mxu0 %v7370_v55 }
 0x2bf   : > { %2345 = vmatpush.bf16.msra.mxu1 %v7378_v56 }
 0x2c0   : > { %2359 = vmatpush.bf16.msra.mxu2 %v7386_v57 }
 0x2c1   : > { %2373 = vmatpush.bf16.msra.mxu3 %v7394_v58  ;;  %2332 = vmatmul.bf16.vlgmr.msra.gmra.mxu0 %v6575_v1 }
 0x2c2   : > { %2346 = vmatmul.bf16.vlgmr.msra.gmra.mxu1 %v6579_v2 }
 0x2c3   : > { %2360 = vmatmul.bf16.vlgmr.msra.gmra.mxu2 %v6583_v3 }
 0x2c4   : > { %2374 = vmatmul.bf16.vlgmr.msra.gmra.mxu3 %v6587_v4 }
 0x33e   : > { %v2333_v5 = vpop.f32.mrf.mxu0 }
 0x33f   : > { %v2347_v6 = vpop.f32.mrf.mxu1 }
 0x340   : > { %v2348_v8 = vadd.f32 %v2347_v6, %v2333_v5 }
 0x346   : > { %v2361_v9 = vpop.f32.mrf.mxu2  ;;  %v2335_v16 = vpop.f32.mrf.mxu0 }
 0x347   : > { %v2375_v10 = vpop.f32.mrf.mxu3  ;;  %v2362_v12 = vadd.f32 %v2361_v9, %v2348_v8  ;;  %v2349_v17 = vpop.f32.mrf.mxu1 }
 0x348   : > { %v2350_v20 = vadd.f32 %v2349_v17, %v2335_v16 }
 0x349   : > { %v2376_v14 = vadd.f32 %v2375_v10, %v2362_v12 }
 0x34b   : > { %v2384_v18 = vmul.f32 %v7773_v13, %v2376_v14 }
 0x34d   : > { %v2390_v19 = vadd.f32 %v7774_v15, %v2384_v18 }
 0x34e   : > { %v2363_v21 = vpop.f32.mrf.mxu2 }
 0x34f   : > { %v2392_v22 = vmax.f32 %v2390_v19, 0.0  ;;  %v2364_v23 = vadd.f32 %v2363_v21, %v2350_v20  ;;  %v2377_v24 = vpop.f32.mrf.mxu3 }
 0x351   : > { %v2394_v25 = vpack.c.bf16 %v2392_v22, %v2392_v22  ;;  %v2378_v26 = vadd.f32 %v2377_v24, %v2364_v23 }
 0x353   : > { %v2397_v27 = vshrl.u32 %v2394_v25, 16  ;;  %v2385_v28 = vmul.f32 %v7773_v13, %v2378_v26  ;;  %v2400_v31 = vshll.u32 %v2394_v25, 16 }
 0x355   : > { %v2399_v30 = vrot.slane %v2397_v27, 7  ;;  %v2391_v32 = vadd.f32 %v7774_v15, %v2385_v28 }
 0x357   : > { %v2402_v34 = vor.u32 %v2400_v31, %v2399_v30  ;;  %v2393_v35 = vmax.f32 %v2391_v32, 0.0  ;;  %v2403_v42 = vrot.slane %v2399_v30, 4 }
 0x359   : > { %v2418_v36 = vsel %vm8783_vm2, %v2402_v34, %v2417_v33  ;;  %v2395_v37 = vpack.c.bf16 %v2393_v35, %v2393_v35 }
 0x35a   : > { %2419 = vst [vmem:[#allocation2 + $0x6c] sm:$0xf] %v2418_v36 }
 0x35b   : > { %v2405_v38 = vshrl.u32 %v2395_v37, 16  ;;  %v2408_v40 = vshll.u32 %v2395_v37, 16 }
 0x35d   : > { %v2407_v39 = vrot.slane %v2405_v38, 7 }
 0x35f   : > { %v2410_v44 = vor.u32 %v2408_v40, %v2407_v39  ;;  %v2412_v45 = vrot.slane %v2407_v39, 4 }
 0x361   : > { %v2411_v46 = vsel %vm8790_vm6, %v2403_v42, %v2410_v44  ;;  %v2422_v47 = vsel %vm8795_vm7, %v2412_v45, %v2421_v41 }
 0x362   : > { %2420 = vst [vmem:[#allocation2 + $0x70] sm:$0xf] %v2411_v46 }
 0x363   : > { %2423 = vst [vmem:[#allocation2 + $0x74] sm:$0x1] %v2422_v47 }
 0x364 PF: > { %v7425_v29 = vld [vmem:[#allocation14 + $0x78] sm:$0xff]  ;;  %v7424_v48 = vld [vmem:[#allocation14 + $0x70] sm:$0xff]  ;;  %vm2464_vm8 = vsmask.f32 3328  ;;  %v8905_v51 = vld [vmem:[#allocation2 + $0x1c] sm:$0xf] }
 0x365   : > { %7531 = vmatpush.bf16.msra.mxu1 %v7425_v29  ;;  %7532 = vmatpush.bf16.msra.mxu2 %v7425_v29  ;;  %v2428_v50 = vld [vmem:[#allocation2 + $0x18] sm:$0xf]  ;;  %v8907_v52 = vld [vmem:[#allocation2 + $0x20] sm:$0x1]  ;;  %v7423_v54 = vld [vmem:[#allocation14 + $0x68] sm:$0xff]  ;;  %v2525_v49 = vshll.u32 %v8905_v51, 16 }
 0x366   : > { %7533 = vmatpush.bf16.msra.mxu3 %v7425_v29  ;;  %2756 = vmatpush.bf16.msra.mxu0 %v7425_v29  ;;  %v2516_v43 = vshrl.u32 %v2428_v50, 16  ;;  %v2519_v53 = vshll.u32 %v2428_v50, 16  ;;  %vm2465_vm9 = vsmask.f32 7440  ;;  %v2529_v55 = vshrl.u32 %v8905_v51, 16  ;;  %v7422_v15 = vld [vmem:[#allocation14 + $0x60] sm:$0xff] }
 0x367   : > { %v2432_v56 = vld [vmem:[#allocation2 + $0x30] sm:$0xf]  ;;  %v8911_v59 = vld [vmem:[#allocation2 + $0x34] sm:$0xf]  ;;  %v8913_v60 = vld [vmem:[#allocation2 + $0x38] sm:$0x1] }
 0x368   : > { %v2518_v57 = vrot.slane %v2516_v43, 4  ;;  %v2521_v58 = vrot.slane %v2519_v53, 5  ;;  %v2527_v61 = vrot.slane %v2525_v49, 5  ;;  %v2531_v62 = vrot.slane %v2529_v55, 4  ;;  %v2436_v11 = vld [vmem:[#allocation2 + $0x48] sm:$0xf]  ;;  %vm8921_vm10 = vmor %vm2464_vm8, %vm2465_vm9 }
 0x369   : > { %7534 = vmatpush.bf16.msra.mxu1 %v7424_v48  ;;  %7535 = vmatpush.bf16.msra.mxu2 %v7424_v48  ;;  %v2535_v7 = vshll.u32 %v8907_v52, 16  ;;  %v2564_v63 = vshrl.u32 %v2432_v56, 16  ;;  %v2567_v1 = vshll.u32 %v2432_v56, 16  ;;  %v2573_v2 = vshll.u32 %v8911_v59, 16  ;;  %v2437_v8 = vld [vmem:[#allocation2 + $0x4c] sm:$0xf] }
 0x36a   : > { %7536 = vmatpush.bf16.msra.mxu3 %v7424_v48  ;;  %2757 = vmatpush.bf16.msra.mxu0 %v7424_v48  ;;  %v2522_v0 = vor.u32 %v2521_v58, %v2518_v57  ;;  %v2577_v3 = vshrl.u32 %v8911_v59, 16  ;;  %v2532_v4 = vor.u32 %v2531_v62, %v2527_v61  ;;  %v2583_v6 = vshll.u32 %v8913_v60, 16  ;;  %v2462_v23 = vld [vmem:[#allocation2 + $0x50] sm:$0x1]  ;;  %v2424_v25 = vld [vmem:[#allocation2] sm:$0xf] }
 0x36b   : > { %v2566_v5 = vrot.slane %v2564_v63, 4  ;;  %v2612_v9 = vshrl.u32 %v2436_v11, 16  ;;  %v2569_v12 = vrot.slane %v2567_v1, 5  ;;  %v2575_v13 = vrot.slane %v2573_v2, 5  ;;  %v7421_v34 = vld [vmem:[#allocation14 + $0x58] sm:$0xff]  ;;  %s9971_s1 = sld [smem:[#allocation56_spill]] }
 0x36c   : > { %v2523_v10 = vrot.slane %v2522_v0, 4  ;;  %v2579_v14 = vrot.slane %v2577_v3, 4  ;;  %v2537_v17 = vrot.slane %v2535_v7, 5  ;;  %v2615_v19 = vshll.u32 %v2436_v11, 16  ;;  %v8929_v38 = vld [vmem:[#allocation2 + $0x4] sm:$0xf] }
 0x36d   : > { %7537 = vmatpush.bf16.msra.mxu1 %v7423_v54  ;;  %7538 = vmatpush.bf16.msra.mxu2 %v7423_v54  ;;  %v2614_v18 = vrot.slane %v2612_v9, 4  ;;  %v2533_v20 = vrot.slane %v2532_v4, 4  ;;  %v2570_v21 = vor.u32 %v2569_v12, %v2566_v5  ;;  %v2621_v24 = vshll.u32 %v2437_v8, 16  ;;  %v8937_v47 = vld [vmem:[#allocation2 + $0x8] sm:$0x1]  ;;  %s9972_s19 = sld [smem:[#allocation57_spill]] }
 0x36e   : > { %7539 = vmatpush.bf16.msra.mxu3 %v7423_v54  ;;  %2758 = vmatpush.bf16.msra.mxu0 %v7423_v54  ;;  %v2580_v22 = vor.u32 %v2579_v14, %v2575_v13  ;;  %v8925_v26 = vrot.slane %v2583_v6, 5  ;;  %v2617_v27 = vrot.slane %v2615_v19, 5  ;;  %v2625_v28 = vshrl.u32 %v2437_v8, 16  ;;  %v2430_v53 = vld [vmem:[#allocation2 + $0x24] sm:$0xf]  ;;  %v7420_v54 = vld [vmem:[#allocation14 + $0x50] sm:$0xff] }
 0x36f   : > { %v2528_v30 = vsel %vm8921_vm10, %v2523_v10, %v2527_v61  ;;  %v2571_v31 = vrot.slane %v2570_v21, 4  ;;  %v2623_v33 = vrot.slane %v2621_v24, 5  ;;  %v2631_v37 = vshll.u32 %v2462_v23, 16  ;;  %v8946_v58 = vld [vmem:[#allocation2 + $0x28] sm:$0xf]  ;;  %s9973_s23 = sld [smem:[#allocation34_spill]] }
 0x370   : > { %v2581_v32 = vrot.slane %v2580_v22, 4  ;;  %v2618_v35 = vor.u32 %v2617_v27, %v2614_v18  ;;  %v2627_v36 = vrot.slane %v2625_v28, 4  ;;  %v2468_v39 = vshrl.u32 %v2424_v25, 16  ;;  %v8953_v1 = vld [vmem:[#allocation2 + $0x2c] sm:$0x1]  ;;  %v7419_v10 = vld [vmem:[#allocation14 + $0x48] sm:$0xff] }
 0x371   : > { %7540 = vmatpush.bf16.msra.mxu1 %v7422_v15  ;;  %7541 = vmatpush.bf16.msra.mxu2 %v7422_v15  ;;  %v2538_v40 = vsel %vm8921_vm10, %v2533_v20, %v2537_v17  ;;  %v2471_v41 = vshll.u32 %v2424_v25, 16  ;;  %v8933_v42 = vunpack.c.l.b16 %v2528_v30  ;;  %v2576_v44 = vsel %vm8921_vm10, %v2571_v31, %v2575_v13  ;;  %v2434_v9 = vld [vmem:[#allocation2 + $0x3c] sm:$0xf]  ;;  %v8959_v17 = vld [vmem:[#allocation2 + $0x40] sm:$0xf]  ;;  %s9974_s18 = sld [smem:[#allocation35_spill]] }
 0x372   : > { %7542 = vmatpush.bf16.msra.mxu3 %v7422_v15  ;;  %2759 = vmatpush.bf16.msra.mxu0 %v7422_v15  ;;  %v2619_v45 = vrot.slane %v2618_v35, 4  ;;  %v2628_v46 = vor.u32 %v2627_v36, %v2623_v33  ;;  %v2633_v29 = vrot.slane %v2631_v37, 5  ;;  %v2470_v48 = vrot.slane %v2468_v39, 4  ;;  %v7418_v31 = vld [vmem:[#allocation14 + $0x40] sm:$0xff]  ;;  %v2438_v36 = vld [vmem:[#allocation2 + $0x54] sm:$0xf] }
 0x373   : > { %v2473_v50 = vrot.slane %v2471_v41, 5  ;;  %v2477_v43 = vshll.u32 %v8929_v38, 16  ;;  %v8940_v49 = vunpack.c.l.b16 %v2538_v40  ;;  %v2586_v55 = vsel %vm8921_vm10, %v2581_v32, %v8925_v26  ;;  %v8975_v39 = vld [vmem:[#allocation2 + $0x44] sm:$0x1]  ;;  %s5916_s11 = sshll.u32 %s8873_s17, 4  ;;  %s5901_s5 = scalar_lea.sflag [#allocation5], %s8638_s24  ;;  %s5917_s11 = int_to_ptr.vmem [resolvable:$true] %s5916_s11 }
 0x374   : > { %v2629_v56 = vrot.slane %v2628_v46, 4  ;;  %v2481_v57 = vshrl.u32 %v8929_v38, 16  ;;  %v8948_v61 = vunpack.c.l.b16 %v2576_v44  ;;  %v2487_v63 = vshll.u32 %v8937_v47, 16 }
 0x375   : > { %7543 = vmatpush.bf16.msra.mxu1 %v7421_v34  ;;  %7544 = vmatpush.bf16.msra.mxu2 %v7421_v34  ;;  %v2474_v62 = vor.u32 %v2473_v50, %v2470_v48  ;;  %v2479_v7 = vrot.slane %v2477_v43, 5  ;;  %v2624_v11 = vsel %vm8921_vm10, %v2619_v45, %v2623_v33  ;;  %v2540_v2 = vshrl.u32 %v2430_v53, 16  ;;  %v7417_v48 = vld [vmem:[#allocation14 + $0x38] sm:$0xff]  ;;  %s7530_s22 = sshll.u32 %s9973_s23, 6 }
 0x376   : > { %7545 = vmatpush.bf16.msra.mxu3 %v7421_v34  ;;  %2760 = vmatpush.bf16.msra.mxu0 %v7421_v34  ;;  %v2483_v0 = vrot.slane %v2481_v57, 4  ;;  %v2543_v3 = vshll.u32 %v2430_v53, 16  ;;  %v2634_v4 = vsel %vm8921_vm10, %v2629_v56, %v2633_v29  ;;  %v2489_v6 = vrot.slane %v2487_v63, 5  ;;  %v7433_v29 = vld [vmem:[#allocation14 + $0xb8] sm:$0xff] }
 0x377   : > { %v2475_v5 = vrot.slane %v2474_v62, 4  ;;  %v2549_v8 = vshll.u32 %v8946_v58, 16  ;;  %v2542_v13 = vrot.slane %v2540_v2, 4  ;;  %v2553_v15 = vshrl.u32 %v8946_v58, 16  ;;  %v8983_v43 = vld [vmem:[#allocation2 + $0x58] sm:$0xf] }
 0x378   : > { %v2484_v12 = vor.u32 %v2483_v0, %v2479_v7  ;;  %v2545_v14 = vrot.slane %v2543_v3, 5  ;;  %v8961_v18 = vunpack.c.l.b16 %v2586_v55  ;;  %v8963_v19 = vunpack.c.l.b16 %v2624_v11  ;;  %v7457_v55 = vld [vmem:[#allocation14 + $0x138] sm:$0xff]  ;;  %v8988_v62 = vld [vmem:[#allocation2 + $0x5c] sm:$0x1]  ;;  %v2426_v11 = vld [vmem:[#allocation2 + $0xc] sm:$0xf] }
 0x379   : > { %7546 = vmatpush.bf16.msra.mxu1 %v7420_v54  ;;  %7547 = vmatpush.bf16.msra.mxu2 %v7420_v54  ;;  %v2480_v20 = vsel %vm8921_vm10, %v2475_v5, %v2479_v7  ;;  %v8967_v21 = vrot.slane %v2549_v8, 5  ;;  %v2689_v22 = vunpack.c.l.b16 %v2634_v4  ;;  %v2555_v24 = vrot.slane %v2553_v15, 4  ;;  %v7432_v0 = vld [vmem:[#allocation14 + $0xb0] sm:$0xff]  ;;  %s7255_s3 = sshll.u32 %s9974_s18, 7  ;;  %s9975_s18 = sld [smem:[#allocation58_spill]] }
 0x37a   : > { %7548 = vmatpush.bf16.msra.mxu3 %v7420_v54  ;;  %2761 = vmatpush.bf16.msra.mxu0 %v7420_v54  ;;  %v2485_v23 = vrot.slane %v2484_v12, 4  ;;  %v2559_v25 = vshll.u32 %v8953_v1, 16  ;;  %v2676_v26 = vunpack.c.l.b16 %v2480_v20  ;;  %v2588_v27 = vshrl.u32 %v2434_v9, 16  ;;  %v7449_v54 = vld [vmem:[#allocation14 + $0xf8] sm:$0xff]  ;;  %v7416_v2 = vld [vmem:[#allocation14 + $0x30] sm:$0xff]  ;;  %s5913_s7 = sadd.s32 %s7530_s22, %s7255_s3 }
 0x37b   : > { %v2591_v28 = vshll.u32 %v2434_v9, 16  ;;  %v2597_v30 = vshll.u32 %v8959_v17, 16  ;;  %v2546_v33 = vor.u32 %v2545_v14, %v2542_v13  ;;  %v2556_v34 = vor.u32 %v2555_v24, %v8967_v21  ;;  %v8995_v13 = vld [vmem:[#allocation2 + $0x10] sm:$0xf]  ;;  %s7256_s20 = sshll.u32 %s5913_s7, 2 }
 0x37c   : > { %v2490_v32 = vsel %vm8921_vm10, %v2485_v23, %v2489_v6  ;;  %v2601_v35 = vshrl.u32 %v8959_v17, 16  ;;  %v2590_v40 = vrot.slane %v2588_v27, 4  ;;  %v2694_v45 = vpack.c.b16 %v8940_v49, %v8933_v42  ;;  %v8997_v23 = vld [vmem:[#allocation2 + $0x14] sm:$0x1]  ;;  %v7448_v24 = vld [vmem:[#allocation14 + $0xf0] sm:$0xff] }
 0x37d   : > { %7549 = vmatpush.bf16.msra.mxu1 %v7419_v10  ;;  %7550 = vmatpush.bf16.msra.mxu2 %v7419_v10  ;;  %v2677_v37 = vunpack.c.l.b16 %v2490_v32  ;;  %v2593_v41 = vrot.slane %v2591_v28, 5  ;;  %v8977_v44 = vrot.slane %v2597_v30, 5  ;;  %v2696_v46 = vpack.c.b16 %v8961_v18, %v8948_v61  ;;  %v7415_v32 = vld [vmem:[#allocation14 + $0x28] sm:$0xff] }
 0x37e   : > { %7551 = vmatpush.bf16.msra.mxu3 %v7419_v10  ;;  %2762 = vmatpush.bf16.msra.mxu0 %v7419_v10  ;;  %v2603_v50 = vrot.slane %v2601_v35, 4  ;;  %v2698_v53 = vpack.c.b16 %v2689_v22, %v8963_v19  ;;  %v8986_v56 = vrot.slane %v2559_v25, 5  ;;  %v2636_v7 = vshrl.u32 %v2438_v36, 16  ;;  %v7456_v25 = vld [vmem:[#allocation14 + $0x130] sm:$0xff] }
 0x37f   : > { %v2594_v57 = vor.u32 %v2593_v41, %v2590_v40  ;;  %v2692_v42 = vpack.c.b16 %v2677_v37, %v2676_v26  ;;  %v2607_v61 = vshll.u32 %v8975_v39, 16  ;;  %v2639_v63 = vshll.u32 %v2438_v36, 16  ;;  %v7431_v26 = vld [vmem:[#allocation14 + $0xa8] sm:$0xff]  ;;  %s5915_s22 = scalar_lea.hbm %s9975_s18, %s7256_s20  ;;  %s8120_s15 = scalar_lea.hbm %s9975_s18, 1024 }
 0x380   : > { %v2604_v49 = vor.u32 %v2603_v50, %v8977_v44  ;;  %v2547_v3 = vrot.slane %v2546_v33, 4  ;;  %v2557_v4 = vrot.slane %v2556_v34, 4  ;;  %v2638_v5 = vrot.slane %v2636_v7, 4  ;;  %v7414_v7 = vld [vmem:[#allocation14 + $0x20] sm:$0xff]  ;;  %s5918_s4 = sshll.u32 %s5915_s22, 4  ;;  %s5919_s4 = int_to_ptr.hbm [resolvable:$true] %s5918_s4 }
 0x381   : > { %7552 = vmatpush.bf16.msra.mxu1 %v7418_v31  ;;  %7553 = vmatpush.bf16.msra.mxu2 %v7418_v31  ;;  %v2645_v6 = vshll.u32 %v8983_v43, 16  ;;  %v2595_v8 = vrot.slane %v2594_v57, 4  ;;  %v2641_v9 = vrot.slane %v2639_v63, 5  ;;  %v2649_v10 = vshrl.u32 %v8983_v43, 16  ;;  %s8114_s7 = sshra.s32 %s5919_s4, 4  ;;  %s8115_s7 = int_to_ptr.hbm [resolvable:$true] %s8114_s7 }
 0x382   : > { %7554 = vmatpush.bf16.msra.mxu3 %v7418_v31  ;;  %2763 = vmatpush.bf16.msra.mxu0 %v7418_v31  ;;  %v2655_v12 = vshll.u32 %v8988_v62, 16  ;;  %v2492_v15 = vshrl.u32 %v2426_v11, 16  ;;  %v2605_v18 = vrot.slane %v2604_v49, 4  ;;  %v2609_v19 = vrot.slane %v2607_v61, 5  ;;  %s8116_s8 = scalar_lea.hbm %s8115_s7, 256  ;;  %p8121_p0 = scmp.lt.s32.totalorder %s8115_s7, %s9975_s18 }
 0x383   : > { %v2647_v14 = vrot.slane %v2645_v6, 5  ;;  %v2642_v20 = vor.u32 %v2641_v9, %v2638_v5  ;;  %v2651_v22 = vrot.slane %v2649_v10, 4  ;;  %v2552_v27 = vsel %vm8921_vm10, %v2547_v3, %v8967_v21  ;;  %v7446_v10 = vld [vmem:[#allocation14 + $0xe0] sm:$0xff]  ;;  %p8117_p2 = scmp.ne.s32.totalorder %s8115_s7, %s8116_s8  ;;  %p8122_p4 = scmp.lt.s32.totalorder %s8120_s15, %s8116_s8 }
 0x384   : > { %2774 = vmatmul.bf16.vlgmr.msra.gmra.mxu1 %v2694_v45  ;;  %2784 = vmatmul.bf16.vlgmr.msra.gmra.mxu2 %v2696_v46  ;;  %v2657_v28 = vrot.slane %v2655_v12, 5  ;;  %v2494_v30 = vrot.slane %v2492_v15, 4  ;;  %v2495_v31 = vshll.u32 %v2426_v11, 16  ;;  %v2501_v35 = vshll.u32 %v8995_v13, 16  ;;  %v7447_v45 = vld [vmem:[#allocation14 + $0xe8] sm:$0xff]  ;;  %v7454_v12 = vld [vmem:[#allocation14 + $0x120] sm:$0xff] }
 0x385   : > { %3130 = vmatpush.bf16.msrb.mxu2 %v7433_v29  ;;  %2901 = vmatpush.bf16.msrb.mxu1 %v7417_v48  ;;  %v2643_v33 = vrot.slane %v2642_v20, 4  ;;  %v2652_v34 = vor.u32 %v2651_v22, %v2647_v14  ;;  %v2505_v36 = vshrl.u32 %v8995_v13, 16  ;;  %v2562_v37 = vsel %vm8921_vm10, %v2557_v4, %v8986_v56  ;;  %v7413_v20 = vld [vmem:[#allocation14 + $0x18] sm:$0xff]  ;;  %p8118_p8 = pnand %p8117_p2, %p8575_p5  ;;  %p8123_p10 = por %p8122_p4, %p8121_p0 }
 0x386   : > { %2794 = vmatmul.bf16.vlgmr.msra.gmra.mxu3 %v2698_v53  ;;  %2764 = vmatmul.bf16.vlgmr.msra.gmra.mxu0 %v2692_v42  ;;  %v2600_v21 = vsel %vm8921_vm10, %v2595_v8, %v8977_v44  ;;  %v2497_v40 = vrot.slane %v2495_v31, 5  ;;  %v2511_v41 = vshll.u32 %v8997_v23, 16  ;;  %v2610_v46 = vsel %vm8921_vm10, %v2605_v18, %v2609_v19  ;;  %v3389_v53 = vld [vmem:[#allocation2 + $0xc] sm:$0xf]  ;;  %v9017_v8 = vld [vmem:[#allocation2 + $0x10] sm:$0xf] }
 0x387   : > { %3324 = vmatpush.bf16.msrb.mxu3 %v7449_v54  ;;  %3702 = vmatpush.bf16.msrb.mxu0 %v7457_v55  ;;  %v2653_v29 = vrot.slane %v2652_v34, 4  ;;  %v2503_v48 = vrot.slane %v2501_v35, 5  ;;  %v2507_v50 = vrot.slane %v2505_v36, 4  ;;  %v7455_v54 = vld [vmem:[#allocation14 + $0x128] sm:$0xff]  ;;  %v7430_v55 = vld [vmem:[#allocation14 + $0xa0] sm:$0xff]  ;;  %v2682_v56 = vunpack.c.l.b16 %v2552_v27  ;;  %v7429_v19 = vld [vmem:[#allocation14 + $0x98] sm:$0xff]  ;;  %p8119_p9 = pneg %p8118_p8 }
 0x388   : > { %v2648_v57 = vsel %vm8921_vm10, %v2643_v33, %v2647_v14  ;;  %v2498_v44 = vor.u32 %v2497_v40, %v2494_v30  ;;  %v2683_v42 = vunpack.c.l.b16 %v2562_v37  ;;  %v2513_v63 = vrot.slane %v2511_v41, 5  ;;  %v7445_v33 = vld [vmem:[#allocation14 + $0xd8] sm:$0xff] }
 0x389   : > { %3131 = vmatpush.bf16.msrb.mxu2 %v7432_v0  ;;  %2902 = vmatpush.bf16.msrb.mxu1 %v7416_v2  ;;  %v2658_v49 = vsel %vm8921_vm10, %v2653_v29, %v2657_v28  ;;  %v2508_v61 = vor.u32 %v2507_v50, %v2503_v48  ;;  %v2686_v11 = vunpack.c.l.b16 %v2600_v21  ;;  %v2687_v0 = vunpack.c.l.b16 %v2610_v46  ;;  %v7453_v37 = vld [vmem:[#allocation14 + $0x118] sm:$0xff]  ;;  %v2950_v21 = vld [vmem:[#allocation2] sm:$0xe]  ;;  %v7428_v46 = vld [vmem:[#allocation14 + $0x90] sm:$0xff]  ;;  %p8124_p13 = pnand %p8123_p10, %p8119_p9 }
 0x38a   : > { %v2499_v2 = vrot.slane %v2498_v44, 4  ;;  %v3414_v3 = vshrl.u32 %v3389_v53, 16  ;;  %v2690_v4 = vunpack.c.l.b16 %v2648_v57  ;;  %v2691_v5 = vunpack.c.l.b16 %v2658_v49  ;;  %v7412_v29 = vld [vmem:[#allocation14 + $0x10] sm:$0xff]  ;;  %v7427_v49 = vld [vmem:[#allocation14 + $0x88] sm:$0xff] }
 0x38b   : > { %3325 = vmatpush.bf16.msrb.mxu3 %v7448_v24  ;;  %3703 = vmatpush.bf16.msrb.mxu0 %v7456_v25  ;;  %v2509_v6 = vrot.slane %v2508_v61, 4  ;;  %v3417_v9 = vshll.u32 %v3389_v53, 16  ;;  %v2695_v18 = vpack.c.b16 %v2683_v42, %v2682_v56  ;;  %v9023_v25 = vld [vmem:[#allocation2 + $0x14] sm:$0x1]  ;;  %v2697_v27 = vpack.c.b16 %v2687_v0, %v2686_v11  ;;  %v3392_v42 = vld [vmem:[#allocation2 + $0x18] sm:$0xf] }
 0x38c   : > { %v2504_v14 = vsel %vm8921_vm10, %v2499_v2, %v2503_v48  ;;  %v3416_v15 = vrot.slane %v3414_v3, 4  ;;  %v3423_v30 = vshll.u32 %v9017_v8, 16  ;;  %v3427_v31 = vshrl.u32 %v9017_v8, 16  ;;  %v7411_v61 = vld [vmem:[#allocation14 + $0x8] sm:$0xff] }
 0x38d   : > { %3132 = vmatpush.bf16.msrb.mxu2 %v7431_v26  ;;  %2903 = vmatpush.bf16.msrb.mxu1 %v7415_v32  ;;  %v2514_v22 = vsel %vm8921_vm10, %v2509_v6, %v2513_v63  ;;  %v2678_v24 = vunpack.c.l.b16 %v2504_v14  ;;  %v3419_v26 = vrot.slane %v3417_v9, 5  ;;  %v2699_v32 = vpack.c.b16 %v2691_v5, %v2690_v4  ;;  %v9034_v63 = vld [vmem:[#allocation2 + $0x1c] sm:$0xf]  ;;  %v7443_v3 = vld [vmem:[#allocation14 + $0xc8] sm:$0xff] }
 0x38e   : > { %v2679_v28 = vunpack.c.l.b16 %v2514_v22  ;;  %v2979_v34 = vrot.slane %v8929_v38, 5  ;;  %v3425_v40 = vrot.slane %v3423_v30, 5  ;;  %v3429_v41 = vrot.slane %v3427_v31, 4  ;;  %v7444_v38 = vld [vmem:[#allocation14 + $0xd0] sm:$0xff]  ;;  %v7451_v4 = vld [vmem:[#allocation14 + $0x108] sm:$0xff]  ;;  %v7410_v14 = vld [vmem:[#allocation14] sm:$0xff] }
 0x38f   : > { %3326 = vmatpush.bf16.msrb.mxu3 %v7447_v45  ;;  %3704 = vmatpush.bf16.msrb.mxu0 %v7455_v54  ;;  %v3420_v35 = vor.u32 %v3419_v26, %v3416_v15  ;;  %v3433_v45 = vshll.u32 %v9023_v25, 16  ;;  %vm2974_vm11 = vcmask 1042432   ;;  %vm2975_vm12 = vcmask 1046532   ;;  %v2952_v30 = vld [vmem:[#allocation2 + $0x18] sm:$0xe]  ;;  %v7442_v31 = vld [vmem:[#allocation14 + $0xc0] sm:$0xff] }
 0x390   : > { %v2693_v36 = vpack.c.b16 %v2679_v28, %v2678_v24  ;;  %v3430_v48 = vor.u32 %v3429_v41, %v3425_v40  ;;  %v6812_v50 = vrot.slane %v2950_v21, 9  ;;  %v2981_v53 = vrot.slane %v2979_v34, 4  ;;  %vm9030_vm13 = vmor %vm2974_vm11, %vm2975_vm12  ;;  %v7497_v21 = vld [vmem:[#allocation14 + $0x238] sm:$0xff]  ;;  %v7402_v41 = vld [vmem:[#allocation2] sm:$0xff] }
 0x391   : > { %3133 = vmatpush.bf16.msrb.mxu2 %v7430_v55  ;;  %2904 = vmatpush.bf16.msrb.mxu1 %v7414_v7  ;;  %v2982_v54 = vrot.slane %v8937_v47, 5  ;;  %v7452_v55 = vld [vmem:[#allocation14 + $0x110] sm:$0xff]  ;;  %v3421_v57 = vrot.slane %v3420_v35, 4  ;;  %v3435_v7 = vrot.slane %v3433_v45, 5  ;;  %v3438_v0 = vshrl.u32 %v3392_v42, 16 }
 0x392   : > { %v3431_v44 = vrot.slane %v3430_v48, 4  ;;  %v2980_v47 = vsel %vm9030_vm13, %v6812_v50, %v2979_v34  ;;  %v3441_v2 = vshll.u32 %v3392_v42, 16  ;;  %v3447_v9 = vshll.u32 %v9034_v63, 16  ;;  %v7434_v48 = vld [vmem:[#allocation2 + $0xc] sm:$0xff]  ;;  %v7158_v56 = vld [vmem:[#allocation18 + $0x4] sm:$0xf] }
 0x393   : > { %3327 = vmatpush.bf16.msrb.mxu3 %v7446_v10  ;;  %3705 = vmatpush.bf16.msrb.mxu0 %v7454_v12  ;;  %v2983_v11 = vsel %vm9030_vm13, %v2981_v53, %v2982_v54  ;;  %v3426_v5 = vsel %vm8921_vm10, %v3421_v57, %v3425_v40  ;;  %v3451_v10 = vshrl.u32 %v9034_v63, 16  ;;  %v7426_v12 = vld [vmem:[#allocation14 + $0x80] sm:$0xff]  ;;  %v3050_v15 = vunpack.c.l.b16 %v2980_v47  ;;  %v2951_v50 = vld [vmem:[#allocation2 + $0xc] sm:$0xe] }
 0x394   : > { %2779 = vmatmul.bf16.gmra.mxu1 %v2695_v18  ;;  %2789 = vmatmul.bf16.gmra.mxu2 %v2697_v27  ;;  %v3436_v6 = vsel %vm8921_vm10, %v3431_v44, %v3435_v7  ;;  %v3051_v18 = vunpack.c.l.b16 %v2983_v11  ;;  %v2993_v22 = vrot.slane %v8905_v51, 5  ;;  %v3622_v24 = vunpack.c.l.b16 %v3426_v5  ;;  %v9049_v40 = vld [vmem:[#allocation2 + $0x20] sm:$0x1]  ;;  %v7464_v7 = vld [vmem:[#allocation14 + $0x170] sm:$0xff] }
 0x395   : > { %3134 = vmatpush.bf16.msrb.mxu2 %v7429_v19  ;;  %2905 = vmatpush.bf16.msrb.mxu1 %v7413_v20  ;;  %v7481_v19 = vld [vmem:[#allocation14 + $0x1b8] sm:$0xff]  ;;  %v3623_v26 = vunpack.c.l.b16 %v3436_v6  ;;  %v3440_v27 = vrot.slane %v3438_v0, 4  ;;  %v3443_v28 = vrot.slane %v3441_v2, 5  ;;  %v3453_v34 = vrot.slane %v3451_v10, 4  ;;  %v7488_v42 = vld [vmem:[#allocation14 + $0x1f0] sm:$0xff]  ;;  %v7463_v10 = vld [vmem:[#allocation14 + $0x168] sm:$0xff] }
 0x396   : > { %2799 = vmatmul.bf16.gmra.mxu3 %v2699_v32  ;;  %2769 = vmatmul.bf16.gmra.mxu0 %v2693_v36  ;;  %v7465_v20 = vld [vmem:[#allocation14 + $0x178] sm:$0xff]  ;;  %v7450_v32 = vld [vmem:[#allocation14 + $0x100] sm:$0xff]  ;;  %v6814_v35 = vrot.slane %v2952_v30, 9  ;;  %v2995_v36 = vrot.slane %v2993_v22, 4  ;;  %v2996_v51 = vrot.slane %v8907_v52, 5  ;;  %v3066_v45 = vpack.c.b16 %v3051_v18, %v3050_v15 }
 0x397   : > { %3328 = vmatpush.bf16.msrb.mxu3 %v7445_v33  ;;  %3706 = vmatpush.bf16.msrb.mxu0 %v7453_v37  ;;  %v9047_v33 = vrot.slane %v3447_v9, 5  ;;  %v7489_v37 = vld [vmem:[#allocation14 + $0x1f8] sm:$0xff]  ;;  %v3444_v52 = vor.u32 %v3443_v28, %v3440_v27  ;;  %v3457_v44 = vshll.u32 %v9049_v40, 16  ;;  %v2989_v11 = vrot.slane %v8997_v23, 5  ;;  %v3395_v2 = vld [vmem:[#allocation2 + $0x24] sm:$0xf] }
 0x398   : > { %v2997_v53 = vsel %vm9030_vm13, %v2995_v36, %v2996_v51  ;;  %v7479_v9 = vld [vmem:[#allocation14 + $0x1a8] sm:$0xff]  ;;  %v3462_v18 = vshrl.u32 %v3395_v2, 16  ;;  %v9076_v36 = vld [vmem:[#allocation2 + $0x2c] sm:$0x1] }
 0x399   : > { %3135 = vmatpush.bf16.msrb.mxu2 %v7428_v46  ;;  %2906 = vmatpush.bf16.msrb.mxu1 %v7412_v29  ;;  %v2986_v46 = vrot.slane %v8995_v13, 5  ;;  %v2994_v29 = vsel %vm9030_vm13, %v6814_v35, %v2993_v22  ;;  %v3454_v57 = vor.u32 %v3453_v34, %v9047_v33  ;;  %v3055_v13 = vunpack.c.l.b16 %v2997_v53  ;;  %v7435_v53 = vld [vmem:[#allocation2 + $0x18] sm:$0xff] }
 0x39a   : > { %v3054_v54 = vunpack.c.l.b16 %v2994_v29  ;;  %v3459_v6 = vrot.slane %v3457_v44, 5  ;;  %v3464_v30 = vrot.slane %v3462_v18, 4  ;;  %v7403_v29 = vld [vmem:[#allocation2 + $0xc] sm:$0xff] }
 0x39b   : > { %3329 = vmatpush.bf16.msrb.mxu3 %v7444_v38  ;;  %3707 = vmatpush.bf16.msrb.mxu0 %v7452_v55  ;;  %v3638_v38 = vpack.c.b16 %v3623_v26, %v3622_v24  ;;  %v7480_v55 = vld [vmem:[#allocation14 + $0x1b0] sm:$0xff]  ;;  %v2988_v47 = vrot.slane %v2986_v46, 4  ;;  %v3455_v5 = vrot.slane %v3454_v57, 4 }
 0x39c   : > { %v9060_v0 = vpack.c.b16 %v3055_v13, %v3054_v54 }
 0x39d   : > { %3136 = vmatpush.bf16.msrb.mxu2 %v7427_v49  ;;  %2907 = vmatpush.bf16.msrb.mxu1 %v7411_v61  ;;  %v7496_v49 = vld [vmem:[#allocation14 + $0x230] sm:$0xff]  ;;  %v6813_v61 = vrot.slane %v2951_v50, 9  ;;  %v2990_v15 = vsel %vm9030_vm13, %v2988_v47, %v2989_v11  ;;  %v3460_v26 = vsel %vm8921_vm10, %v3455_v5, %v3459_v6  ;;  %v7494_v47 = vld [vmem:[#allocation14 + $0x220] sm:$0xff] }
 0x39e   : > { %v3053_v28 = vunpack.c.l.b16 %v2990_v15  ;;  %v3625_v35 = vunpack.c.l.b16 %v3460_v26  ;;  %v3398_v11 = vld [vmem:[#allocation2 + $0x30] sm:$0xf]  ;;  %v7436_v26 = vld [vmem:[#allocation2 + $0x24] sm:$0xff] }
 0x39f   : > { %3330 = vmatpush.bf16.msrb.mxu3 %v7443_v3  ;;  %3708 = vmatpush.bf16.msrb.mxu0 %v7451_v4  ;;  %v9062_v3 = vld [vmem:[#allocation2 + $0x28] sm:$0xf]  ;;  %v3445_v4 = vrot.slane %v3444_v52, 4  ;;  %v2987_v23 = vsel %vm9030_vm13, %v6813_v61, %v2986_v46  ;;  %v7462_v61 = vld [vmem:[#allocation14 + $0x160] sm:$0xff]  ;;  %v3486_v6 = vshrl.u32 %v3398_v11, 16 }
 0x3a0   : > { %v3475_v22 = vshrl.u32 %v9062_v3, 16  ;;  %v3052_v27 = vunpack.c.l.b16 %v2987_v23 }
 0x3a1   : > { %3137 = vmatpush.bf16.msrb.mxu2 %v7426_v12  ;;  %2908 = vmatpush.bf16.msrb.mxu1 %v7410_v14  ;;  %v7487_v12 = vld [vmem:[#allocation14 + $0x1e8] sm:$0xff]  ;;  %v3450_v24 = vsel %vm8921_vm10, %v3445_v4, %v9047_v33  ;;  %v3488_v15 = vrot.slane %v3486_v6, 4 }
 0x3a2   : > { %v7495_v14 = vld [vmem:[#allocation14 + $0x228] sm:$0xff]  ;;  %v3624_v34 = vunpack.c.l.b16 %v3450_v24  ;;  %v3067_v46 = vpack.c.b16 %v3053_v28, %v3052_v27  ;;  %v7404_v24 = vld [vmem:[#allocation2 + $0x18] sm:$0xff] }
 0x3a3   : > { %3331 = vmatpush.bf16.msrb.mxu3 %v7442_v31  ;;  %3709 = vmatpush.bf16.msrb.mxu0 %v7450_v32  ;;  %v3000_v32 = vrot.slane %v8946_v58, 5  ;;  %v2953_v33 = vld [vmem:[#allocation2 + $0x24] sm:$0xe] }
 0x3a4   : > { %2909 = vmatmul.bf16.vlgmr.msrb.gmra.mxu1 %v7402_v41  ;;  %3138 = vmatmul.bf16.vlgmr.msrb.gmra.mxu2 %v3066_v45  ;;  %v6815_v51 = vrot.slane %v2953_v33, 9  ;;  %v3003_v45 = vrot.slane %v8953_v1, 5  ;;  %v3639_v54 = vpack.c.b16 %v3625_v35, %v3624_v34  ;;  %v9098_v34 = vld [vmem:[#allocation2 + $0x40] sm:$0xf]  ;;  %v7477_v35 = vld [vmem:[#allocation14 + $0x198] sm:$0xff] }
 0x3a5   : > { %4147 = vmatpush.bf16.msra.mxu2 %v7481_v19  ;;  %3952 = vmatpush.bf16.msra.mxu1 %v7465_v20  ;;  %v3465_v19 = vshll.u32 %v3395_v2, 16  ;;  %v3471_v20 = vshll.u32 %v9062_v3, 16  ;;  %v3002_v41 = vrot.slane %v3000_v32, 4  ;;  %v9086_v2 = vld [vmem:[#allocation2 + $0x34] sm:$0xf] }
 0x3a6   : > { %3332 = vmatmul.bf16.vlgmr.msrb.gmra.mxu3 %v7434_v48  ;;  %3710 = vmatmul.bf16.vlgmr.msrb.gmra.mxu0 %v3638_v38  ;;  %v3481_v38 = vshll.u32 %v9076_v36, 16  ;;  %v3001_v50 = vsel %vm9030_vm13, %v6815_v51, %v3000_v32  ;;  %v3401_v32 = vld [vmem:[#allocation2 + $0x3c] sm:$0xf] }
 0x3a7   : > { %4525 = vmatpush.bf16.msra.mxu3 %v7489_v37  ;;  %4775 = vmatpush.bf16.msra.mxu0 %v7497_v21  ;;  %v3467_v31 = vrot.slane %v3465_v19, 5  ;;  %v3473_v37 = vrot.slane %v3471_v20, 5  ;;  %v3477_v21 = vrot.slane %v3475_v22, 4  ;;  %v3004_v58 = vsel %vm9030_vm13, %v3002_v41, %v3003_v45  ;;  %v9094_v22 = vld [vmem:[#allocation2 + $0x38] sm:$0x1] }
 0x3a8   : > { %v3056_v52 = vunpack.c.l.b16 %v3001_v50  ;;  %v3057_v57 = vunpack.c.l.b16 %v3004_v58  ;;  %v3483_v13 = vrot.slane %v3481_v38, 5  ;;  %v7493_v45 = vld [vmem:[#allocation14 + $0x218] sm:$0xff] }
 0x3a9   : > { %4148 = vmatpush.bf16.msra.mxu2 %v7480_v55  ;;  %3953 = vmatpush.bf16.msra.mxu1 %v7464_v7  ;;  %v3468_v48 = vor.u32 %v3467_v31, %v3464_v30  ;;  %v3478_v55 = vor.u32 %v3477_v21, %v3473_v37  ;;  %v3505_v31 = vshll.u32 %v9094_v22, 16  ;;  %v7461_v21 = vld [vmem:[#allocation14 + $0x158] sm:$0xff] }
 0x3aa   : > { %v9084_v44 = vpack.c.b16 %v3057_v57, %v3056_v52 }
 0x3ab   : > { %4526 = vmatpush.bf16.msra.mxu3 %v7488_v42  ;;  %4776 = vmatpush.bf16.msra.mxu0 %v7496_v49  ;;  %v3469_v1 = vrot.slane %v3468_v48, 4  ;;  %v3479_v7 = vrot.slane %v3478_v55, 4  ;;  %v7478_v42 = vld [vmem:[#allocation14 + $0x1a0] sm:$0xff]  ;;  %v3507_v41 = vrot.slane %v3505_v31, 5  ;;  %v3519_v48 = vshll.u32 %v9098_v34, 16 }
 0x3ac   : > { %v7486_v49 = vld [vmem:[#allocation14 + $0x1e0] sm:$0xff] }
 0x3ad   : > { %4149 = vmatpush.bf16.msra.mxu2 %v7479_v9  ;;  %3954 = vmatpush.bf16.msra.mxu1 %v7463_v10  ;;  %v3474_v4 = vsel %vm8921_vm10, %v3469_v1, %v3473_v37  ;;  %v3484_v5 = vsel %vm8921_vm10, %v3479_v7, %v3483_v13  ;;  %v3489_v9 = vshll.u32 %v3398_v11, 16  ;;  %v3495_v10 = vshll.u32 %v9086_v2, 16  ;;  %v7485_v37 = vld [vmem:[#allocation14 + $0x1d8] sm:$0xff]  ;;  %v9106_v1 = vld [vmem:[#allocation2 + $0x44] sm:$0x1] }
 0x3ae   : > { %v3627_v23 = vunpack.c.l.b16 %v3484_v5  ;;  %v3007_v7 = vrot.slane %v8911_v59, 5  ;;  %v7405_v13 = vld [vmem:[#allocation2 + $0x24] sm:$0xff]  ;;  %v7437_v11 = vld [vmem:[#allocation2 + $0x30] sm:$0xff] }
 0x3af   : > { %4527 = vmatpush.bf16.msra.mxu3 %v7487_v12  ;;  %4777 = vmatpush.bf16.msra.mxu0 %v7495_v14  ;;  %v3499_v12 = vshrl.u32 %v9086_v2, 16  ;;  %v3626_v14 = vunpack.c.l.b16 %v3474_v4  ;;  %v3491_v18 = vrot.slane %v3489_v9, 5  ;;  %v3497_v19 = vrot.slane %v3495_v10, 5  ;;  %v7476_v59 = vld [vmem:[#allocation14 + $0x190] sm:$0xff] }
 0x3b0   : > { %v3009_v6 = vrot.slane %v3007_v7, 4  ;;  %v3010_v9 = vrot.slane %v8913_v60, 5 }
 0x3b1   : > { %4150 = vmatpush.bf16.msra.mxu2 %v7478_v42  ;;  %3955 = vmatpush.bf16.msra.mxu1 %v7462_v61  ;;  %v3501_v20 = vrot.slane %v3499_v12, 4  ;;  %v3640_v27 = vpack.c.b16 %v3627_v23, %v3626_v14  ;;  %v3492_v28 = vor.u32 %v3491_v18, %v3488_v15  ;;  %v2954_v42 = vld [vmem:[#allocation2 + $0x30] sm:$0xe]  ;;  %v3404_v18 = vld [vmem:[#allocation2 + $0x48] sm:$0xf] }
 0x3b2   : > { %v6816_v5 = vrot.slane %v2954_v42, 9  ;;  %v7484_v23 = vld [vmem:[#allocation14 + $0x1d0] sm:$0xff] }
 0x3b3   : > { %4528 = vmatpush.bf16.msra.mxu3 %v7486_v49  ;;  %4778 = vmatpush.bf16.msra.mxu0 %v7494_v47  ;;  %v3502_v30 = vor.u32 %v3501_v20, %v3497_v19  ;;  %v3493_v33 = vrot.slane %v3492_v28, 4  ;;  %v3529_v47 = vshll.u32 %v9106_v1, 16  ;;  %v7460_v15 = vld [vmem:[#allocation14 + $0x150] sm:$0xff]  ;;  %v3537_v28 = vshll.u32 %v3404_v18, 16 }
 0x3b4   : > { %2914 = vmatmul.bf16.gmra.mxu1 %v7403_v29  ;;  %3143 = vmatmul.bf16.gmra.mxu2 %v3067_v46  ;;  %v3510_v46 = vshrl.u32 %v3401_v32, 16  ;;  %v3513_v29 = vshll.u32 %v3401_v32, 16  ;;  %v7492_v20 = vld [vmem:[#allocation14 + $0x210] sm:$0xff] }
 0x3b5   : > { %v3503_v51 = vrot.slane %v3502_v30, 4  ;;  %4151 = vmatpush.bf16.msra.mxu2 %v7477_v35  ;;  %3956 = vmatpush.bf16.msra.mxu1 %v7461_v21  ;;  %v3498_v38 = vsel %vm8921_vm10, %v3493_v33, %v3497_v19  ;;  %v3531_v14 = vrot.slane %v3529_v47, 5  ;;  %v3405_v19 = vld [vmem:[#allocation2 + $0x4c] sm:$0xf]  ;;  %v7483_v47 = vld [vmem:[#allocation14 + $0x1c8] sm:$0xff] }
 0x3b6   : > { %3337 = vmatmul.bf16.gmra.mxu3 %v7435_v53  ;;  %3715 = vmatmul.bf16.gmra.mxu0 %v3639_v54  ;;  %v3512_v58 = vrot.slane %v3510_v46, 4  ;;  %v3515_v53 = vrot.slane %v3513_v29, 5  ;;  %v3521_v54 = vrot.slane %v3519_v48, 5  ;;  %v3628_v52 = vunpack.c.l.b16 %v3498_v38  ;;  %v3406_v46 = vld [vmem:[#allocation2 + $0x50] sm:$0x1]  ;;  %v7438_v38 = vld [vmem:[#allocation2 + $0x3c] sm:$0xff] }
 0x3b7   : > { %4529 = vmatpush.bf16.msra.mxu3 %v7485_v37  ;;  %4779 = vmatpush.bf16.msra.mxu0 %v7493_v45  ;;  %v3508_v50 = vsel %vm8921_vm10, %v3503_v51, %v3507_v41  ;;  %v3543_v30 = vshll.u32 %v3405_v19, 16  ;;  %v3547_v31 = vshrl.u32 %v3405_v19, 16  ;;  %v3539_v51 = vrot.slane %v3537_v28, 5  ;;  %v7406_v29 = vld [vmem:[#allocation2 + $0x30] sm:$0xff] }
 0x3b8   : > { %v3629_v57 = vunpack.c.l.b16 %v3508_v50  ;;  %v3516_v49 = vor.u32 %v3515_v53, %v3512_v58  ;;  %v2955_v58 = vld [vmem:[#allocation2 + $0x3c] sm:$0xe] }
 0x3b9   : > { %4152 = vmatpush.bf16.msra.mxu2 %v7476_v59  ;;  %3957 = vmatpush.bf16.msra.mxu1 %v7460_v15  ;;  %v3545_v41 = vrot.slane %v3543_v30, 5  ;;  %v3549_v45 = vrot.slane %v3547_v31, 4  ;;  %v3409_v30 = vld [vmem:[#allocation2 + $0x5c] sm:$0x1] }
 0x3ba   : > { %v3641_v4 = vpack.c.b16 %v3629_v57, %v3628_v52  ;;  %v3517_v10 = vrot.slane %v3516_v49, 4  ;;  %v6817_v52 = vrot.slane %v2955_v58, 9  ;;  %v7407_v31 = vld [vmem:[#allocation2 + $0x3c] sm:$0xff] }
 0x3bb   : > { %4530 = vmatpush.bf16.msra.mxu3 %v7484_v23  ;;  %4780 = vmatpush.bf16.msra.mxu0 %v7492_v20  ;;  %v7491_v23 = vld [vmem:[#allocation14 + $0x208] sm:$0xff]  ;;  %v7482_v58 = vld [vmem:[#allocation14 + $0x1c0] sm:$0xff] }
 0x3bc   : > { %v3522_v60 = vsel %vm8921_vm10, %v3517_v10, %v3521_v54 }
 0x3bd   : > { %v3630_v37 = vunpack.c.l.b16 %v3522_v60 }
 0x3bf   : > { %4531 = vmatpush.bf16.msra.mxu3 %v7483_v47  ;;  %4781 = vmatpush.bf16.msra.mxu0 %v7491_v23  ;;  %v3028_v23 = vrot.slane %v8983_v43, 5 }
 0x3c3   : > { %4532 = vmatpush.bf16.msra.mxu3 %v7482_v58 }
 0x3c4   : > { %2919 = vmatmul.bf16.gmra.mxu1 %v7404_v24  ;;  %3148 = vmatmul.bf16.gmra.mxu2 %v9060_v0  ;;  %v3523_v0 = vshrl.u32 %v9098_v34, 16  ;;  %v3008_v24 = vsel %vm9030_vm13, %v6816_v5, %v3007_v7  ;;  %v3017_v7 = vrot.slane %v8975_v39, 5 }
 0x3c5   : > { %v3058_v32 = vunpack.c.l.b16 %v3008_v24 }
 0x3c6   : > { %3342 = vmatmul.bf16.gmra.mxu3 %v7436_v26  ;;  %3720 = vmatmul.bf16.gmra.mxu0 %v3640_v27  ;;  %v3525_v55 = vrot.slane %v3523_v0, 4  ;;  %v3534_v27 = vshrl.u32 %v3404_v18, 16  ;;  %v3014_v0 = vrot.slane %v8959_v17, 5  ;;  %v3407_v17 = vld [vmem:[#allocation2 + $0x54] sm:$0xf] }
 0x3c7   : > { %v3558_v10 = vshrl.u32 %v3407_v17, 16 }
 0x3c8   : > { %v3526_v61 = vor.u32 %v3525_v55, %v3521_v54  ;;  %v3536_v33 = vrot.slane %v3534_v27, 4  ;;  %v3550_v54 = vor.u32 %v3549_v45, %v3545_v41  ;;  %v3553_v55 = vshll.u32 %v3406_v46, 16  ;;  %v7785_v27 = vld [vmem:[#allocation2 + $0x4c] sm:$0xf] }
 0x3c9   : > { %v3016_v57 = vrot.slane %v3014_v0, 4  ;;  %v3015_v5 = vsel %vm9030_vm13, %v6817_v52, %v3014_v0  ;;  %v3560_v24 = vrot.slane %v3558_v10, 4  ;;  %v3021_v28 = vrot.slane %v7785_v27, 5  ;;  %v3410_v0 = vld [vmem:[#allocation2 + $0x60] sm:$0xf] }
 0x3ca   : > { %v3527_v12 = vrot.slane %v3526_v61, 4  ;;  %v3540_v53 = vor.u32 %v3539_v51, %v3536_v33  ;;  %v3551_v42 = vrot.slane %v3550_v54, 4  ;;  %v3555_v49 = vrot.slane %v3553_v55, 5  ;;  %v7475_v61 = vld [vmem:[#allocation14 + $0x188] sm:$0xff] }
 0x3cb   : > { %4153 = vmatpush.bf16.msra.mxu2 %v7475_v61  ;;  %v3060_v15 = vunpack.c.l.b16 %v3015_v5  ;;  %v3023_v46 = vrot.slane %v3021_v28, 4  ;;  %v7458_v61 = vld [vmem:[#allocation14 + $0x140] sm:$0xff] }
 0x3cc   : > { %v3532_v26 = vsel %vm8921_vm10, %v3527_v12, %v3531_v14  ;;  %v3556_v39 = vsel %vm8921_vm10, %v3551_v42, %v3555_v49  ;;  %v3561_v12 = vshll.u32 %v3407_v17, 16 }
 0x3cd   : > { %v3631_v21 = vunpack.c.l.b16 %v3532_v26  ;;  %v3633_v20 = vunpack.c.l.b16 %v3556_v39 }
 0x3cf   : > { %v3642_v50 = vpack.c.b16 %v3631_v21, %v3630_v37  ;;  %v7439_v37 = vld [vmem:[#allocation2 + $0x48] sm:$0xff] }
 0x3d4   : > { %2924 = vmatmul.bf16.gmra.mxu1 %v7405_v13  ;;  %3153 = vmatmul.bf16.gmra.mxu2 %v9084_v44  ;;  %v3011_v44 = vsel %vm9030_vm13, %v3009_v6, %v3010_v9  ;;  %v3541_v13 = vrot.slane %v3540_v53, 4  ;;  %v3018_v6 = vsel %vm9030_vm13, %v3016_v57, %v3017_v7  ;;  %v3582_v7 = vshrl.u32 %v3410_v0, 16 }
 0x3d5   : > { %v3059_v35 = vunpack.c.l.b16 %v3011_v44  ;;  %v3061_v18 = vunpack.c.l.b16 %v3018_v6  ;;  %v3563_v44 = vrot.slane %v3561_v12, 5 }
 0x3d6   : > { %3347 = vmatmul.bf16.gmra.mxu3 %v7437_v11  ;;  %3725 = vmatmul.bf16.gmra.mxu0 %v3641_v4  ;;  %v3408_v11 = vld [vmem:[#allocation2 + $0x58] sm:$0xf]  ;;  %v7459_v4 = vld [vmem:[#allocation14 + $0x148] sm:$0xff]  ;;  %v3546_v9 = vsel %vm8921_vm10, %v3541_v13, %v3545_v41  ;;  %v3577_v41 = vshll.u32 %v3409_v30, 16  ;;  %v3585_v13 = vshll.u32 %v3410_v0, 16  ;;  %v3584_v6 = vrot.slane %v3582_v7, 4 }
 0x3d7   : > { %v3070_v48 = vpack.c.b16 %v3059_v35, %v3058_v32  ;;  %v3567_v14 = vshll.u32 %v3408_v11, 16  ;;  %v3571_v59 = vshrl.u32 %v3408_v11, 16  ;;  %3958 = vmatpush.bf16.msra.mxu1 %v7459_v4  ;;  %v3632_v19 = vunpack.c.l.b16 %v3546_v9  ;;  %v2956_v35 = vld [vmem:[#allocation2 + $0x48] sm:$0xe]  ;;  %v7490_v11 = vld [vmem:[#allocation14 + $0x200] sm:$0xff] }
 0x3d8   : > { %v3071_v32 = vpack.c.b16 %v3061_v18, %v3060_v15  ;;  %v3564_v33 = vor.u32 %v3563_v44, %v3560_v24  ;;  %v6818_v45 = vrot.slane %v2956_v35, 9  ;;  %v3579_v55 = vrot.slane %v3577_v41, 5  ;;  %4782 = vmatpush.bf16.msra.mxu0 %v7490_v11  ;;  %v7408_v15 = vld [vmem:[#allocation2 + $0x48] sm:$0xff]  ;;  %v7409_v11 = vld [vmem:[#allocation2 + $0x54] sm:$0xff] }
 0x3d9   : > { %v3569_v60 = vrot.slane %v3567_v14, 5  ;;  %v3573_v26 = vrot.slane %v3571_v59, 4  ;;  %v3643_v21 = vpack.c.b16 %v3633_v20, %v3632_v19  ;;  %v3587_v9 = vrot.slane %v3585_v13, 5  ;;  %v3412_v59 = vld [vmem:[#allocation2 + $0x68] sm:$0x1] }
 0x3da   : > { %v3565_v53 = vrot.slane %v3564_v33, 4  ;;  %v3022_v52 = vsel %vm9030_vm13, %v6818_v45, %v3021_v28  ;;  %v2957_v19 = vld [vmem:[#allocation2 + $0x54] sm:$0xe]  ;;  %v3601_v44 = vshll.u32 %v3412_v59, 16  ;;  %v9144_v33 = vld [vmem:[#allocation2 + $0x1c] sm:$0xf] }
 0x3db   : > { %v3574_v51 = vor.u32 %v3573_v26, %v3569_v60  ;;  %3959 = vmatpush.bf16.msra.mxu1 %v7458_v61  ;;  %v3062_v4 = vunpack.c.l.b16 %v3022_v52  ;;  %v3588_v20 = vor.u32 %v3587_v9, %v3584_v6  ;;  %v7440_v26 = vld [vmem:[#allocation2 + $0x54] sm:$0xff]  ;;  %v6819_v30 = vrot.slane %v2957_v19, 9  ;;  %v7441_v6 = vld [vmem:[#allocation2 + $0x60] sm:$0xff] }
 0x3dc   : > { %v3570_v47 = vsel %vm8921_vm10, %v3565_v53, %v3569_v60  ;;  %v4250_v58 = vshrl.u32 %v9144_v33, 16 }
 0x3dd   : > { %v3575_v54 = vrot.slane %v3574_v51, 4  ;;  %v3634_v12 = vunpack.c.l.b16 %v3570_v47  ;;  %v3589_v35 = vrot.slane %v3588_v20, 4  ;;  %v3029_v45 = vsel %vm9030_vm13, %v6819_v30, %v3028_v23  ;;  %v4214_v47 = vld [vmem:[#allocation2 + $0x20] sm:$0x1]  ;;  %v4215_v20 = vld [vmem:[#allocation2 + $0x24] sm:$0xf] }
 0x3df   : > { %v3580_v17 = vsel %vm8921_vm10, %v3575_v54, %v3579_v55  ;;  %v3064_v54 = vunpack.c.l.b16 %v3029_v45 }
 0x3e0   : > { %v3635_v14 = vunpack.c.l.b16 %v3580_v17 }
 0x3e2   : > { %v3644_v27 = vpack.c.b16 %v3635_v14, %v3634_v12 }
 0x3e4   : > { %2929 = vmatmul.bf16.gmra.mxu1 %v7406_v29  ;;  %3158 = vmatmul.bf16.gmra.mxu2 %v3070_v48  ;;  %v7786_v29 = vld [vmem:[#allocation2 + $0x50] sm:$0x1] }
 0x3e5   : > { %v3024_v48 = vrot.slane %v7786_v29, 5 }
 0x3e6   : > { %3352 = vmatmul.bf16.gmra.mxu3 %v7438_v38  ;;  %3730 = vmatmul.bf16.gmra.mxu0 %v3642_v50  ;;  %v7474_v38 = vld [vmem:[#allocation14 + $0x180] sm:$0xff]  ;;  %v3411_v50 = vld [vmem:[#allocation2 + $0x64] sm:$0xf] }
 0x3e7   : > { %v3025_v57 = vsel %vm9030_vm13, %v3023_v46, %v3024_v48  ;;  %4154 = vmatpush.bf16.msra.mxu2 %v7474_v38  ;;  %v3591_v42 = vshll.u32 %v3411_v50, 16  ;;  %v3595_v49 = vshrl.u32 %v3411_v50, 16  ;;  %v4246_v50 = vshll.u32 %v9144_v33, 16 }
 0x3e8   : > { %v3063_v5 = vunpack.c.l.b16 %v3025_v57 }
 0x3e9   : > { %v3593_v39 = vrot.slane %v3591_v42, 5  ;;  %v3597_v10 = vrot.slane %v3595_v49, 4  ;;  %v4248_v42 = vrot.slane %v4246_v50, 5  ;;  %v4252_v49 = vrot.slane %v4250_v58, 4 }
 0x3ea   : > { %v3072_v18 = vpack.c.b16 %v3063_v5, %v3062_v4 }
 0x3eb   : > { %v3598_v24 = vor.u32 %v3597_v10, %v3593_v39  ;;  %v3801_v10 = vrot.slane %v9017_v8, 5  ;;  %v4253_v14 = vor.u32 %v4252_v49, %v4248_v42  ;;  %v9175_v8 = vld [vmem:[#allocation2 + $0x28] sm:$0xf] }
 0x3ec   : > { %v4270_v45 = vshll.u32 %v9175_v8, 16 }
 0x3ed   : > { %v3599_v43 = vrot.slane %v3598_v24, 4  ;;  %v3804_v24 = vrot.slane %v9023_v25, 5 }
 0x3f4   : > { %2934 = vmatmul.bf16.gmra.mxu1 %v7407_v31  ;;  %3163 = vmatmul.bf16.gmra.mxu2 %v3071_v32  ;;  %v3030_v31 = vrot.slane %v3028_v23, 4  ;;  %v3031_v32 = vrot.slane %v8988_v62, 5  ;;  %v3594_v62 = vsel %vm8921_vm10, %v3589_v35, %v3593_v39  ;;  %v3767_v39 = vld [vmem:[#allocation2 + $0xc] sm:$0xe]  ;;  %v4256_v23 = vshll.u32 %v4214_v47, 16 }
 0x3f5   : > { %v3636_v52 = vunpack.c.l.b16 %v3594_v62  ;;  %v6948_v19 = vrot.slane %v3767_v39, 9  ;;  %v4627_v35 = vrot.slane %v4214_v47, 5 }
 0x3f6   : > { %3357 = vmatmul.bf16.gmra.mxu3 %v7439_v37  ;;  %3735 = vmatmul.bf16.gmra.mxu0 %v3643_v21  ;;  %v3603_v37 = vrot.slane %v3601_v44, 5  ;;  %v4212_v21 = vld [vmem:[#allocation2 + $0x18] sm:$0xf]  ;;  %v3032_v46 = vsel %vm9030_vm13, %v3030_v31, %v3031_v32  ;;  %v3803_v44 = vrot.slane %v3801_v10, 4  ;;  %v4258_v30 = vrot.slane %v4256_v23, 5 }
 0x3f7   : > { %v4237_v0 = vshrl.u32 %v4212_v21, 16  ;;  %v4240_v38 = vshll.u32 %v4212_v21, 16  ;;  %v3065_v55 = vunpack.c.l.b16 %v3032_v46  ;;  %v4264_v21 = vshll.u32 %v4215_v20, 16  ;;  %v4217_v23 = vld [vmem:[#allocation2 + $0x2c] sm:$0x1] }
 0x3f8   : > { %v3604_v29 = vsel %vm8921_vm10, %v3599_v43, %v3603_v37  ;;  %v4261_v37 = vshrl.u32 %v4215_v20, 16  ;;  %v3802_v25 = vsel %vm9030_vm13, %v6948_v19, %v3801_v10  ;;  %v4274_v46 = vshrl.u32 %v9175_v8, 16 }
 0x3f9   : > { %v3637_v57 = vunpack.c.l.b16 %v3604_v29  ;;  %v4239_v7 = vrot.slane %v4237_v0, 4  ;;  %v4242_v13 = vrot.slane %v4240_v38, 5  ;;  %v3073_v4 = vpack.c.b16 %v3065_v55, %v3064_v54  ;;  %v7186_v55 = vld [vmem:[#allocation18 + $0xe4] sm:$0xf] }
 0x3fa   : > { %v3805_v29 = vsel %vm9030_vm13, %v3803_v44, %v3804_v24  ;;  %v4266_v49 = vrot.slane %v4264_v21, 5  ;;  %v3808_v19 = vrot.slane %v9034_v63, 5  ;;  %v3811_v63 = vrot.slane %v9049_v40, 5 }
 0x3fb   : > { %v3645_v9 = vpack.c.b16 %v3637_v57, %v3636_v52  ;;  %v4243_v12 = vor.u32 %v4242_v13, %v4239_v7  ;;  %v7513_v52 = vld [vmem:[#allocation18 + $0xf0] sm:$0xf0]  ;;  %v7218_v57 = vld [vmem:[#allocation18 + $0xe8] sm:$0xf]  ;;  %v3872_v7 = vunpack.c.l.b16 %v3802_v25  ;;  %v4263_v13 = vrot.slane %v4261_v37, 4 }
 0x3fc   : > { %v7187_v47 = vor.u32 %v7513_v52, %v7186_v55  ;;  %v9210_v55 = vld [vmem:[#allocation2 + $0x34] sm:$0xf]  ;;  %v7154_v52 = vld [vmem:[#allocation18 + $0xe0] sm:$0xf]  ;;  %v4634_v40 = vrot.slane %v4217_v23, 5 }
 0x3fd   : > { %v4267_v20 = vor.u32 %v4266_v49, %v4263_v13 }
 0x3fe   : > { %5217 = vmatpush.bf16.msrb.mxu2 %v7187_v47  ;;  %v7529_v47 = vld [vmem:[#allocation18 + $0xf8] sm:$0xf0] }
 0x401   : > { %v9139_v60 = vpop.f32.mrf.mxu1 }
 0x403   : > { %v9141_v28 = vpop.f32.mrf.mxu0 }
 0x404   : > { %2939 = vmatmul.bf16.gmra.mxu1 %v7408_v15  ;;  %3168 = vmatmul.bf16.gmra.mxu2 %v3072_v18  ;;  %v4624_v15 = vrot.slane %v9144_v33, 5  ;;  %v4590_v18 = vld [vmem:[#allocation2 + $0x18] sm:$0xe] }
 0x405   : > { %v7084_v31 = vrot.slane %v4590_v18, 9 }
 0x406   : > { %3362 = vmatmul.bf16.gmra.mxu3 %v7440_v26  ;;  %3740 = vmatmul.bf16.gmra.mxu0 %v3644_v27  ;;  %v4244_v26 = vrot.slane %v4243_v12, 4  ;;  %v4254_v27 = vrot.slane %v4253_v14, 4  ;;  %v4626_v32 = vrot.slane %v4624_v15, 4 }
 0x407   : > { %v9146_v51 = vpop.f32.mrf.mxu2  ;;  %v4625_v58 = vsel %vm9030_vm13, %v7084_v31, %v4624_v15  ;;  %v3768_v15 = vld [vmem:[#allocation2 + $0x18] sm:$0xe] }
 0x408   : > { %v4249_v38 = vsel %vm8921_vm10, %v4244_v26, %v4248_v42  ;;  %v4259_v50 = vsel %vm8921_vm10, %v4254_v27, %v4258_v30  ;;  %v4628_v54 = vsel %vm9030_vm13, %v4626_v32, %v4627_v35  ;;  %v4276_v42 = vrot.slane %v4274_v46, 4  ;;  %v7466_v26 = vld [vmem:[#allocation2 + $0x18] sm:$0xff] }
 0x409   : > { %v9148_v41 = vpop.f32.mrf.mxu3  ;;  %v9158_v48 = vpop.f32.mrf.mxu1  ;;  %v4445_v39 = vunpack.c.l.b16 %v4249_v38  ;;  %v4446_v10 = vunpack.c.l.b16 %v4259_v50  ;;  %v4695_v12 = vunpack.c.l.b16 %v4625_v58  ;;  %v4696_v14 = vunpack.c.l.b16 %v4628_v54  ;;  %v4591_v38 = vld [vmem:[#allocation2 + $0x24] sm:$0xe]  ;;  %v4218_v54 = vld [vmem:[#allocation2 + $0x30] sm:$0xf] }
 0x40a   : > { %v4280_v30 = vshll.u32 %v4217_v23, 16  ;;  %v6949_v37 = vrot.slane %v3768_v15, 9  ;;  %v3810_v46 = vrot.slane %v3808_v19, 4  ;;  %v4298_v15 = vshrl.u32 %v9210_v55, 16 }
 0x40b   : > { %v9162_v53 = vpop.f32.mrf.mxu0  ;;  %v4461_v32 = vpack.c.b16 %v4446_v10, %v4445_v39  ;;  %v4711_v35 = vpack.c.b16 %v4696_v14, %v4695_v12  ;;  %v4294_v14 = vshll.u32 %v9210_v55, 16 }
 0x40c   : > { %v4282_v58 = vrot.slane %v4280_v30, 5  ;;  %v3812_v12 = vsel %vm9030_vm13, %v3810_v46, %v3811_v63 }
 0x40d   : > { %v3875_v46 = vunpack.c.l.b16 %v3812_v12 }
 0x40f   : > { %v9164_v61 = vpop.f32.mrf.mxu2 }
 0x411   : > { %v9166_v17 = vpop.f32.mrf.mxu3  ;;  %v9168_v5 = vpop.f32.mrf.mxu1 }
 0x413   : > { %v9171_v59 = vpop.f32.mrf.mxu0 }
 0x414   : > { %2944 = vmatmul.bf16.gmra.mxu1 %v7409_v11  ;;  %3173 = vmatmul.bf16.gmra.mxu2 %v3073_v4  ;;  %v7521_v11 = vld [vmem:[#allocation18 + $0xf4] sm:$0xf0]  ;;  %v3873_v4 = vunpack.c.l.b16 %v3805_v29  ;;  %v4268_v29 = vrot.slane %v4267_v20, 4 }
 0x416   : > { %3367 = vmatmul.bf16.gmra.mxu3 %v7441_v6  ;;  %3745 = vmatmul.bf16.gmra.mxu0 %v3645_v9  ;;  %v9199_v6 = vrot.slane %v4270_v45, 5  ;;  %v7219_v9 = vor.u32 %v7521_v11, %v7218_v57  ;;  %v3888_v44 = vpack.c.b16 %v3873_v4, %v3872_v7  ;;  %v4631_v45 = vrot.slane %v9175_v8, 5  ;;  %v7505_v57 = vld [vmem:[#allocation18 + $0xec] sm:$0xf0]  ;;  %v7250_v8 = vld [vmem:[#allocation18 + $0xec] sm:$0xf] }
 0x417   : > { %v9177_v43 = vpop.f32.mrf.mxu2  ;;  %v7085_v7 = vrot.slane %v4591_v38, 9  ;;  %v7155_v49 = vor.u32 %v7505_v57, %v7154_v52  ;;  %v4285_v4 = vshrl.u32 %v4218_v54, 16  ;;  %v7520_v38 = vld [vmem:[#allocation18 + $0xd4] sm:$0xf0] }
 0x418   : > { %5466 = vmatpush.bf16.msrb.mxu3 %v7219_v9  ;;  %v4277_v27 = vor.u32 %v4276_v42, %v9199_v6  ;;  %v4633_v13 = vrot.slane %v4631_v45, 4  ;;  %v4288_v42 = vshll.u32 %v4218_v54, 16  ;;  %v7251_v9 = vor.u32 %v7529_v47, %v7250_v8 }
 0x419   : > { %v9179_v33 = vpop.f32.mrf.mxu3  ;;  %v9185_v62 = vpop.f32.mrf.mxu1  ;;  %4968 = vmatpush.bf16.msrb.mxu1 %v7155_v49  ;;  %v4273_v23 = vsel %vm8921_vm10, %v4268_v29, %v9199_v6  ;;  %v4287_v63 = vrot.slane %v4285_v4, 4  ;;  %v4300_v54 = vrot.slane %v4298_v15, 4 }
 0x41a   : > { %v4278_v50 = vrot.slane %v4277_v27, 4  ;;  %5715 = vmatpush.bf16.msrb.mxu0 %v7251_v9  ;;  %v4290_v6 = vrot.slane %v4288_v42, 5  ;;  %v7467_v42 = vld [vmem:[#allocation2 + $0x24] sm:$0xff] }
 0x41b   : > { %v9189_v0 = vpop.f32.mrf.mxu0 }
 0x41c   : > { %v4291_v49 = vor.u32 %v4290_v6, %v4287_v63  ;;  %v7246_v63 = vld [vmem:[#allocation18 + $0xcc] sm:$0xf] }
 0x41f   : > { %v9201_v18 = vpop.f32.mrf.mxu2 }
 0x421   : > { %v9204_v24 = vpop.f32.mrf.mxu3  ;;  %v2910_v31 = vpop.f32.mrf.mxu1 }
 0x422   : > { %v2911_v21 = vadd.f32 %v2910_v31, %v9141_v28  ;;  %v3809_v28 = vsel %vm9030_vm13, %v6949_v37, %v3808_v19  ;;  %v4632_v31 = vsel %vm9030_vm13, %v7085_v7, %v4631_v45  ;;  %v7512_v37 = vld [vmem:[#allocation18 + $0xd0] sm:$0xf0]  ;;  %v9230_v45 = vld [vmem:[#allocation2 + $0x38] sm:$0x1]  ;;  %v3769_v7 = vld [vmem:[#allocation2 + $0x24] sm:$0xe] }
 0x423   : > { %v3711_v25 = vpop.f32.mrf.mxu0  ;;  %v3874_v20 = vunpack.c.l.b16 %v3809_v28  ;;  %v4697_v52 = vunpack.c.l.b16 %v4632_v31  ;;  %v6950_v15 = vrot.slane %v3769_v7, 9 }
 0x424   : > { %3960 = vmatmul.bf16.vlgmr.msra.gmra.mxu1 %v3888_v44  ;;  %4155 = vmatmul.bf16.vlgmr.msra.gmra.mxu2 %v7466_v26  ;;  %v4283_v44 = vsel %vm8921_vm10, %v4278_v50, %v4282_v58  ;;  %v4447_v50 = vunpack.c.l.b16 %v4273_v23  ;;  %v9228_v58 = vrot.slane %v4294_v14, 5 }
 0x425   : > { %v4448_v28 = vunpack.c.l.b16 %v4283_v44  ;;  %v3889_v4 = vpack.c.b16 %v3875_v46, %v3874_v20  ;;  %v4638_v44 = vrot.slane %v9210_v55, 5  ;;  %v4592_v20 = vld [vmem:[#allocation2 + $0x30] sm:$0xe]  ;;  %v7150_v55 = vld [vmem:[#allocation18 + $0xc0] sm:$0xf] }
 0x426   : > { %4533 = vmatmul.bf16.vlgmr.msra.gmra.mxu3 %v4461_v32  ;;  %4783 = vmatmul.bf16.vlgmr.msra.gmra.mxu0 %v4711_v35  ;;  %v4635_v32 = vsel %vm9030_vm13, %v4633_v13, %v4634_v40  ;;  %v7182_v35 = vld [vmem:[#allocation18 + $0xc4] sm:$0xf]  ;;  %v3815_v40 = vrot.slane %v9062_v3, 5  ;;  %v4301_v9 = vor.u32 %v4300_v54, %v9228_v58  ;;  %v7504_v46 = vld [vmem:[#allocation18 + $0xcc] sm:$0xf0] }
 0x427   : > { %v3139_v11 = vpop.f32.mrf.mxu2  ;;  %v7183_v29 = vor.u32 %v7512_v37, %v7182_v35  ;;  %v4698_v57 = vunpack.c.l.b16 %v4635_v32  ;;  %v4462_v12 = vpack.c.b16 %v4448_v28, %v4447_v50  ;;  %v4221_v35 = vld [vmem:[#allocation2 + $0x3c] sm:$0xf]  ;;  %v9240_v37 = vld [vmem:[#allocation2 + $0x40] sm:$0xf]  ;;  %v4640_v6 = vrot.slane %v4638_v44, 4 }
 0x428   : > { %v3179_v39 = vadd.f32 %v3139_v11, %v2911_v21  ;;  %v7214_v21 = vld [vmem:[#allocation18 + $0xc8] sm:$0xf]  ;;  %v3817_v3 = vrot.slane %v3815_v40, 4  ;;  %v4302_v31 = vrot.slane %v4301_v9, 4  ;;  %v7528_v50 = vld [vmem:[#allocation18 + $0xd8] sm:$0xf0] }
 0x429   : > { %v3333_v10 = vpop.f32.mrf.mxu3  ;;  %v2912_v19 = vpop.f32.mrf.mxu1  ;;  %5218 = vmatpush.bf16.msrb.mxu2 %v7183_v29  ;;  %v4712_v14 = vpack.c.b16 %v4698_v57, %v4697_v52  ;;  %v4641_v29 = vrot.slane %v9230_v45, 5  ;;  %v4312_v28 = vshll.u32 %v4221_v35, 16  ;;  %v7247_v52 = vor.u32 %v7528_v50, %v7246_v63 }
 0x42a   : > { %v3373_v26 = vadd.f32 %v3333_v10, %v3179_v39  ;;  %v2913_v27 = vadd.f32 %v2912_v19, %v9162_v53  ;;  %v7215_v53 = vor.u32 %v7520_v38, %v7214_v21  ;;  %v4304_v39 = vshll.u32 %v9230_v45, 16 }
 0x42b   : > { %v3713_v30 = vpop.f32.mrf.mxu0  ;;  %v7151_v38 = vor.u32 %v7504_v46, %v7150_v55  ;;  %5716 = vmatpush.bf16.msrb.mxu0 %v7247_v52  ;;  %v3770_v46 = vld [vmem:[#allocation2 + $0x30] sm:$0xe] }
 0x42c   : > { %v9232_v8 = vadd.f32 %v3711_v25, %v3373_v26  ;;  %5467 = vmatpush.bf16.msrb.mxu3 %v7215_v53  ;;  %v3818_v26 = vrot.slane %v9076_v36, 5  ;;  %v4306_v32 = vrot.slane %v4304_v39, 5  ;;  %v7086_v36 = vrot.slane %v4592_v20, 9 }
 0x42d   : > { %v4309_v53 = vshrl.u32 %v4221_v35, 16  ;;  %4969 = vmatpush.bf16.msrb.mxu1 %v7151_v38 }
 0x42e   : > { %v3819_v7 = vsel %vm9030_vm13, %v3817_v3, %v3818_v26  ;;  %v4639_v39 = vsel %vm9030_vm13, %v7086_v36, %v4638_v44  ;;  %v7519_v26 = vld [vmem:[#allocation18 + $0xb4] sm:$0xf0]  ;;  %v9263_v44 = vld [vmem:[#allocation2 + $0x44] sm:$0x1]  ;;  %v3822_v36 = vrot.slane %v9086_v2, 5 }
 0x42f   : > { %v3141_v13 = vpop.f32.mrf.mxu2  ;;  %v4699_v35 = vunpack.c.l.b16 %v4639_v39  ;;  %v4224_v39 = vld [vmem:[#allocation2 + $0x48] sm:$0xf] }
 0x430   : > { %v3180_v47 = vadd.f32 %v3141_v13, %v2913_v27  ;;  %v4292_v27 = vrot.slane %v4291_v49, 4  ;;  %v4318_v13 = vshll.u32 %v9240_v37, 16  ;;  %v3824_v2 = vrot.slane %v3822_v36, 4 }
 0x431   : > { %v3335_v11 = vpop.f32.mrf.mxu3  ;;  %v2915_v10 = vpop.f32.mrf.mxu1 }
 0x432   : > { %v3374_v25 = vadd.f32 %v3335_v11, %v3180_v47  ;;  %v2916_v19 = vadd.f32 %v2915_v10, %v9171_v59  ;;  %v3816_v59 = vsel %vm9030_vm13, %v6950_v15, %v3815_v40  ;;  %v4322_v40 = vshrl.u32 %v9240_v37, 16  ;;  %v7210_v15 = vld [vmem:[#allocation18 + $0xa8] sm:$0xf] }
 0x433   : > { %v3716_v23 = vpop.f32.mrf.mxu0  ;;  %v3876_v47 = vunpack.c.l.b16 %v3816_v59  ;;  %v4297_v45 = vsel %vm8921_vm10, %v4292_v27, %v9228_v58  ;;  %v4307_v11 = vsel %vm8921_vm10, %v4302_v31, %v4306_v32  ;;  %v4642_v10 = vsel %vm9030_vm13, %v4640_v6, %v4641_v29 }
 0x434   : > { %3965 = vmatmul.bf16.gmra.mxu1 %v3889_v4  ;;  %4160 = vmatmul.bf16.gmra.mxu2 %v7467_v42  ;;  %v9242_v21 = vadd.f32 %v3713_v30, %v3374_v25  ;;  %v3877_v25 = vunpack.c.l.b16 %v3819_v7  ;;  %v4314_v58 = vrot.slane %v4312_v28, 5  ;;  %v4449_v27 = vunpack.c.l.b16 %v4297_v45 }
 0x435   : > { %v9261_v20 = vrot.slane %v4318_v13, 5  ;;  %v4324_v31 = vrot.slane %v4322_v40, 4  ;;  %v4450_v32 = vunpack.c.l.b16 %v4307_v11  ;;  %v4700_v59 = vunpack.c.l.b16 %v4642_v10  ;;  %v9273_v10 = vld [vmem:[#allocation2 + $0x4c] sm:$0xf] }
 0x436   : > { %4538 = vmatmul.bf16.gmra.mxu3 %v4462_v12  ;;  %4788 = vmatmul.bf16.gmra.mxu0 %v4712_v14  ;;  %v7178_v12 = vld [vmem:[#allocation18 + $0xa4] sm:$0xf]  ;;  %v7511_v14 = vld [vmem:[#allocation18 + $0xb0] sm:$0xf0]  ;;  %v3890_v50 = vpack.c.b16 %v3877_v25, %v3876_v47  ;;  %v4328_v28 = vshll.u32 %v9263_v44, 16  ;;  %v6951_v7 = vrot.slane %v3770_v46, 9 }
 0x437   : > { %v3144_v54 = vpop.f32.mrf.mxu2  ;;  %v7179_v3 = vor.u32 %v7511_v14, %v7178_v12  ;;  %v3825_v45 = vrot.slane %v9094_v22, 5  ;;  %v4593_v47 = vld [vmem:[#allocation2 + $0x3c] sm:$0xe]  ;;  %v7503_v14 = vld [vmem:[#allocation18 + $0xac] sm:$0xf0]  ;;  %v4346_v46 = vshrl.u32 %v9273_v10, 16 }
 0x438   : > { %v3181_v30 = vadd.f32 %v3144_v54, %v2916_v19  ;;  %v4311_v19 = vrot.slane %v4309_v53, 4  ;;  %v7468_v54 = vld [vmem:[#allocation2 + $0x30] sm:$0xff]  ;;  %v4325_v53 = vor.u32 %v4324_v31, %v9261_v20  ;;  %v7087_v22 = vrot.slane %v4593_v47, 9 }
 0x439   : > { %v3338_v57 = vpop.f32.mrf.mxu3  ;;  %v2917_v49 = vpop.f32.mrf.mxu1  ;;  %5219 = vmatpush.bf16.msrb.mxu2 %v7179_v3  ;;  %v7527_v3 = vld [vmem:[#allocation18 + $0xb8] sm:$0xf0]  ;;  %v4336_v31 = vshll.u32 %v4224_v39, 16 }
 0x43a   : > { %v3375_v4 = vadd.f32 %v3338_v57, %v3181_v30  ;;  %v2918_v42 = vadd.f32 %v2917_v49, %v9189_v0  ;;  %v7211_v0 = vor.u32 %v7519_v26, %v7210_v15  ;;  %v4315_v6 = vor.u32 %v4314_v58, %v4311_v19  ;;  %v7242_v15 = vld [vmem:[#allocation18 + $0xac] sm:$0xf] }
 0x43b   : > { %v3718_v9 = vpop.f32.mrf.mxu0  ;;  %v4463_v30 = vpack.c.b16 %v4450_v32, %v4449_v27  ;;  %v4713_v57 = vpack.c.b16 %v4700_v59, %v4699_v35  ;;  %v4645_v49 = vrot.slane %v9240_v37, 5  ;;  %v7146_v37 = vld [vmem:[#allocation18 + $0xa0] sm:$0xf]  ;;  %v4648_v19 = vrot.slane %v9263_v44, 5 }
 0x43c   : > { %v9265_v55 = vadd.f32 %v3716_v23, %v3375_v4  ;;  %5468 = vmatpush.bf16.msrb.mxu3 %v7211_v0  ;;  %v4316_v11 = vrot.slane %v4315_v6, 4  ;;  %v4326_v4 = vrot.slane %v4325_v53, 4  ;;  %v7147_v58 = vor.u32 %v7503_v14, %v7146_v37 }
 0x43d   : > { %v4647_v25 = vrot.slane %v4645_v49, 4  ;;  %v4333_v27 = vshrl.u32 %v4224_v39, 16  ;;  %v7243_v0 = vor.u32 %v7527_v3, %v7242_v15  ;;  %v3826_v35 = vsel %vm9030_vm13, %v3824_v2, %v3825_v45 }
 0x43e   : > { %v4342_v59 = vshll.u32 %v9273_v10, 16  ;;  %4970 = vmatpush.bf16.msrb.mxu1 %v7147_v58  ;;  %v4321_v44 = vsel %vm8921_vm10, %v4316_v11, %v9261_v20  ;;  %v4338_v20 = vrot.slane %v4336_v31, 5  ;;  %v4348_v11 = vrot.slane %v4346_v46, 4  ;;  %v7469_v58 = vld [vmem:[#allocation2 + $0x3c] sm:$0xff] }
 0x43f   : > { %v3146_v63 = vpop.f32.mrf.mxu2  ;;  %5717 = vmatpush.bf16.msrb.mxu0 %v7243_v0  ;;  %v4649_v53 = vsel %vm9030_vm13, %v4647_v25, %v4648_v19  ;;  %v4451_v2 = vunpack.c.l.b16 %v4321_v44  ;;  %v3829_v14 = vrot.slane %v9098_v34, 5  ;;  %v3832_v46 = vrot.slane %v9106_v1, 5 }
 0x440   : > { %v3182_v29 = vadd.f32 %v3146_v63, %v2918_v42  ;;  %v4330_v42 = vrot.slane %v4328_v28, 5  ;;  %v7174_v28 = vld [vmem:[#allocation18 + $0x84] sm:$0xf]  ;;  %v9294_v45 = vrot.slane %v4342_v59, 5  ;;  %v4652_v59 = vrot.slane %v9273_v10, 5 }
 0x441   : > { %v3340_v38 = vpop.f32.mrf.mxu3  ;;  %v2920_v52 = vpop.f32.mrf.mxu1  ;;  %v3831_v34 = vrot.slane %v3829_v14, 4  ;;  %v7142_v10 = vld [vmem:[#allocation18 + $0x80] sm:$0xf] }
 0x442   : > { %v3376_v23 = vadd.f32 %v3340_v38, %v3182_v29  ;;  %v2921_v13 = vadd.f32 %v2920_v52, %v9139_v60  ;;  %v3823_v60 = vsel %vm9030_vm13, %v6951_v7, %v3822_v36  ;;  %v4331_v6 = vsel %vm8921_vm10, %v4326_v4, %v4330_v42  ;;  %v7510_v52 = vld [vmem:[#allocation18 + $0x90] sm:$0xf0] }
 0x443   : > { %v3721_v40 = vpop.f32.mrf.mxu0  ;;  %v3878_v36 = vunpack.c.l.b16 %v3823_v60  ;;  %v4335_v7 = vrot.slane %v4333_v27, 4  ;;  %v4452_v47 = vunpack.c.l.b16 %v4331_v6  ;;  %v4702_v42 = vunpack.c.l.b16 %v4649_v53  ;;  %v3771_v60 = vld [vmem:[#allocation2 + $0x3c] sm:$0xe]  ;;  %v7502_v53 = vld [vmem:[#allocation18 + $0x8c] sm:$0xf0] }
 0x444   : > { %3970 = vmatmul.bf16.gmra.mxu1 %v3890_v50  ;;  %4165 = vmatmul.bf16.gmra.mxu2 %v7468_v54  ;;  %v9275_v12 = vadd.f32 %v3718_v9, %v3376_v23  ;;  %v4646_v54 = vsel %vm9030_vm13, %v7087_v22, %v4645_v49  ;;  %v7175_v23 = vor.u32 %v7510_v52, %v7174_v28  ;;  %v9296_v49 = vld [vmem:[#allocation2 + $0x50] sm:$0x1]  ;;  %v7238_v28 = vld [vmem:[#allocation18 + $0x8c] sm:$0xf]  ;;  %v4654_v52 = vrot.slane %v4652_v59, 4 }
 0x445   : > { %v4701_v4 = vunpack.c.l.b16 %v4646_v54  ;;  %v4339_v15 = vor.u32 %v4338_v20, %v4335_v7  ;;  %v4349_v3 = vor.u32 %v4348_v11, %v9294_v45  ;;  %v4464_v31 = vpack.c.b16 %v4452_v47, %v4451_v2  ;;  %v7526_v7 = vld [vmem:[#allocation18 + $0x98] sm:$0xf0] }
 0x446   : > { %4543 = vmatmul.bf16.gmra.mxu3 %v4463_v30  ;;  %4793 = vmatmul.bf16.gmra.mxu0 %v4713_v57  ;;  %v7206_v30 = vld [vmem:[#allocation18 + $0x88] sm:$0xf]  ;;  %v3879_v57 = vunpack.c.l.b16 %v3826_v35  ;;  %v7239_v2 = vor.u32 %v7526_v7, %v7238_v28 }
 0x447   : > { %v3149_v26 = vpop.f32.mrf.mxu2  ;;  %5220 = vmatpush.bf16.msrb.mxu2 %v7175_v23  ;;  %v4714_v0 = vpack.c.b16 %v4702_v42, %v4701_v4  ;;  %v4350_v44 = vrot.slane %v4349_v3, 4  ;;  %v7509_v3 = vld [vmem:[#allocation18 + $0x70] sm:$0xf0] }
 0x448   : > { %v3183_v9 = vadd.f32 %v3149_v26, %v2921_v13  ;;  %v7518_v13 = vld [vmem:[#allocation18 + $0x94] sm:$0xf0]  ;;  %v3891_v19 = vpack.c.b16 %v3879_v57, %v3878_v36  ;;  %v4352_v26 = vshll.u32 %v9296_v49, 16  ;;  %v4594_v36 = vld [vmem:[#allocation2 + $0x48] sm:$0xe]  ;;  %v7143_v57 = vor.u32 %v7502_v53, %v7142_v10  ;;  %5718 = vmatpush.bf16.msrb.mxu0 %v7239_v2 }
 0x449   : > { %v3343_v32 = vpop.f32.mrf.mxu3  ;;  %v2922_v63 = vpop.f32.mrf.mxu1  ;;  %v7088_v1 = vrot.slane %v4594_v36, 9 }
 0x44a   : > { %v3377_v29 = vadd.f32 %v3343_v32, %v3183_v9  ;;  %v2923_v38 = vadd.f32 %v2922_v63, %v9158_v48  ;;  %v7207_v48 = vor.u32 %v7518_v13, %v7206_v30  ;;  %v6952_v9 = vrot.slane %v3771_v60, 9  ;;  %4971 = vmatpush.bf16.msrb.mxu1 %v7143_v57  ;;  %v7470_v57 = vld [vmem:[#allocation2 + $0x48] sm:$0xff] }
 0x44b   : > { %v3723_v50 = vpop.f32.mrf.mxu0  ;;  %v4340_v63 = vrot.slane %v4339_v15, 4  ;;  %v4354_v6 = vrot.slane %v4352_v26, 5  ;;  %v4655_v30 = vrot.slane %v9296_v49, 5  ;;  %v7202_v26 = vld [vmem:[#allocation18 + $0x68] sm:$0xf] }
 0x44c   : > { %v9298_v39 = vadd.f32 %v3721_v40, %v3377_v29  ;;  %5469 = vmatpush.bf16.msrb.mxu3 %v7207_v48  ;;  %v4227_v29 = vld [vmem:[#allocation2 + $0x54] sm:$0xf]  ;;  %v3833_v48 = vsel %vm9030_vm13, %v3831_v34, %v3832_v46 }
 0x44d   : > { %v4357_v23 = vshrl.u32 %v4227_v29, 16  ;;  %v4360_v13 = vshll.u32 %v4227_v29, 16  ;;  %v4345_v49 = vsel %vm8921_vm10, %v4340_v63, %v9294_v45 }
 0x44f   : > { %v3151_v37 = vpop.f32.mrf.mxu2  ;;  %v4362_v45 = vrot.slane %v4360_v13, 5 }
 0x450   : > { %v3184_v22 = vadd.f32 %v3151_v37, %v2923_v38  ;;  %v9306_v38 = vld [vmem:[#allocation2 + $0x58] sm:$0xf]  ;;  %v4355_v37 = vsel %vm8921_vm10, %v4350_v44, %v4354_v6  ;;  %v3772_v6 = vld [vmem:[#allocation2 + $0x48] sm:$0xe] }
 0x451   : > { %v3345_v25 = vpop.f32.mrf.mxu3  ;;  %v2925_v27 = vpop.f32.mrf.mxu1  ;;  %v4366_v47 = vshll.u32 %v9306_v38, 16  ;;  %v4370_v4 = vshrl.u32 %v9306_v38, 16  ;;  %v4454_v63 = vunpack.c.l.b16 %v4355_v37  ;;  %v6953_v2 = vrot.slane %v3772_v6, 9 }
 0x452   : > { %v3378_v40 = vadd.f32 %v3345_v25, %v3184_v22  ;;  %v2926_v32 = vadd.f32 %v2925_v27, %v9168_v5  ;;  %v3830_v5 = vsel %vm9030_vm13, %v6952_v9, %v3829_v14  ;;  %v4653_v25 = vsel %vm9030_vm13, %v7088_v1, %v4652_v59  ;;  %v7517_v9 = vld [vmem:[#allocation18 + $0x74] sm:$0xf0] }
 0x453   : > { %v3726_v35 = vpop.f32.mrf.mxu0  ;;  %v3880_v60 = vunpack.c.l.b16 %v3830_v5  ;;  %v3881_v27 = vunpack.c.l.b16 %v3833_v48  ;;  %v9329_v34 = vrot.slane %v4366_v47, 5  ;;  %v7203_v46 = vor.u32 %v7517_v9, %v7202_v26  ;;  %v7787_v5 = vld [vmem:[#allocation2 + $0x4c] sm:$0xf]  ;;  %v7525_v9 = vld [vmem:[#allocation18 + $0x78] sm:$0xf0] }
 0x454   : > { %3975 = vmatmul.bf16.gmra.mxu1 %v3891_v19  ;;  %4170 = vmatmul.bf16.gmra.mxu2 %v7469_v58  ;;  %v9308_v54 = vadd.f32 %v3723_v50, %v3378_v40  ;;  %v4656_v19 = vsel %vm9030_vm13, %v4654_v52, %v4655_v30  ;;  %v7170_v58 = vld [vmem:[#allocation18 + $0x64] sm:$0xf]  ;;  %v4453_v40 = vunpack.c.l.b16 %v4345_v49  ;;  %v4703_v59 = vunpack.c.l.b16 %v4653_v25  ;;  %v7234_v26 = vld [vmem:[#allocation18 + $0x6c] sm:$0xf] }
 0x455   : > { %v4704_v36 = vunpack.c.l.b16 %v4656_v19  ;;  %5470 = vmatpush.bf16.msrb.mxu3 %v7203_v46  ;;  %v3836_v10 = vrot.slane %v7787_v5, 5  ;;  %v3892_v30 = vpack.c.b16 %v3881_v27, %v3880_v60  ;;  %v4659_v48 = vrot.slane %v9306_v38, 5  ;;  %v9336_v25 = vld [vmem:[#allocation2 + $0x64] sm:$0xf]  ;;  %v7138_v38 = vld [vmem:[#allocation18 + $0x60] sm:$0xf] }
 0x456   : > { %4548 = vmatmul.bf16.gmra.mxu3 %v4464_v31  ;;  %4798 = vmatmul.bf16.gmra.mxu0 %v4714_v0  ;;  %v4359_v31 = vrot.slane %v4357_v23, 4  ;;  %v7171_v0 = vor.u32 %v7509_v3, %v7170_v58  ;;  %v4465_v23 = vpack.c.b16 %v4454_v63, %v4453_v40  ;;  %v7501_v3 = vld [vmem:[#allocation18 + $0x6c] sm:$0xf0]  ;;  %v4390_v6 = vshll.u32 %v9336_v25, 16 }
 0x457   : > { %v3154_v20 = vpop.f32.mrf.mxu2  ;;  %v4715_v13 = vpack.c.b16 %v4704_v36, %v4703_v59  ;;  %v3838_v47 = vrot.slane %v3836_v10, 4  ;;  %v3837_v58 = vsel %vm9030_vm13, %v6953_v2, %v3836_v10  ;;  %v7516_v2 = vld [vmem:[#allocation18 + $0x54] sm:$0xf0] }
 0x458   : > { %v3185_v50 = vadd.f32 %v3154_v20, %v2926_v32  ;;  %v9327_v32 = vld [vmem:[#allocation2 + $0x5c] sm:$0x1]  ;;  %5221 = vmatpush.bf16.msrb.mxu2 %v7171_v0  ;;  %v4363_v53 = vor.u32 %v4362_v45, %v4359_v31  ;;  %v4661_v31 = vrot.slane %v4659_v48, 4  ;;  %v7139_v0 = vor.u32 %v7501_v3, %v7138_v38 }
 0x459   : > { %v3348_v11 = vpop.f32.mrf.mxu3  ;;  %v2927_v42 = vpop.f32.mrf.mxu1  ;;  %v4376_v28 = vshll.u32 %v9327_v32, 16  ;;  %v4662_v45 = vrot.slane %v9327_v32, 5  ;;  %v3882_v5 = vunpack.c.l.b16 %v3837_v58  ;;  %v7789_v58 = vld [vmem:[#allocation2 + $0x58] sm:$0xf] }
 0x45a   : > { %v3379_v14 = vadd.f32 %v3348_v11, %v3185_v50  ;;  %v2928_v15 = vadd.f32 %v2927_v42, %v9185_v62  ;;  %v4372_v62 = vrot.slane %v4370_v4, 4  ;;  %v7788_v4 = vld [vmem:[#allocation2 + $0x50] sm:$0x1]  ;;  %v4364_v49 = vrot.slane %v4363_v53, 4  ;;  %4972 = vmatpush.bf16.msrb.mxu1 %v7139_v0 }
 0x45b   : > { %v3728_v22 = vpop.f32.mrf.mxu0  ;;  %v3839_v42 = vrot.slane %v7788_v4, 5  ;;  %v4378_v37 = vrot.slane %v4376_v28, 5  ;;  %v3843_v38 = vrot.slane %v7789_v58, 5 }
 0x45c   : > { %v9331_v44 = vadd.f32 %v3726_v35, %v3379_v14  ;;  %v4373_v7 = vor.u32 %v4372_v62, %v9329_v34  ;;  %v4595_v35 = vld [vmem:[#allocation2 + $0x54] sm:$0xe]  ;;  %v4369_v32 = vsel %vm8921_vm10, %v4364_v49, %v9329_v34 }
 0x45d   : > { %v7089_v14 = vrot.slane %v4595_v35, 9  ;;  %v3840_v36 = vsel %vm9030_vm13, %v3838_v47, %v3839_v42  ;;  %v4455_v35 = vunpack.c.l.b16 %v4369_v32  ;;  %v9361_v47 = vrot.slane %v4390_v6, 5 }
 0x45e   : > { %v4374_v60 = vrot.slane %v4373_v7, 4  ;;  %v7198_v7 = vld [vmem:[#allocation18 + $0x48] sm:$0xf] }
 0x45f   : > { %v3156_v29 = vpop.f32.mrf.mxu2  ;;  %v7199_v42 = vor.u32 %v7516_v2, %v7198_v7  ;;  %v4233_v7 = vld [vmem:[#allocation2 + $0x6c] sm:$0xf] }
 0x460   : > { %v3186_v1 = vadd.f32 %v3156_v29, %v2928_v15  ;;  %v4230_v15 = vld [vmem:[#allocation2 + $0x60] sm:$0xf]  ;;  %v4394_v29 = vshrl.u32 %v9336_v25, 16  ;;  %v4379_v28 = vsel %vm8921_vm10, %v4374_v60, %v4378_v37  ;;  %v4405_v58 = vshrl.u32 %v4233_v7, 16 }
 0x461   : > { %v3350_v52 = vpop.f32.mrf.mxu3  ;;  %v2930_v20 = vpop.f32.mrf.mxu1  ;;  %v4381_v62 = vshrl.u32 %v4230_v15, 16  ;;  %v4384_v46 = vshll.u32 %v4230_v15, 16  ;;  %v4456_v49 = vunpack.c.l.b16 %v4379_v28  ;;  %5471 = vmatpush.bf16.msrb.mxu3 %v7199_v42  ;;  %v3773_v15 = vld [vmem:[#allocation2 + $0x54] sm:$0xe] }
 0x462   : > { %v3380_v50 = vadd.f32 %v3350_v52, %v3186_v1  ;;  %v2931_v27 = vadd.f32 %v2930_v20, %v9146_v51  ;;  %v4660_v1 = vsel %vm9030_vm13, %v7089_v14, %v4659_v48  ;;  %v4663_v52 = vsel %vm9030_vm13, %v4661_v31, %v4662_v45  ;;  %v7471_v45 = vld [vmem:[#allocation2 + $0x54] sm:$0xff] }
 0x463   : > { %v3731_v11 = vpop.f32.mrf.mxu0  ;;  %v3883_v20 = vunpack.c.l.b16 %v3840_v36  ;;  %v4396_v4 = vrot.slane %v4394_v29, 4  ;;  %v4705_v37 = vunpack.c.l.b16 %v4660_v1  ;;  %v4706_v48 = vunpack.c.l.b16 %v4663_v52  ;;  %v7790_v36 = vld [vmem:[#allocation2 + $0x5c] sm:$0x1]  ;;  %v7500_v52 = vld [vmem:[#allocation18 + $0x4c] sm:$0xf0] }
 0x464   : > { %3980 = vmatmul.bf16.gmra.mxu1 %v3892_v30  ;;  %4175 = vmatmul.bf16.gmra.mxu2 %v7470_v57  ;;  %v9338_v19 = vadd.f32 %v3728_v22, %v3380_v50  ;;  %v7235_v22 = vor.u32 %v7525_v9, %v7234_v26  ;;  %v7166_v30 = vld [vmem:[#allocation18 + $0x44] sm:$0xf]  ;;  %v7508_v57 = vld [vmem:[#allocation18 + $0x50] sm:$0xf0]  ;;  %v4232_v50 = vld [vmem:[#allocation2 + $0x68] sm:$0x1] }
 0x465   : > { %v7167_v34 = vor.u32 %v7508_v57, %v7166_v30  ;;  %v4400_v26 = vshll.u32 %v4232_v50, 16  ;;  %v3893_v31 = vpack.c.b16 %v3883_v20, %v3882_v5  ;;  %v4397_v0 = vor.u32 %v4396_v4, %v9361_v47  ;;  %v7230_v30 = vld [vmem:[#allocation18 + $0x4c] sm:$0xf]  ;;  %v9372_v20 = vld [vmem:[#allocation2 + $0x70] sm:$0xf] }
 0x466   : > { %4553 = vmatmul.bf16.gmra.mxu3 %v4465_v23  ;;  %4803 = vmatmul.bf16.gmra.mxu0 %v4715_v13  ;;  %v4383_v23 = vrot.slane %v4381_v62, 4  ;;  %v4386_v13 = vrot.slane %v4384_v46, 5  ;;  %v4666_v9 = vrot.slane %v9336_v25, 5  ;;  %v4466_v62 = vpack.c.b16 %v4456_v49, %v4455_v35  ;;  %v4596_v46 = vld [vmem:[#allocation2 + $0x60] sm:$0xe] }
 0x467   : > { %v3159_v40 = vpop.f32.mrf.mxu2  ;;  %5719 = vmatpush.bf16.msrb.mxu0 %v7235_v22  ;;  %5222 = vmatpush.bf16.msrb.mxu2 %v7167_v34  ;;  %v3846_v6 = vrot.slane %v7790_v36, 5  ;;  %v4402_v32 = vrot.slane %v4400_v26, 5  ;;  %v7090_v5 = vrot.slane %v4596_v46, 9  ;;  %v4669_v1 = vrot.slane %v4232_v50, 5  ;;  %v7134_v25 = vld [vmem:[#allocation18 + $0x40] sm:$0xf] }
 0x468   : > { %v3187_v63 = vadd.f32 %v3159_v40, %v2931_v27  ;;  %v4387_v3 = vor.u32 %v4386_v13, %v4383_v23  ;;  %v4668_v28 = vrot.slane %v4666_v9, 4  ;;  %v7135_v23 = vor.u32 %v7500_v52, %v7134_v25  ;;  %v7524_v13 = vld [vmem:[#allocation18 + $0x58] sm:$0xf0]  ;;  %v4235_v25 = vld [vmem:[#allocation2 + $0x74] sm:$0x1] }
 0x469   : > { %v3353_v59 = vpop.f32.mrf.mxu3  ;;  %v9348_v51 = vpop.f32.mrf.mxu1  ;;  %v7231_v4 = vor.u32 %v7524_v13, %v7230_v30 }
 0x46a   : > { %v3381_v10 = vadd.f32 %v3353_v59, %v3187_v63  ;;  %v6954_v63 = vrot.slane %v3773_v15, 9  ;;  %v3845_v59 = vrot.slane %v3843_v38, 4  ;;  %v4388_v29 = vrot.slane %v4387_v3, 4  ;;  %4973 = vmatpush.bf16.msrb.mxu1 %v7135_v23 }
 0x46b   : > { %v9353_v53 = vpop.f32.mrf.mxu0  ;;  %v4414_v3 = vshll.u32 %v9372_v20, 16  ;;  %5720 = vmatpush.bf16.msrb.mxu0 %v7231_v4 }
 0x46c   : > { %v9363_v60 = vadd.f32 %v3731_v11, %v3381_v10  ;;  %v4716_v11 = vpack.c.b16 %v4706_v48, %v4705_v37  ;;  %v4398_v10 = vrot.slane %v4397_v0, 4  ;;  %v3844_v2 = vsel %vm9030_vm13, %v6954_v63, %v3843_v38  ;;  %v7162_v0 = vld [vmem:[#allocation18 + $0x24] sm:$0xf] }
 0x46d   : > { %v3847_v35 = vsel %vm9030_vm13, %v3845_v59, %v3846_v6  ;;  %v4393_v50 = vsel %vm8921_vm10, %v4388_v29, %v9361_v47  ;;  %v4667_v37 = vsel %vm9030_vm13, %v7090_v5, %v4666_v9  ;;  %v4670_v48 = vsel %vm9030_vm13, %v4668_v28, %v4669_v1  ;;  %v7194_v9 = vld [vmem:[#allocation18 + $0x28] sm:$0xf]  ;;  %v7515_v59 = vld [vmem:[#allocation18 + $0x34] sm:$0xf0] }
 0x46e   : > { %v4408_v38 = vshll.u32 %v4233_v7, 16  ;;  %v4418_v47 = vshrl.u32 %v9372_v20, 16  ;;  %v4707_v36 = vunpack.c.l.b16 %v4667_v37  ;;  %v4708_v6 = vunpack.c.l.b16 %v4670_v48  ;;  %v7472_v7 = vld [vmem:[#allocation2 + $0x60] sm:$0xff]  ;;  %v7499_v48 = vld [vmem:[#allocation18 + $0x2c] sm:$0xf0] }
 0x46f   : > { %v9365_v14 = vpop.f32.mrf.mxu2  ;;  %v7195_v29 = vor.u32 %v7515_v59, %v7194_v9  ;;  %v4416_v28 = vrot.slane %v4414_v3, 5  ;;  %v7130_v37 = vld [vmem:[#allocation18 + $0x20] sm:$0xf] }
 0x470   : > { %v4410_v5 = vrot.slane %v4408_v38, 5  ;;  %v4420_v1 = vrot.slane %v4418_v47, 4  ;;  %v4717_v13 = vpack.c.b16 %v4708_v6, %v4707_v36  ;;  %v4597_v38 = vld [vmem:[#allocation2 + $0x6c] sm:$0xe]  ;;  %v7131_v3 = vor.u32 %v7499_v48, %v7130_v37  ;;  %v7523_v47 = vld [vmem:[#allocation18 + $0x38] sm:$0xf0] }
 0x471   : > { %v9367_v27 = vpop.f32.mrf.mxu3  ;;  %v2935_v40 = vpop.f32.mrf.mxu1  ;;  %5472 = vmatpush.bf16.msrb.mxu3 %v7195_v29  ;;  %v4676_v36 = vrot.slane %v4235_v25, 5 }
 0x472   : > { %v2936_v57 = vadd.f32 %v2935_v40, %v9177_v43  ;;  %v4403_v43 = vsel %vm8921_vm10, %v4398_v10, %v4402_v32  ;;  %v7507_v40 = vld [vmem:[#allocation18 + $0x30] sm:$0xf0]  ;;  %v4407_v10 = vrot.slane %v4405_v58, 4  ;;  %v4421_v4 = vor.u32 %v4420_v1, %v4416_v28  ;;  %v7226_v58 = vld [vmem:[#allocation18 + $0x2c] sm:$0xf]  ;;  %4974 = vmatpush.bf16.msrb.mxu1 %v7131_v3 }
 0x473   : > { %v3736_v22 = vpop.f32.mrf.mxu0  ;;  %v4458_v46 = vunpack.c.l.b16 %v4403_v43  ;;  %v7163_v63 = vor.u32 %v7507_v40, %v7162_v0  ;;  %v7227_v0 = vor.u32 %v7523_v47, %v7226_v58  ;;  %v7792_v40 = vld [vmem:[#allocation2 + $0x68] sm:$0x1]  ;;  %v7473_v58 = vld [vmem:[#allocation2 + $0x6c] sm:$0xff] }
 0x474   : > { %3985 = vmatmul.bf16.gmra.mxu1 %v3893_v31  ;;  %4180 = vmatmul.bf16.gmra.mxu2 %v7471_v45  ;;  %v3884_v45 = vunpack.c.l.b16 %v3844_v2  ;;  %v3853_v9 = vrot.slane %v7792_v40, 5 }
 0x475   : > { %5223 = vmatpush.bf16.msrb.mxu2 %v7163_v63  ;;  %v7091_v63 = vrot.slane %v4597_v38, 9  ;;  %5721 = vmatpush.bf16.msrb.mxu0 %v7227_v0 }
 0x476   : > { %4558 = vmatmul.bf16.gmra.mxu3 %v4466_v62  ;;  %4808 = vmatmul.bf16.gmra.mxu0 %v4716_v11  ;;  %v3885_v62 = vunpack.c.l.b16 %v3847_v35  ;;  %v4457_v11 = vunpack.c.l.b16 %v4393_v50  ;;  %v4411_v50 = vor.u32 %v4410_v5, %v4407_v10 }
 0x477   : > { %v3164_v34 = vpop.f32.mrf.mxu2 }
 0x478   : > { %v3189_v42 = vadd.f32 %v3164_v34, %v2936_v57  ;;  %v3894_v57 = vpack.c.b16 %v3885_v62, %v3884_v45  ;;  %v4467_v23 = vpack.c.b16 %v4458_v46, %v4457_v11  ;;  %v7791_v34 = vld [vmem:[#allocation2 + $0x64] sm:$0xf]  ;;  %v4412_v62 = vrot.slane %v4411_v50, 4 }
 0x479   : > { %v3358_v49 = vpop.f32.mrf.mxu3  ;;  %v9387_v15 = vpop.f32.mrf.mxu1  ;;  %v3850_v2 = vrot.slane %v7791_v34, 5  ;;  %v4422_v11 = vrot.slane %v4421_v4, 4 }
 0x47a   : > { %v3383_v26 = vadd.f32 %v3358_v49, %v3189_v42  ;;  %v4424_v42 = vshll.u32 %v4235_v25, 16  ;;  %v4673_v49 = vrot.slane %v9372_v20, 5 }
 0x47b   : > { %v9391_v31 = vpop.f32.mrf.mxu0  ;;  %v3852_v45 = vrot.slane %v3850_v2, 4 }
 0x47c   : > { %v9393_v32 = vadd.f32 %v3736_v22, %v3383_v26  ;;  %v3774_v22 = vld [vmem:[#allocation2 + $0x60] sm:$0xe]  ;;  %v4426_v46 = vrot.slane %v4424_v42, 5  ;;  %v4675_v59 = vrot.slane %v4673_v49, 4 }
 0x47d   : > { %v6955_v26 = vrot.slane %v3774_v22, 9 }
 0x47e   : > { %v4427_v25 = vsel %vm8921_vm10, %v4422_v11, %v4426_v46  ;;  %v4677_v34 = vsel %vm9030_vm13, %v4675_v59, %v4676_v36  ;;  %v7498_v59 = vld [vmem:[#allocation18 + $0xc] sm:$0xf0]  ;;  %v7222_v36 = vld [vmem:[#allocation18 + $0xc] sm:$0xf] }
 0x47f   : > { %v9395_v52 = vpop.f32.mrf.mxu2  ;;  %v3851_v1 = vsel %vm9030_vm13, %v6955_v26, %v3850_v2  ;;  %v4460_v4 = vunpack.c.l.b16 %v4427_v25  ;;  %v7506_v26 = vld [vmem:[#allocation18 + $0x10] sm:$0xf0] }
 0x480   : > { %v7159_v0 = vor.u32 %v7506_v26, %v7158_v56 }
 0x481   : > { %v9397_v30 = vpop.f32.mrf.mxu3  ;;  %v2940_v35 = vpop.f32.mrf.mxu1 }
 0x482   : > { %v2941_v20 = vadd.f32 %v2940_v35, %v9148_v41  ;;  %v3886_v35 = vunpack.c.l.b16 %v3851_v1  ;;  %5224 = vmatpush.bf16.msrb.mxu2 %v7159_v0  ;;  %v7522_v1 = vld [vmem:[#allocation18 + $0x18] sm:$0xf0] }
 0x483   : > { %v3741_v43 = vpop.f32.mrf.mxu0 }
 0x484   : > { %3990 = vmatmul.bf16.gmra.mxu1 %v3894_v57  ;;  %4185 = vmatmul.bf16.gmra.mxu2 %v7472_v7  ;;  %v3854_v57 = vsel %vm9030_vm13, %v3852_v45, %v3853_v9  ;;  %v4417_v7 = vsel %vm8921_vm10, %v4412_v62, %v4416_v28  ;;  %v4710_v28 = vunpack.c.l.b16 %v4677_v34  ;;  %v7190_v45 = vld [vmem:[#allocation18 + $0x8] sm:$0xf] }
 0x485   : > { %v3887_v2 = vunpack.c.l.b16 %v3854_v57  ;;  %v4459_v50 = vunpack.c.l.b16 %v4417_v7  ;;  %v7223_v57 = vor.u32 %v7522_v1, %v7222_v36 }
 0x486   : > { %4563 = vmatmul.bf16.gmra.mxu3 %v4467_v23  ;;  %4813 = vmatmul.bf16.gmra.mxu0 %v4717_v13  ;;  %v4674_v13 = vsel %vm9030_vm13, %v7091_v63, %v4673_v49  ;;  %v7126_v63 = vld [vmem:[#allocation18] sm:$0xf] }
 0x487   : > { %v3169_v6 = vpop.f32.mrf.mxu2  ;;  %v4709_v42 = vunpack.c.l.b16 %v4674_v13  ;;  %v3895_v16 = vpack.c.b16 %v3887_v2, %v3886_v35  ;;  %v4468_v3 = vpack.c.b16 %v4460_v4, %v4459_v50  ;;  %5722 = vmatpush.bf16.msrb.mxu0 %v7223_v57 }
 0x488   : > { %v3191_v29 = vadd.f32 %v3169_v6, %v2941_v20 }
 0x489   : > { %v3363_v10 = vpop.f32.mrf.mxu3  ;;  %v9401_v5 = vpop.f32.mrf.mxu1  ;;  %v4718_v49 = vpack.c.b16 %v4710_v28, %v4709_v42 }
 0x48a   : > { %v3385_v41 = vadd.f32 %v3363_v10, %v3191_v29  ;;  %v7127_v10 = vor.u32 %v7498_v59, %v7126_v63 }
 0x48b   : > { %v9409_v23 = vpop.f32.mrf.mxu0 }
 0x48c   : > { %v9417_v22 = vadd.f32 %v3741_v43, %v3385_v41  ;;  %v7514_v43 = vld [vmem:[#allocation18 + $0x14] sm:$0xf0]  ;;  %4975 = vmatpush.bf16.msrb.mxu1 %v7127_v10 }
 0x48d   : > { %v7191_v40 = vor.u32 %v7514_v43, %v7190_v45  ;;  %v9439_v45 = vld [vmem:[#allocation17] ss:$0 sm:$0xff] }
 0x48f   : > { %v9419_v37 = vpop.f32.mrf.mxu2  ;;  %5473 = vmatpush.bf16.msrb.mxu3 %v7191_v40 }
 0x491   : > { %v9421_v48 = vpop.f32.mrf.mxu3  ;;  %v2945_v38 = vpop.f32.mrf.mxu1 }
 0x492   : > { %v2946_v9 = vadd.f32 %v2945_v38, %v9179_v33 }
 0x493   : > { %v3746_v47 = vpop.f32.mrf.mxu0 }
 0x494   : > { %3995 = vmatmul.bf16.gmra.mxu1 %v3895_v16  ;;  %4190 = vmatmul.bf16.gmra.mxu2 %v7473_v58  ;;  %v9435_v58 = vld [vmem:[#allocation15] ss:$0 sm:$0xff] }
 0x496   : > { %4568 = vmatmul.bf16.gmra.mxu3 %v4468_v3  ;;  %4818 = vmatmul.bf16.gmra.mxu0 %v4718_v49 }
 0x497   : > { %v3174_v62 = vpop.f32.mrf.mxu2 }
 0x498   : > { %v3193_v11 = vadd.f32 %v3174_v62, %v2946_v9 }
 0x499   : > { %v3368_v46 = vpop.f32.mrf.mxu3  ;;  %v9424_v20 = vpop.f32.mrf.mxu1 }
 0x49a   : > { %v3387_v6 = vadd.f32 %v3368_v46, %v3193_v11 }
 0x49b   : > { %v9426_v29 = vpop.f32.mrf.mxu0 }
 0x49c   : > { %v9428_v7 = vadd.f32 %v3746_v47, %v3387_v6 }
 0x49f   : > { %v9430_v33 = vpop.f32.mrf.mxu2 }
 0x4a1   : > { %v9432_v41 = vpop.f32.mrf.mxu3  ;;  %v3961_v25 = vpop.f32.mrf.mxu1 }
 0x4a2   : > { %v4001_v34 = vadd.f32 %v3961_v25, %v9232_v8 }
 0x4a3   : > { %v4784_v13 = vpop.f32.mrf.mxu0 }
 0x4a7   : > { %v4156_v35 = vpop.f32.mrf.mxu2 }
 0x4a8   : > { %v4196_v2 = vadd.f32 %v4156_v35, %v4001_v34 }
 0x4a9   : > { %v4534_v50 = vpop.f32.mrf.mxu3  ;;  %v3963_v4 = vpop.f32.mrf.mxu1 }
 0x4aa   : > { %v4574_v42 = vadd.f32 %v4534_v50, %v4196_v2  ;;  %v4002_v38 = vadd.f32 %v3963_v4, %v9242_v21 }
 0x4ab   : > { %v4786_v28 = vpop.f32.mrf.mxu0 }
 0x4ac   : > { %v4824_v16 = vadd.f32 %v4784_v13, %v4574_v42 }
 0x4ae   : > { %v4844_v26 = vmul.f32 %v9435_v58, %v4824_v16 }
 0x4af   : > { %v4158_v3 = vpop.f32.mrf.mxu2 }
 0x4b0   : > { %v4197_v49 = vadd.f32 %v4158_v3, %v4002_v38  ;;  %v4864_v40 = vadd.f32 %v9439_v45, %v4844_v26 }
 0x4b1   : > { %v4536_v47 = vpop.f32.mrf.mxu3  ;;  %v3966_v56 = vpop.f32.mrf.mxu1 }
 0x4b2   : > { %v4575_v8 = vadd.f32 %v4536_v47, %v4197_v49  ;;  %v4003_v62 = vadd.f32 %v3966_v56, %v9265_v55  ;;  %v4880_v36 = vmax.f32 %v4864_v40, 0.0 }
 0x4b3   : > { %v4789_v0 = vpop.f32.mrf.mxu0 }
 0x4b4   : > { %v4825_v43 = vadd.f32 %v4786_v28, %v4575_v8 }
 0x4b6   : > { %v4845_v9 = vmul.f32 %v9435_v58, %v4825_v43 }
 0x4b7   : > { %v4161_v11 = vpop.f32.mrf.mxu2 }
 0x4b8   : > { %v4865_v21 = vadd.f32 %v9439_v45, %v4845_v9  ;;  %v4198_v46 = vadd.f32 %v4161_v11, %v4003_v62 }
 0x4b9   : > { %v4539_v63 = vpop.f32.mrf.mxu3  ;;  %v3968_v59 = vpop.f32.mrf.mxu1 }
 0x4ba   : > { %v4881_v6 = vmax.f32 %v4865_v21, 0.0  ;;  %v4576_v10 = vadd.f32 %v4539_v63, %v4198_v46  ;;  %v4004_v13 = vadd.f32 %v3968_v59, %v9275_v12 }
 0x4bb   : > { %v4791_v1 = vpop.f32.mrf.mxu0 }
 0x4bc   : > { %v4896_v57 = vpack.c.bf16 %v4881_v6, %v4880_v36  ;;  %v4826_v25 = vadd.f32 %v4789_v0, %v4576_v10 }
 0x4be   : > { %4976 = vmatmul.bf16.vlgmr.msrb.gmra.mxu1 %v4896_v57  ;;  %5225 = vmatmul.bf16.vlgmr.msrb.gmra.mxu2 %v4896_v57  ;;  %v4846_v50 = vmul.f32 %v9435_v58, %v4826_v25 }
 0x4bf   : > { %5474 = vmatmul.bf16.vlgmr.msrb.gmra.mxu3 %v4896_v57  ;;  %5723 = vmatmul.bf16.vlgmr.msrb.gmra.mxu0 %v4896_v57  ;;  %v4163_v34 = vpop.f32.mrf.mxu2 }
 0x4c0   : > { %v4199_v55 = vadd.f32 %v4163_v34, %v4004_v13  ;;  %v4866_v16 = vadd.f32 %v9439_v45, %v4846_v50 }
 0x4c1   : > { %v4541_v35 = vpop.f32.mrf.mxu3  ;;  %v3971_v2 = vpop.f32.mrf.mxu1 }
 0x4c2   : > { %v4577_v4 = vadd.f32 %v4541_v35, %v4199_v55  ;;  %v4005_v3 = vadd.f32 %v3971_v2, %v9298_v39  ;;  %v4882_v8 = vmax.f32 %v4866_v16, 0.0 }
 0x4c3   : > { %v4794_v42 = vpop.f32.mrf.mxu0 }
 0x4c4   : > { %v4827_v28 = vadd.f32 %v4791_v1, %v4577_v4 }
 0x4c6   : > { %v4847_v38 = vmul.f32 %v9435_v58, %v4827_v28 }
 0x4c7   : > { %v4166_v12 = vpop.f32.mrf.mxu2 }
 0x4c8   : > { %v4867_v49 = vadd.f32 %v9439_v45, %v4847_v38  ;;  %v4200_v47 = vadd.f32 %v4166_v12, %v4005_v3 }
 0x4c9   : > { %v4544_v56 = vpop.f32.mrf.mxu3  ;;  %v3973_v26 = vpop.f32.mrf.mxu1 }
 0x4ca   : > { %v4883_v0 = vmax.f32 %v4867_v49, 0.0  ;;  %v4578_v43 = vadd.f32 %v4544_v56, %v4200_v47  ;;  %v4006_v11 = vadd.f32 %v3973_v26, %v9308_v54  ;;  %v2933_v47 = vadd.f32 %v9348_v51, %v9164_v61 }
 0x4cb   : > { %v4796_v40 = vpop.f32.mrf.mxu0 }
 0x4cc   : > { %v4897_v9 = vpack.c.bf16 %v4883_v0, %v4882_v8  ;;  %v4828_v62 = vadd.f32 %v4794_v42, %v4578_v43  ;;  %v3188_v0 = vadd.f32 %v9365_v14, %v2933_v47 }
 0x4ce   : > { %4981 = vmatmul.bf16.gmra.mxu1 %v4897_v9  ;;  %5230 = vmatmul.bf16.gmra.mxu2 %v4897_v9  ;;  %v4848_v59 = vmul.f32 %v9435_v58, %v4828_v62 }
 0x4cf   : > { %5479 = vmatmul.bf16.gmra.mxu3 %v4897_v9  ;;  %5728 = vmatmul.bf16.gmra.mxu0 %v4897_v9  ;;  %v4168_v21 = vpop.f32.mrf.mxu2 }
 0x4d0   : > { %v4201_v39 = vadd.f32 %v4168_v21, %v4006_v11  ;;  %v4868_v1 = vadd.f32 %v9439_v45, %v4848_v59  ;;  %v3382_v11 = vadd.f32 %v9367_v27, %v3188_v0 }
 0x4d1   : > { %v4546_v46 = vpop.f32.mrf.mxu3  ;;  %v3976_v63 = vpop.f32.mrf.mxu1 }
 0x4d2   : > { %v4579_v36 = vadd.f32 %v4546_v46, %v4201_v39  ;;  %v4007_v25 = vadd.f32 %v3976_v63, %v9331_v44  ;;  %v4884_v2 = vmax.f32 %v4868_v1, 0.0  ;;  %v3760_v14 = vadd.f32 %v9353_v53, %v3382_v11 }
 0x4d3   : > { %v4799_v6 = vpop.f32.mrf.mxu0 }
 0x4d4   : > { %v4829_v10 = vadd.f32 %v4796_v40, %v4579_v36 }
 0x4d6   : > { %v4849_v57 = vmul.f32 %v9435_v58, %v4829_v10 }
 0x4d7   : > { %v4171_v54 = vpop.f32.mrf.mxu2 }
 0x4d8   : > { %v4869_v13 = vadd.f32 %v9439_v45, %v4849_v57  ;;  %v4202_v34 = vadd.f32 %v4171_v54, %v4007_v25  ;;  %v2938_v54 = vadd.f32 %v9387_v15, %v9201_v18 }
 0x4d9   : > { %v4549_v55 = vpop.f32.mrf.mxu3  ;;  %v3978_v35 = vpop.f32.mrf.mxu1 }
 0x4da   : > { %v4885_v50 = vmax.f32 %v4869_v13, 0.0  ;;  %v4580_v4 = vadd.f32 %v4549_v55, %v4202_v34  ;;  %v4008_v38 = vadd.f32 %v3978_v35, %v9338_v19  ;;  %v3190_v53 = vadd.f32 %v9395_v52, %v2938_v54 }
 0x4db   : > { %v4801_v42 = vpop.f32.mrf.mxu0 }
 0x4dc   : > { %v4898_v28 = vpack.c.bf16 %v4885_v50, %v4884_v2  ;;  %v4830_v16 = vadd.f32 %v4799_v6, %v4580_v4 }
 0x4de   : > { %4986 = vmatmul.bf16.gmra.mxu1 %v4898_v28  ;;  %5235 = vmatmul.bf16.gmra.mxu2 %v4898_v28  ;;  %v4850_v56 = vmul.f32 %v9435_v58, %v4830_v16 }
 0x4df   : > { %5484 = vmatmul.bf16.gmra.mxu3 %v4898_v28  ;;  %5733 = vmatmul.bf16.gmra.mxu0 %v4898_v28  ;;  %v4173_v3 = vpop.f32.mrf.mxu2  ;;  %v3384_v28 = vadd.f32 %v9397_v30, %v3190_v53 }
 0x4e0   : > { %v4203_v44 = vadd.f32 %v4173_v3, %v4008_v38  ;;  %v4870_v19 = vadd.f32 %v9439_v45, %v4850_v56 }
 0x4e1   : > { %v4551_v12 = vpop.f32.mrf.mxu3  ;;  %v3981_v49 = vpop.f32.mrf.mxu1  ;;  %v3762_v52 = vadd.f32 %v9391_v31, %v3384_v28 }
 0x4e2   : > { %v4581_v26 = vadd.f32 %v4551_v12, %v4203_v44  ;;  %v4009_v9 = vadd.f32 %v3981_v49, %v9363_v60  ;;  %v4886_v46 = vmax.f32 %v4870_v19, 0.0 }
 0x4e3   : > { %v4804_v8 = vpop.f32.mrf.mxu0 }
 0x4e4   : > { %v4831_v43 = vadd.f32 %v4801_v42, %v4581_v26 }
 0x4e6   : > { %v4851_v40 = vmul.f32 %v9435_v58, %v4831_v43  ;;  %v2943_v43 = vadd.f32 %v9401_v5, %v9166_v17 }
 0x4e7   : > { %v4176_v62 = vpop.f32.mrf.mxu2 }
 0x4e8   : > { %v4871_v21 = vadd.f32 %v9439_v45, %v4851_v40  ;;  %v4204_v39 = vadd.f32 %v4176_v62, %v4009_v9  ;;  %v3192_v9 = vadd.f32 %v9419_v37, %v2943_v43  ;;  %v9505_v43 = vld [vmem:[%s9971_s1] ss:$0 sm:$0xff] }
 0x4e9   : > { %v4554_v61 = vpop.f32.mrf.mxu3  ;;  %v3983_v51 = vpop.f32.mrf.mxu1 }
 0x4ea   : > { %v4887_v63 = vmax.f32 %v4871_v21, 0.0  ;;  %v4582_v59 = vadd.f32 %v4554_v61, %v4204_v39  ;;  %v4010_v1 = vadd.f32 %v3983_v51, %v3760_v14  ;;  %v3386_v51 = vadd.f32 %v9421_v48, %v3192_v9 }
 0x4eb   : > { %v4806_v36 = vpop.f32.mrf.mxu0 }
 0x4ec   : > { %v4899_v6 = vpack.c.bf16 %v4887_v63, %v4886_v46  ;;  %v4832_v10 = vadd.f32 %v4804_v8, %v4582_v59  ;;  %v3764_v37 = vadd.f32 %v9409_v23, %v3386_v51 }
 0x4ee   : > { %4991 = vmatmul.bf16.gmra.mxu1 %v4899_v6  ;;  %5240 = vmatmul.bf16.gmra.mxu2 %v4899_v6  ;;  %v4852_v13 = vmul.f32 %v9435_v58, %v4832_v10 }
 0x4ef   : > { %5489 = vmatmul.bf16.gmra.mxu3 %v4899_v6  ;;  %5738 = vmatmul.bf16.gmra.mxu0 %v4899_v6  ;;  %v4178_v60 = vpop.f32.mrf.mxu2 }
 0x4f0   : > { %v4205_v27 = vadd.f32 %v4178_v60, %v4010_v1  ;;  %v4872_v2 = vadd.f32 %v9439_v45, %v4852_v13 }
 0x4f1   : > { %v4556_v57 = vpop.f32.mrf.mxu3  ;;  %v3986_v25 = vpop.f32.mrf.mxu1 }
 0x4f2   : > { %v4583_v34 = vadd.f32 %v4556_v57, %v4205_v27  ;;  %v4011_v4 = vadd.f32 %v3986_v25, %v9393_v32  ;;  %v4888_v3 = vmax.f32 %v4872_v2, 0.0  ;;  %v2948_v25 = vadd.f32 %v9424_v20, %v9204_v24 }
 0x4f3   : > { %v4809_v55 = vpop.f32.mrf.mxu0 }
 0x4f4   : > { %v4833_v35 = vadd.f32 %v4806_v36, %v4583_v34  ;;  %v3194_v23 = vadd.f32 %v9430_v33, %v2948_v25 }
 0x4f6   : > { %v4853_v50 = vmul.f32 %v9435_v58, %v4833_v35 }
 0x4f7   : > { %v4181_v42 = vpop.f32.mrf.mxu2 }
 0x4f8   : > { %v4873_v16 = vadd.f32 %v9439_v45, %v4853_v50  ;;  %v4206_v38 = vadd.f32 %v4181_v42, %v4011_v4  ;;  %v3388_v50 = vadd.f32 %v9432_v41, %v3194_v23 }
 0x4f9   : > { %v4559_v18 = vpop.f32.mrf.mxu3  ;;  %v3988_v15 = vpop.f32.mrf.mxu1 }
 0x4fa   : > { %v4889_v44 = vmax.f32 %v4873_v16, 0.0  ;;  %v4584_v12 = vadd.f32 %v4559_v18, %v4206_v38  ;;  %v4012_v26 = vadd.f32 %v3988_v15, %v3762_v52  ;;  %v3766_v33 = vadd.f32 %v9426_v29, %v3388_v50 }
 0x4fb   : > { %v4811_v49 = vpop.f32.mrf.mxu0 }
 0x4fc   : > { %v4900_v47 = vpack.c.bf16 %v4889_v44, %v4888_v3  ;;  %v4834_v56 = vadd.f32 %v4809_v55, %v4584_v12 }
 0x4fe   : > { %4996 = vmatmul.bf16.gmra.mxu1 %v4900_v47  ;;  %5245 = vmatmul.bf16.gmra.mxu2 %v4900_v47  ;;  %v4854_v19 = vmul.f32 %v9435_v58, %v4834_v56 }
 0x4ff   : > { %5494 = vmatmul.bf16.gmra.mxu3 %v4900_v47  ;;  %5743 = vmatmul.bf16.gmra.mxu0 %v4900_v47  ;;  %v4183_v32 = vpop.f32.mrf.mxu2 }
 0x500   : > { %v4207_v30 = vadd.f32 %v4183_v32, %v4012_v26  ;;  %v4874_v11 = vadd.f32 %v9439_v45, %v4854_v19  ;;  %v5057_v19 = vld [vmem:[%s8644_s6] sm:$0xff]  }
 0x501   : > { %v4561_v8 = vpop.f32.mrf.mxu3  ;;  %v3991_v0 = vpop.f32.mrf.mxu1 }
 0x502   : > { %v4585_v40 = vadd.f32 %v4561_v8, %v4207_v30  ;;  %v4013_v39 = vadd.f32 %v3991_v0, %v9417_v22  ;;  %v4890_v59 = vmax.f32 %v4874_v11, 0.0  ;;  %v5073_v11 = vunpack.c.l.bf16 %v5057_v19 }
 0x503   : > { %v4814_v62 = vpop.f32.mrf.mxu0 }
 0x504   : > { %v4835_v31 = vadd.f32 %v4811_v49, %v4585_v40  ;;  %v9511_v40 = vld [vmem:[%s9971_s1 + $0x3] ss:$0 sm:$0xff] }
 0x506   : > { %v4855_v21 = vmul.f32 %v9435_v58, %v4835_v31  ;;  %v9522_v31 = vld [vmem:[%s9972_s19 + $0x3] ss:$0 sm:$0xff] }
 0x507   : > { %v4186_v61 = vpop.f32.mrf.mxu2 }
 0x508   : > { %v4875_v46 = vadd.f32 %v9439_v45, %v4855_v21  ;;  %v4208_v63 = vadd.f32 %v4186_v61, %v4013_v39 }
 0x509   : > { %v4564_v17 = vpop.f32.mrf.mxu3  ;;  %v3993_v5 = vpop.f32.mrf.mxu1 }
 0x50a   : > { %v4891_v36 = vmax.f32 %v4875_v46, 0.0  ;;  %v4586_v14 = vadd.f32 %v4564_v17, %v4208_v63  ;;  %v4014_v1 = vadd.f32 %v3993_v5, %v3764_v37  ;;  %v9530_v46 = vld [vmem:[%s9971_s1 + $0x1] ss:$0 sm:$0xff]  ;;  %v9536_v17 = vld [vmem:[%s9971_s1 + $0x2] ss:$0 sm:$0xff] }
 0x50b   : > { %v4816_v60 = vpop.f32.mrf.mxu0 }
 0x50c   : > { %v4901_v6 = vpack.c.bf16 %v4891_v36, %v4890_v59  ;;  %v4836_v10 = vadd.f32 %v4814_v62, %v4586_v14  ;;  %v9541_v59 = vld [vmem:[%s9972_s19 + $0x1] ss:$0 sm:$0xff] }
 0x50d   : > { %v5555_v36 = vld [vmem:[%s8644_s6 + $0x8] sm:$0xf] }
 0x50e   : > { %5001 = vmatmul.bf16.gmra.mxu1 %v4901_v6  ;;  %5250 = vmatmul.bf16.gmra.mxu2 %v4901_v6  ;;  %v4856_v54 = vmul.f32 %v9435_v58, %v4836_v10  ;;  %v5571_v25 = vunpack.c.l.bf16 %v5555_v36 }
 0x50f   : > { %5499 = vmatmul.bf16.gmra.mxu3 %v4901_v6  ;;  %5748 = vmatmul.bf16.gmra.mxu0 %v4901_v6  ;;  %v4188_v22 = vpop.f32.mrf.mxu2  ;;  %v9547_v6 = vld [vmem:[%s9972_s19 + $0x2] ss:$0 sm:$0xff] }
 0x510   : > { %v4209_v48 = vadd.f32 %v4188_v22, %v4014_v1  ;;  %v4876_v55 = vadd.f32 %v9439_v45, %v4856_v54 }
 0x511   : > { %v4566_v27 = vpop.f32.mrf.mxu3  ;;  %v3996_v57 = vpop.f32.mrf.mxu1 }
 0x512   : > { %v4587_v13 = vadd.f32 %v4566_v27, %v4209_v48  ;;  %v4015_v35 = vadd.f32 %v3996_v57, %v9428_v7  ;;  %v4892_v20 = vmax.f32 %v4876_v55, 0.0  ;;  %v5805_v48 = vld [vmem:[%s8644_s6 + $0x1c] sm:$0xff]  }
 0x513   : > { %v4819_v24 = vpop.f32.mrf.mxu0 }
 0x514   : > { %v4837_v34 = vadd.f32 %v4816_v60, %v4587_v13  ;;  %v5322_v60 = vunpack.c.h.bf16 %v5057_v19  ;;  %v5075_v19 = vunpack.c.h.bf16 %v5805_v48 }
 0x516   : > { %v4857_v53 = vmul.f32 %v9435_v58, %v4837_v34 }
 0x517   : > { %v4191_v2 = vpop.f32.mrf.mxu2 }
 0x518   : > { %v4877_v4 = vadd.f32 %v9439_v45, %v4857_v53  ;;  %v4210_v42 = vadd.f32 %v4191_v2, %v4015_v35 }
 0x519   : > { %v4569_v28 = vpop.f32.mrf.mxu3  ;;  %v3998_v18 = vpop.f32.mrf.mxu1 }
 0x51a   : > { %v4893_v16 = vmax.f32 %v4877_v4, 0.0  ;;  %v4588_v38 = vadd.f32 %v4569_v28, %v4210_v42  ;;  %v4016_v44 = vadd.f32 %v3998_v18, %v3766_v33  ;;  %v5821_v4 = vunpack.c.l.bf16 %v5805_v48 }
 0x51b   : > { %v4821_v47 = vpop.f32.mrf.mxu0 }
 0x51c   : > { %v4902_v15 = vpack.c.bf16 %v4893_v16, %v4892_v20  ;;  %v4838_v3 = vadd.f32 %v4819_v24, %v4588_v38  ;;  %v5307_v16 = vld [vmem:[%s8644_s6 + $0x14] sm:$0xff]  }
 0x51e   : > { %5006 = vmatmul.bf16.gmra.mxu1 %v4902_v15  ;;  %5255 = vmatmul.bf16.gmra.mxu2 %v4902_v15  ;;  %v4858_v49 = vmul.f32 %v9435_v58, %v4838_v3 }
 0x51f   : > { %5504 = vmatmul.bf16.gmra.mxu3 %v4902_v15  ;;  %5753 = vmatmul.bf16.gmra.mxu0 %v4902_v15  ;;  %v4193_v7 = vpop.f32.mrf.mxu2 }
 0x520   : > { %v4211_v41 = vadd.f32 %v4193_v7, %v4016_v44  ;;  %v4878_v26 = vadd.f32 %v9439_v45, %v4858_v49 }
 0x521   : > { %v4571_v12 = vpop.f32.mrf.mxu3 }
 0x522   : > { %v4589_v52 = vadd.f32 %v4571_v12, %v4211_v41  ;;  %v4894_v30 = vmax.f32 %v4878_v26, 0.0  ;;  %v5323_v12 = vunpack.c.l.bf16 %v5307_v16 }
 0x524   : > { %v4839_v56 = vadd.f32 %v4821_v47, %v4589_v52  ;;  %v5806_v52 = vld [vmem:[%s8644_s6 + $0x2c] sm:$0xff]  }
 0x526   : > { %v4859_v29 = vmul.f32 %v9435_v58, %v4839_v56  ;;  %v9516_v58 = vld [vmem:[%s9972_s19] ss:$0 sm:$0xff] }
 0x528   : > { %v4879_v32 = vadd.f32 %v9439_v45, %v4859_v29  ;;  %v5804_v45 = vld [vmem:[%s8644_s6 + $0xc] sm:$0xff]   ;;  %v5572_v29 = vunpack.c.h.bf16 %v5307_v16 }
 0x529   : > { %v5820_v61 = vunpack.c.l.bf16 %v5804_v45  ;;  %v5074_v55 = vunpack.c.h.bf16 %v5804_v45 }
 0x52a   : > { %v4895_v8 = vmax.f32 %v4879_v32, 0.0 }
 0x52c   : > { %v4903_v0 = vpack.c.bf16 %v4895_v8, %v4894_v30 }
 0x52e   : > { %5011 = vmatmul.bf16.gmra.mxu1 %v4903_v0  ;;  %5260 = vmatmul.bf16.gmra.mxu2 %v4903_v0 }
 0x52f   : > { %5509 = vmatmul.bf16.gmra.mxu3 %v4903_v0  ;;  %5758 = vmatmul.bf16.gmra.mxu0 %v4903_v0 }
 0x53b   : > { %v4977_v9 = vpop.f32.mrf.mxu1 }
 0x53c   : > { %v5021_v62 = vmul.f32 %v9505_v43, %v4977_v9  ;;  %v5724_v21 = vpop.f32.mrf.mxu0 }
 0x53d   : > { %v5768_v39 = vmul.f32 %v9511_v40, %v5724_v21  ;;  %v5822_v21 = vunpack.c.l.bf16 %v5806_v52 }
 0x53e   : > { %v5041_v51 = vadd.f32 %v9516_v58, %v5021_v62 }
 0x53f   : > { %v5788_v63 = vadd.f32 %v9522_v31, %v5768_v39 }
 0x540   : > { %v5089_v5 = vadd.f32 %v5073_v11, %v5041_v51 }
 0x541   : > { %v5836_v14 = vadd.f32 %v5820_v61, %v5788_v63  ;;  %v5226_v37 = vpop.f32.mrf.mxu2 }
 0x542   : > { %v5105_v10 = vmax.f32 %v5089_v5, 0.0  ;;  %v5270_v1 = vmul.f32 %v9530_v46, %v5226_v37  ;;  %v5475_v22 = vpop.f32.mrf.mxu3  ;;  %v5308_v5 = vld [vmem:[%s8644_s6 + $0x24] sm:$0xff]  }
 0x543   : > { %v5852_v27 = vmax.f32 %v5836_v14, 0.0  ;;  %v5519_v57 = vmul.f32 %v9536_v17, %v5475_v22  ;;  %v4979_v54 = vpop.f32.mrf.mxu1 }
 0x544   : > { %v5121_v13 = vpack.c.bf16 %v5105_v10, %v5105_v10  ;;  %v5290_v23 = vadd.f32 %v9541_v59, %v5270_v1  ;;  %v5022_v34 = vmul.f32 %v9505_v43, %v4979_v54  ;;  %v5726_v53 = vpop.f32.mrf.mxu0 }
 0x545   : > { %v5868_v35 = vpack.c.bf16 %v5852_v27, %v5852_v27  ;;  %v5539_v2 = vadd.f32 %v9547_v6, %v5519_v57  ;;  %v5769_v50 = vmul.f32 %v9511_v40, %v5726_v53  ;;  %v5324_v27 = vunpack.c.l.bf16 %v5308_v5 }
 0x546   : > { %5137 = vst [vmem:[%s8873_s17] sm:$0xf] %v5121_v13  ;;  %v5338_v42 = vadd.f32 %v5322_v60, %v5290_v23  ;;  %v5042_v28 = vadd.f32 %v9516_v58, %v5022_v34  ;;  %v5573_v34 = vunpack.c.h.bf16 %v5308_v5 }
 0x547   : > { %5884 = vst [vmem:[%s8873_s17 + $0xc] sm:$0xf] %v5868_v35  ;;  %v5587_v24 = vadd.f32 %v5571_v25, %v5539_v2  ;;  %v5789_v20 = vadd.f32 %v9522_v31, %v5769_v50  ;;  %v5807_v25 = vld [vmem:[%s8644_s6 + $0x3c] sm:$0xff]   ;;  %v5076_v50 = vunpack.c.h.bf16 %v5806_v52 }
 0x548   : > { %v5354_v38 = vmax.f32 %v5338_v42, 0.0  ;;  %v5090_v18 = vadd.f32 %v5074_v55, %v5042_v28 }
 0x549   : > { %v5603_v33 = vmax.f32 %v5587_v24, 0.0  ;;  %v5837_v15 = vadd.f32 %v5821_v4, %v5789_v20  ;;  %v5228_v3 = vpop.f32.mrf.mxu2  ;;  %v5823_v20 = vunpack.c.l.bf16 %v5807_v25 }
 0x54a   : > { %v5370_v44 = vpack.c.bf16 %v5354_v38, %v5354_v38  ;;  %v5106_v7 = vmax.f32 %v5090_v18, 0.0  ;;  %v5271_v41 = vmul.f32 %v9530_v46, %v5228_v3  ;;  %v5477_v49 = vpop.f32.mrf.mxu3 }
 0x54b   : > { %v5619_v47 = vpack.c.bf16 %v5603_v33, %v5603_v33  ;;  %v5853_v56 = vmax.f32 %v5837_v15, 0.0  ;;  %v5520_v26 = vmul.f32 %v9536_v17, %v5477_v49  ;;  %v4982_v32 = vpop.f32.mrf.mxu1  ;;  %v5309_v15 = vld [vmem:[%s8644_s6 + $0x34] sm:$0xff]  }
 0x54c   : > { %5386 = vst [vmem:[%s8873_s17 + $0x4] sm:$0xf] %v5370_v44  ;;  %v5122_v30 = vpack.c.bf16 %v5106_v7, %v5106_v7  ;;  %v5291_v8 = vadd.f32 %v9541_v59, %v5271_v41  ;;  %v5023_v0 = vmul.f32 %v9505_v43, %v4982_v32  ;;  %v5729_v45 = vpop.f32.mrf.mxu0 }
 0x54d   : > { %5635 = vst [vmem:[%s8873_s17 + $0x8] sm:$0xf] %v5619_v47  ;;  %v5869_v9 = vpack.c.bf16 %v5853_v56, %v5853_v56  ;;  %v5540_v62 = vadd.f32 %v9547_v6, %v5520_v26  ;;  %v5770_v11 = vmul.f32 %v9511_v40, %v5729_v45  ;;  %v5325_v56 = vunpack.c.l.bf16 %v5309_v15 }
 0x54e   : > { %5138 = vst [vmem:[%s8873_s17 + $0x10] sm:$0xf] %v5122_v30  ;;  %v5339_v39 = vadd.f32 %v5323_v12, %v5291_v8  ;;  %v5043_v61 = vadd.f32 %v9516_v58, %v5023_v0  ;;  %v5574_v0 = vunpack.c.h.bf16 %v5309_v15 }
 0x54f   : > { %5885 = vst [vmem:[%s8873_s17 + $0x1c] sm:$0xf] %v5869_v9  ;;  %v5588_v51 = vadd.f32 %v5572_v29, %v5540_v62  ;;  %v5790_v63 = vadd.f32 %v9522_v31, %v5770_v11  ;;  %v5808_v29 = vld [vmem:[%s8644_s6 + $0x4c] sm:$0xff]   ;;  %v5077_v11 = vunpack.c.h.bf16 %v5807_v25 }
 0x550   : > { %v5355_v36 = vmax.f32 %v5339_v39, 0.0  ;;  %v5091_v14 = vadd.f32 %v5075_v19, %v5043_v61 }
 0x551   : > { %v5604_v37 = vmax.f32 %v5588_v51, 0.0  ;;  %v5838_v10 = vadd.f32 %v5822_v21, %v5790_v63  ;;  %v5231_v1 = vpop.f32.mrf.mxu2  ;;  %v5824_v63 = vunpack.c.l.bf16 %v5808_v29 }
 0x552   : > { %v5371_v60 = vpack.c.bf16 %v5355_v36, %v5355_v36  ;;  %v5107_v22 = vmax.f32 %v5091_v14, 0.0  ;;  %v5272_v48 = vmul.f32 %v9530_v46, %v5231_v1  ;;  %v5480_v57 = vpop.f32.mrf.mxu3 }
 0x553   : > { %v5620_v54 = vpack.c.bf16 %v5604_v37, %v5604_v37  ;;  %v5854_v13 = vmax.f32 %v5838_v10, 0.0  ;;  %v5521_v23 = vmul.f32 %v9536_v17, %v5480_v57  ;;  %v4984_v55 = vpop.f32.mrf.mxu1  ;;  %v5310_v10 = vld [vmem:[%s8644_s6 + $0x44] sm:$0xff]  }
 0x554   : > { %5387 = vst [vmem:[%s8873_s17 + $0x14] sm:$0xf] %v5371_v60  ;;  %v5123_v53 = vpack.c.bf16 %v5107_v22, %v5107_v22  ;;  %v5292_v35 = vadd.f32 %v9541_v59, %v5272_v48  ;;  %v5024_v2 = vmul.f32 %v9505_v43, %v4984_v55  ;;  %v5731_v4 = vpop.f32.mrf.mxu0 }
 0x555   : > { %5636 = vst [vmem:[%s8873_s17 + $0x18] sm:$0xf] %v5620_v54  ;;  %v5870_v42 = vpack.c.bf16 %v5854_v13, %v5854_v13  ;;  %v5541_v28 = vadd.f32 %v9547_v6, %v5521_v23  ;;  %v5771_v24 = vmul.f32 %v9511_v40, %v5731_v4  ;;  %v5326_v13 = vunpack.c.l.bf16 %v5310_v10 }
 0x556   : > { %5139 = vst [vmem:[%s8873_s17 + $0x20] sm:$0xf] %v5123_v53  ;;  %v5340_v16 = vadd.f32 %v5324_v27, %v5292_v35  ;;  %v5044_v38 = vadd.f32 %v9516_v58, %v5024_v2  ;;  %v5575_v2 = vunpack.c.h.bf16 %v5310_v10 }
 0x557   : > { %5886 = vst [vmem:[%s8873_s17 + $0x2c] sm:$0xf] %v5870_v42  ;;  %v5589_v18 = vadd.f32 %v5573_v34, %v5541_v28  ;;  %v5791_v33 = vadd.f32 %v9522_v31, %v5771_v24  ;;  %v5809_v34 = vld [vmem:[%s8644_s6 + $0x5c] sm:$0xff]   ;;  %v5078_v24 = vunpack.c.h.bf16 %v5808_v29 }
 0x558   : > { %v5356_v3 = vmax.f32 %v5340_v16, 0.0  ;;  %v5092_v44 = vadd.f32 %v5076_v50, %v5044_v38 }
 0x559   : > { %v5605_v7 = vmax.f32 %v5589_v18, 0.0  ;;  %v5839_v41 = vadd.f32 %v5823_v20, %v5791_v33  ;;  %v5233_v12 = vpop.f32.mrf.mxu2  ;;  %v5825_v33 = vunpack.c.l.bf16 %v5809_v34 }
 0x55a   : > { %v5372_v49 = vpack.c.bf16 %v5356_v3, %v5356_v3  ;;  %v5108_v52 = vmax.f32 %v5092_v44, 0.0  ;;  %v5273_v47 = vmul.f32 %v9530_v46, %v5233_v12  ;;  %v5482_v26 = vpop.f32.mrf.mxu3 }
 0x55b   : > { %v5621_v32 = vpack.c.bf16 %v5605_v7, %v5605_v7  ;;  %v5855_v30 = vmax.f32 %v5839_v41, 0.0  ;;  %v5522_v8 = vmul.f32 %v9536_v17, %v5482_v26  ;;  %v4987_v19 = vpop.f32.mrf.mxu1  ;;  %v5311_v41 = vld [vmem:[%s8644_s6 + $0x54] sm:$0xff]  }
 0x55c   : > { %5388 = vst [vmem:[%s8873_s17 + $0x24] sm:$0xf] %v5372_v49  ;;  %v5124_v45 = vpack.c.bf16 %v5108_v52, %v5108_v52  ;;  %v5293_v9 = vadd.f32 %v9541_v59, %v5273_v47  ;;  %v5025_v62 = vmul.f32 %v9505_v43, %v4987_v19  ;;  %v5734_v21 = vpop.f32.mrf.mxu0 }
 0x55d   : > { %5637 = vst [vmem:[%s8873_s17 + $0x28] sm:$0xf] %v5621_v32  ;;  %v5871_v39 = vpack.c.bf16 %v5855_v30, %v5855_v30  ;;  %v5542_v61 = vadd.f32 %v9547_v6, %v5522_v8  ;;  %v5772_v51 = vmul.f32 %v9511_v40, %v5734_v21  ;;  %v5327_v30 = vunpack.c.l.bf16 %v5311_v41 }
 0x55e   : > { %5140 = vst [vmem:[%s8873_s17 + $0x30] sm:$0xf] %v5124_v45  ;;  %v5341_v5 = vadd.f32 %v5325_v56, %v5293_v9  ;;  %v5045_v36 = vadd.f32 %v9516_v58, %v5025_v62  ;;  %v5576_v62 = vunpack.c.h.bf16 %v5311_v41 }
 0x55f   : > { %5887 = vst [vmem:[%s8873_s17 + $0x3c] sm:$0xf] %v5871_v39  ;;  %v5590_v14 = vadd.f32 %v5574_v0, %v5542_v61  ;;  %v5792_v37 = vadd.f32 %v9522_v31, %v5772_v51  ;;  %v5810_v0 = vld [vmem:[%s8644_s6 + $0x6c] sm:$0xff]   ;;  %v5079_v51 = vunpack.c.h.bf16 %v5809_v34 }
 0x560   : > { %v5357_v1 = vmax.f32 %v5341_v5, 0.0  ;;  %v5093_v60 = vadd.f32 %v5077_v11, %v5045_v36 }
 0x561   : > { %v5606_v22 = vmax.f32 %v5590_v14, 0.0  ;;  %v5840_v48 = vadd.f32 %v5824_v63, %v5792_v37  ;;  %v5236_v27 = vpop.f32.mrf.mxu2  ;;  %v5826_v37 = vunpack.c.l.bf16 %v5810_v0 }
 0x562   : > { %v5373_v57 = vpack.c.bf16 %v5357_v1, %v5357_v1  ;;  %v5109_v25 = vmax.f32 %v5093_v60, 0.0  ;;  %v5274_v54 = vmul.f32 %v9530_v46, %v5236_v27  ;;  %v5485_v23 = vpop.f32.mrf.mxu3 }
 0x563   : > { %v5622_v55 = vpack.c.bf16 %v5606_v22, %v5606_v22  ;;  %v5856_v53 = vmax.f32 %v5840_v48, 0.0  ;;  %v5523_v35 = vmul.f32 %v9536_v17, %v5485_v23  ;;  %v4989_v50 = vpop.f32.mrf.mxu1  ;;  %v5312_v48 = vld [vmem:[%s8644_s6 + $0x64] sm:$0xff]  }
 0x564   : > { %5389 = vst [vmem:[%s8873_s17 + $0x34] sm:$0xf] %v5373_v57  ;;  %v5125_v4 = vpack.c.bf16 %v5109_v25, %v5109_v25  ;;  %v5294_v42 = vadd.f32 %v9541_v59, %v5274_v54  ;;  %v5026_v28 = vmul.f32 %v9505_v43, %v4989_v50  ;;  %v5736_v20 = vpop.f32.mrf.mxu0 }
 0x565   : > { %5638 = vst [vmem:[%s8873_s17 + $0x38] sm:$0xf] %v5622_v55  ;;  %v5872_v16 = vpack.c.bf16 %v5856_v53, %v5856_v53  ;;  %v5543_v38 = vadd.f32 %v9547_v6, %v5523_v35  ;;  %v5773_v18 = vmul.f32 %v9511_v40, %v5736_v20  ;;  %v5328_v53 = vunpack.c.l.bf16 %v5312_v48 }
 0x566   : > { %5141 = vst [vmem:[%s8873_s17 + $0x40] sm:$0xf] %v5125_v4  ;;  %v5342_v15 = vadd.f32 %v5326_v13, %v5294_v42  ;;  %v5046_v3 = vadd.f32 %v9516_v58, %v5026_v28  ;;  %v5577_v28 = vunpack.c.h.bf16 %v5312_v48 }
 0x567   : > { %5888 = vst [vmem:[%s8873_s17 + $0x4c] sm:$0xf] %v5872_v16  ;;  %v5591_v44 = vadd.f32 %v5575_v2, %v5543_v38  ;;  %v5793_v7 = vadd.f32 %v9522_v31, %v5773_v18  ;;  %v5811_v2 = vld [vmem:[%s8644_s6 + $0x7c] sm:$0xff]   ;;  %v5080_v18 = vunpack.c.h.bf16 %v5810_v0 }
 0x568   : > { %v5358_v12 = vmax.f32 %v5342_v15, 0.0  ;;  %v5094_v49 = vadd.f32 %v5078_v24, %v5046_v3 }
 0x569   : > { %v5607_v52 = vmax.f32 %v5591_v44, 0.0  ;;  %v5841_v47 = vadd.f32 %v5825_v33, %v5793_v7  ;;  %v5238_v56 = vpop.f32.mrf.mxu2  ;;  %v5827_v7 = vunpack.c.l.bf16 %v5811_v2 }
 0x56a   : > { %v5374_v26 = vpack.c.bf16 %v5358_v12, %v5358_v12  ;;  %v5110_v29 = vmax.f32 %v5094_v49, 0.0  ;;  %v5275_v32 = vmul.f32 %v9530_v46, %v5238_v56  ;;  %v5487_v8 = vpop.f32.mrf.mxu3 }
 0x56b   : > { %v5623_v19 = vpack.c.bf16 %v5607_v52, %v5607_v52  ;;  %v5857_v45 = vmax.f32 %v5841_v47, 0.0  ;;  %v5524_v9 = vmul.f32 %v9536_v17, %v5487_v8  ;;  %v4992_v11 = vpop.f32.mrf.mxu1  ;;  %v5313_v47 = vld [vmem:[%s8644_s6 + $0x74] sm:$0xff]  }
 0x56c   : > { %5390 = vst [vmem:[%s8873_s17 + $0x44] sm:$0xf] %v5374_v26  ;;  %v5126_v21 = vpack.c.bf16 %v5110_v29, %v5110_v29  ;;  %v5295_v39 = vadd.f32 %v9541_v59, %v5275_v32  ;;  %v5027_v61 = vmul.f32 %v9505_v43, %v4992_v11  ;;  %v5739_v63 = vpop.f32.mrf.mxu0 }
 0x56d   : > { %5639 = vst [vmem:[%s8873_s17 + $0x48] sm:$0xf] %v5623_v19  ;;  %v5873_v5 = vpack.c.bf16 %v5857_v45, %v5857_v45  ;;  %v5544_v36 = vadd.f32 %v9547_v6, %v5524_v9  ;;  %v5774_v14 = vmul.f32 %v9511_v40, %v5739_v63  ;;  %v5329_v45 = vunpack.c.l.bf16 %v5313_v47 }
 0x56e   : > { %5142 = vst [vmem:[%s8873_s17 + $0x50] sm:$0xf] %v5126_v21  ;;  %v5343_v10 = vadd.f32 %v5327_v30, %v5295_v39  ;;  %v5047_v1 = vadd.f32 %v9516_v58, %v5027_v61  ;;  %v5578_v61 = vunpack.c.h.bf16 %v5313_v47 }
 0x56f   : > { %5889 = vst [vmem:[%s8873_s17 + $0x5c] sm:$0xf] %v5873_v5  ;;  %v5592_v60 = vadd.f32 %v5576_v62, %v5544_v36  ;;  %v5794_v22 = vadd.f32 %v9522_v31, %v5774_v14  ;;  %v5812_v62 = vld [vmem:[%s8644_s6 + $0x8c] sm:$0xff]   ;;  %v5081_v14 = vunpack.c.h.bf16 %v5811_v2 }
 0x570   : > { %v5359_v27 = vmax.f32 %v5343_v10, 0.0  ;;  %v5095_v57 = vadd.f32 %v5079_v51, %v5047_v1 }
 0x571   : > { %v5608_v25 = vmax.f32 %v5592_v60, 0.0  ;;  %v5842_v54 = vadd.f32 %v5826_v37, %v5794_v22  ;;  %v5241_v13 = vpop.f32.mrf.mxu2  ;;  %v5828_v22 = vunpack.c.l.bf16 %v5812_v62 }
 0x572   : > { %v5375_v23 = vpack.c.bf16 %v5359_v27, %v5359_v27  ;;  %v5111_v34 = vmax.f32 %v5095_v57, 0.0  ;;  %v5276_v55 = vmul.f32 %v9530_v46, %v5241_v13  ;;  %v5490_v35 = vpop.f32.mrf.mxu3 }
 0x573   : > { %v5624_v50 = vpack.c.bf16 %v5608_v25, %v5608_v25  ;;  %v5858_v4 = vmax.f32 %v5842_v54, 0.0  ;;  %v5525_v42 = vmul.f32 %v9536_v17, %v5490_v35  ;;  %v4994_v24 = vpop.f32.mrf.mxu1  ;;  %v5314_v54 = vld [vmem:[%s8644_s6 + $0x84] sm:$0xff]  }
 0x574   : > { %5391 = vst [vmem:[%s8873_s17 + $0x54] sm:$0xf] %v5375_v23  ;;  %v5127_v20 = vpack.c.bf16 %v5111_v34, %v5111_v34  ;;  %v5296_v16 = vadd.f32 %v9541_v59, %v5276_v55  ;;  %v5028_v38 = vmul.f32 %v9505_v43, %v4994_v24  ;;  %v5741_v33 = vpop.f32.mrf.mxu0 }
 0x575   : > { %5640 = vst [vmem:[%s8873_s17 + $0x58] sm:$0xf] %v5624_v50  ;;  %v5874_v15 = vpack.c.bf16 %v5858_v4, %v5858_v4  ;;  %v5545_v3 = vadd.f32 %v9547_v6, %v5525_v42  ;;  %v5775_v44 = vmul.f32 %v9511_v40, %v5741_v33  ;;  %v5330_v4 = vunpack.c.l.bf16 %v5314_v54 }
 0x576   : > { %5143 = vst [vmem:[%s8873_s17 + $0x60] sm:$0xf] %v5127_v20  ;;  %v5344_v41 = vadd.f32 %v5328_v53, %v5296_v16  ;;  %v5048_v12 = vadd.f32 %v9516_v58, %v5028_v38  ;;  %v5579_v38 = vunpack.c.h.bf16 %v5314_v54 }
 0x577   : > { %5890 = vst [vmem:[%s8873_s17 + $0x6c] sm:$0xf] %v5874_v15  ;;  %v5593_v49 = vadd.f32 %v5577_v28, %v5545_v3  ;;  %v5795_v52 = vadd.f32 %v9522_v31, %v5775_v44  ;;  %v5813_v28 = vld [vmem:[%s8644_s6 + $0x9c] sm:$0xff]   ;;  %v5082_v44 = vunpack.c.h.bf16 %v5812_v62 }
 0x578   : > { %v5360_v56 = vmax.f32 %v5344_v41, 0.0  ;;  %v5096_v26 = vadd.f32 %v5080_v18, %v5048_v12 }
 0x579   : > { %v5609_v29 = vmax.f32 %v5593_v49, 0.0  ;;  %v5843_v32 = vadd.f32 %v5827_v7, %v5795_v52  ;;  %v5243_v30 = vpop.f32.mrf.mxu2  ;;  %v5829_v52 = vunpack.c.l.bf16 %v5813_v28 }
 0x57a   : > { %v5376_v8 = vpack.c.bf16 %v5360_v56, %v5360_v56  ;;  %v5112_v0 = vmax.f32 %v5096_v26, 0.0  ;;  %v5277_v19 = vmul.f32 %v9530_v46, %v5243_v30  ;;  %v5492_v9 = vpop.f32.mrf.mxu3 }
 0x57b   : > { %v5625_v11 = vpack.c.bf16 %v5609_v29, %v5609_v29  ;;  %v5859_v21 = vmax.f32 %v5843_v32, 0.0  ;;  %v5526_v39 = vmul.f32 %v9536_v17, %v5492_v9  ;;  %v4997_v51 = vpop.f32.mrf.mxu1  ;;  %v5315_v32 = vld [vmem:[%s8644_s6 + $0x94] sm:$0xff]  }
 0x57c   : > { %5392 = vst [vmem:[%s8873_s17 + $0x64] sm:$0xf] %v5376_v8  ;;  %v5128_v63 = vpack.c.bf16 %v5112_v0, %v5112_v0  ;;  %v5297_v5 = vadd.f32 %v9541_v59, %v5277_v19  ;;  %v5029_v36 = vmul.f32 %v9505_v43, %v4997_v51  ;;  %v5744_v37 = vpop.f32.mrf.mxu0 }
 0x57d   : > { %5641 = vst [vmem:[%s8873_s17 + $0x68] sm:$0xf] %v5625_v11  ;;  %v5875_v10 = vpack.c.bf16 %v5859_v21, %v5859_v21  ;;  %v5546_v1 = vadd.f32 %v9547_v6, %v5526_v39  ;;  %v5776_v60 = vmul.f32 %v9511_v40, %v5744_v37  ;;  %v5331_v21 = vunpack.c.l.bf16 %v5315_v32 }
 0x57e   : > { %5144 = vst [vmem:[%s8873_s17 + $0x70] sm:$0xf] %v5128_v63  ;;  %v5345_v48 = vadd.f32 %v5329_v45, %v5297_v5  ;;  %v5049_v27 = vadd.f32 %v9516_v58, %v5029_v36  ;;  %v5580_v36 = vunpack.c.h.bf16 %v5315_v32 }
 0x57f   : > { %5891 = vst [vmem:[%s8873_s17 + $0x7c] sm:$0xf] %v5875_v10  ;;  %v5594_v57 = vadd.f32 %v5578_v61, %v5546_v1  ;;  %v5796_v25 = vadd.f32 %v9522_v31, %v5776_v60  ;;  %v5814_v61 = vld [vmem:[%s8644_s6 + $0xac] sm:$0xff]   ;;  %v5083_v60 = vunpack.c.h.bf16 %v5813_v28 }
 0x580   : > { %v5361_v13 = vmax.f32 %v5345_v48, 0.0  ;;  %v5097_v23 = vadd.f32 %v5081_v14, %v5049_v27 }
 0x581   : > { %v5610_v34 = vmax.f32 %v5594_v57, 0.0  ;;  %v5844_v55 = vadd.f32 %v5828_v22, %v5796_v25  ;;  %v5246_v53 = vpop.f32.mrf.mxu2  ;;  %v5830_v25 = vunpack.c.l.bf16 %v5814_v61 }
 0x582   : > { %v5377_v35 = vpack.c.bf16 %v5361_v13, %v5361_v13  ;;  %v5113_v2 = vmax.f32 %v5097_v23, 0.0  ;;  %v5278_v50 = vmul.f32 %v9530_v46, %v5246_v53  ;;  %v5495_v42 = vpop.f32.mrf.mxu3 }
 0x583   : > { %v5626_v24 = vpack.c.bf16 %v5610_v34, %v5610_v34  ;;  %v5860_v20 = vmax.f32 %v5844_v55, 0.0  ;;  %v5527_v16 = vmul.f32 %v9536_v17, %v5495_v42  ;;  %v4999_v18 = vpop.f32.mrf.mxu1  ;;  %v5316_v55 = vld [vmem:[%s8644_s6 + $0xa4] sm:$0xff]  }
 0x584   : > { %5393 = vst [vmem:[%s8873_s17 + $0x74] sm:$0xf] %v5377_v35  ;;  %v5129_v33 = vpack.c.bf16 %v5113_v2, %v5113_v2  ;;  %v5298_v15 = vadd.f32 %v9541_v59, %v5278_v50  ;;  %v5030_v3 = vmul.f32 %v9505_v43, %v4999_v18  ;;  %v5746_v7 = vpop.f32.mrf.mxu0 }
 0x585   : > { %5642 = vst [vmem:[%s8873_s17 + $0x78] sm:$0xf] %v5626_v24  ;;  %v5876_v41 = vpack.c.bf16 %v5860_v20, %v5860_v20  ;;  %v5547_v12 = vadd.f32 %v9547_v6, %v5527_v16  ;;  %v5777_v49 = vmul.f32 %v9511_v40, %v5746_v7  ;;  %v5332_v20 = vunpack.c.l.bf16 %v5316_v55 }
 0x586   : > { %5145 = vst [vmem:[%s8873_s17 + $0x80] sm:$0xf] %v5129_v33  ;;  %v5346_v47 = vadd.f32 %v5330_v4, %v5298_v15  ;;  %v5050_v56 = vadd.f32 %v9516_v58, %v5030_v3  ;;  %v5581_v3 = vunpack.c.h.bf16 %v5316_v55 }
 0x587   : > { %5892 = vst [vmem:[%s8873_s17 + $0x8c] sm:$0xf] %v5876_v41  ;;  %v5595_v26 = vadd.f32 %v5579_v38, %v5547_v12  ;;  %v5797_v29 = vadd.f32 %v9522_v31, %v5777_v49  ;;  %v5815_v38 = vld [vmem:[%s8644_s6 + $0xbc] sm:$0xff]   ;;  %v5084_v49 = vunpack.c.h.bf16 %v5814_v61 }
 0x588   : > { %v5362_v30 = vmax.f32 %v5346_v47, 0.0  ;;  %v5098_v8 = vadd.f32 %v5082_v44, %v5050_v56 }
 0x589   : > { %v5611_v0 = vmax.f32 %v5595_v26, 0.0  ;;  %v5845_v19 = vadd.f32 %v5829_v52, %v5797_v29  ;;  %v5248_v45 = vpop.f32.mrf.mxu2  ;;  %v5831_v29 = vunpack.c.l.bf16 %v5815_v38 }
 0x58a   : > { %v5378_v9 = vpack.c.bf16 %v5362_v30, %v5362_v30  ;;  %v5114_v62 = vmax.f32 %v5098_v8, 0.0  ;;  %v5279_v11 = vmul.f32 %v9530_v46, %v5248_v45  ;;  %v5497_v39 = vpop.f32.mrf.mxu3 }
 0x58b   : > { %v5627_v51 = vpack.c.bf16 %v5611_v0, %v5611_v0  ;;  %v5861_v63 = vmax.f32 %v5845_v19, 0.0  ;;  %v5528_v5 = vmul.f32 %v9536_v17, %v5497_v39  ;;  %v5002_v14 = vpop.f32.mrf.mxu1  ;;  %v5317_v19 = vld [vmem:[%s8644_s6 + $0xb4] sm:$0xff]  }
 0x58c   : > { %5394 = vst [vmem:[%s8873_s17 + $0x84] sm:$0xf] %v5378_v9  ;;  %v5130_v37 = vpack.c.bf16 %v5114_v62, %v5114_v62  ;;  %v5299_v10 = vadd.f32 %v9541_v59, %v5279_v11  ;;  %v5031_v1 = vmul.f32 %v9505_v43, %v5002_v14  ;;  %v5749_v22 = vpop.f32.mrf.mxu0 }
 0x58d   : > { %5643 = vst [vmem:[%s8873_s17 + $0x88] sm:$0xf] %v5627_v51  ;;  %v5877_v48 = vpack.c.bf16 %v5861_v63, %v5861_v63  ;;  %v5548_v27 = vadd.f32 %v9547_v6, %v5528_v5  ;;  %v5778_v57 = vmul.f32 %v9511_v40, %v5749_v22  ;;  %v5333_v63 = vunpack.c.l.bf16 %v5317_v19 }
 0x58e   : > { %5146 = vst [vmem:[%s8873_s17 + $0x90] sm:$0xf] %v5130_v37  ;;  %v5347_v54 = vadd.f32 %v5331_v21, %v5299_v10  ;;  %v5051_v13 = vadd.f32 %v9516_v58, %v5031_v1  ;;  %v5582_v1 = vunpack.c.h.bf16 %v5317_v19 }
 0x58f   : > { %5893 = vst [vmem:[%s8873_s17 + $0x9c] sm:$0xf] %v5877_v48  ;;  %v5596_v23 = vadd.f32 %v5580_v36, %v5548_v27  ;;  %v5798_v34 = vadd.f32 %v9522_v31, %v5778_v57  ;;  %v5816_v36 = vld [vmem:[%s8644_s6 + $0xcc] sm:$0xff]   ;;  %v5085_v57 = vunpack.c.h.bf16 %v5815_v38 }
 0x590   : > { %v5363_v53 = vmax.f32 %v5347_v54, 0.0  ;;  %v5099_v35 = vadd.f32 %v5083_v60, %v5051_v13 }
 0x591   : > { %v5612_v2 = vmax.f32 %v5596_v23, 0.0  ;;  %v5846_v50 = vadd.f32 %v5830_v25, %v5798_v34  ;;  %v5251_v4 = vpop.f32.mrf.mxu2  ;;  %v5832_v34 = vunpack.c.l.bf16 %v5816_v36 }
 0x592   : > { %v5379_v42 = vpack.c.bf16 %v5363_v53, %v5363_v53  ;;  %v5115_v28 = vmax.f32 %v5099_v35, 0.0  ;;  %v5280_v24 = vmul.f32 %v9530_v46, %v5251_v4  ;;  %v5500_v16 = vpop.f32.mrf.mxu3 }
 0x593   : > { %v5628_v18 = vpack.c.bf16 %v5612_v2, %v5612_v2  ;;  %v5862_v33 = vmax.f32 %v5846_v50, 0.0  ;;  %v5529_v15 = vmul.f32 %v9536_v17, %v5500_v16  ;;  %v5004_v44 = vpop.f32.mrf.mxu1  ;;  %v5318_v50 = vld [vmem:[%s8644_s6 + $0xc4] sm:$0xff]  }
 0x594   : > { %5395 = vst [vmem:[%s8873_s17 + $0x94] sm:$0xf] %v5379_v42  ;;  %v5131_v7 = vpack.c.bf16 %v5115_v28, %v5115_v28  ;;  %v5300_v41 = vadd.f32 %v9541_v59, %v5280_v24  ;;  %v5032_v12 = vmul.f32 %v9505_v43, %v5004_v44  ;;  %v5751_v52 = vpop.f32.mrf.mxu0 }
 0x595   : > { %5644 = vst [vmem:[%s8873_s17 + $0x98] sm:$0xf] %v5628_v18  ;;  %v5878_v47 = vpack.c.bf16 %v5862_v33, %v5862_v33  ;;  %v5549_v56 = vadd.f32 %v9547_v6, %v5529_v15  ;;  %v5779_v26 = vmul.f32 %v9511_v40, %v5751_v52  ;;  %v5334_v33 = vunpack.c.l.bf16 %v5318_v50 }
 0x596   : > { %5147 = vst [vmem:[%s8873_s17 + $0xa0] sm:$0xf] %v5131_v7  ;;  %v5348_v32 = vadd.f32 %v5332_v20, %v5300_v41  ;;  %v5052_v30 = vadd.f32 %v9516_v58, %v5032_v12  ;;  %v5583_v12 = vunpack.c.h.bf16 %v5318_v50 }
 0x597   : > { %5894 = vst [vmem:[%s8873_s17 + $0xac] sm:$0xf] %v5878_v47  ;;  %v5597_v8 = vadd.f32 %v5581_v3, %v5549_v56  ;;  %v5799_v0 = vadd.f32 %v9522_v31, %v5779_v26  ;;  %v5817_v3 = vld [vmem:[%s8644_s6 + $0xdc] sm:$0xff]   ;;  %v5086_v26 = vunpack.c.h.bf16 %v5816_v36 }
 0x598   : > { %v5364_v45 = vmax.f32 %v5348_v32, 0.0  ;;  %v5100_v9 = vadd.f32 %v5084_v49, %v5052_v30 }
 0x599   : > { %v5613_v62 = vmax.f32 %v5597_v8, 0.0  ;;  %v5847_v11 = vadd.f32 %v5831_v29, %v5799_v0  ;;  %v5253_v21 = vpop.f32.mrf.mxu2  ;;  %v5833_v0 = vunpack.c.l.bf16 %v5817_v3 }
 0x59a   : > { %v5380_v39 = vpack.c.bf16 %v5364_v45, %v5364_v45  ;;  %v5116_v61 = vmax.f32 %v5100_v9, 0.0  ;;  %v5281_v51 = vmul.f32 %v9530_v46, %v5253_v21  ;;  %v5502_v5 = vpop.f32.mrf.mxu3 }
 0x59b   : > { %v5629_v14 = vpack.c.bf16 %v5613_v62, %v5613_v62  ;;  %v5863_v37 = vmax.f32 %v5847_v11, 0.0  ;;  %v5530_v10 = vmul.f32 %v9536_v17, %v5502_v5  ;;  %v5007_v60 = vpop.f32.mrf.mxu1  ;;  %v5319_v11 = vld [vmem:[%s8644_s6 + $0xd4] sm:$0xff]  }
 0x59c   : > { %5396 = vst [vmem:[%s8873_s17 + $0xa4] sm:$0xf] %v5380_v39  ;;  %v5132_v22 = vpack.c.bf16 %v5116_v61, %v5116_v61  ;;  %v5301_v48 = vadd.f32 %v9541_v59, %v5281_v51  ;;  %v5033_v27 = vmul.f32 %v9505_v43, %v5007_v60  ;;  %v5754_v25 = vpop.f32.mrf.mxu0 }
 0x59d   : > { %5645 = vst [vmem:[%s8873_s17 + $0xa8] sm:$0xf] %v5629_v14  ;;  %v5879_v54 = vpack.c.bf16 %v5863_v37, %v5863_v37  ;;  %v5550_v13 = vadd.f32 %v9547_v6, %v5530_v10  ;;  %v5780_v23 = vmul.f32 %v9511_v40, %v5754_v25  ;;  %v5335_v37 = vunpack.c.l.bf16 %v5319_v11 }
 0x59e   : > { %5148 = vst [vmem:[%s8873_s17 + $0xb0] sm:$0xf] %v5132_v22  ;;  %v5349_v55 = vadd.f32 %v5333_v63, %v5301_v48  ;;  %v5053_v53 = vadd.f32 %v9516_v58, %v5033_v27  ;;  %v5584_v27 = vunpack.c.h.bf16 %v5319_v11 }
 0x59f   : > { %5895 = vst [vmem:[%s8873_s17 + $0xbc] sm:$0xf] %v5879_v54  ;;  %v5598_v35 = vadd.f32 %v5582_v1, %v5550_v13  ;;  %v5800_v2 = vadd.f32 %v9522_v31, %v5780_v23  ;;  %v9731_v1 = vld [vmem:[%s8644_s6 + $0xec] sm:$0xff]   ;;  %v5087_v23 = vunpack.c.h.bf16 %v5817_v3 }
 0x5a0   : > { %v5365_v4 = vmax.f32 %v5349_v55, 0.0  ;;  %v5101_v42 = vadd.f32 %v5085_v57, %v5053_v53 }
 0x5a1   : > { %v5614_v28 = vmax.f32 %v5598_v35, 0.0  ;;  %v5848_v24 = vadd.f32 %v5832_v34, %v5800_v2  ;;  %v5256_v20 = vpop.f32.mrf.mxu2  ;;  %v5834_v2 = vunpack.c.l.bf16 %v9731_v1 }
 0x5a2   : > { %v5381_v16 = vpack.c.bf16 %v5365_v4, %v5365_v4  ;;  %v5117_v38 = vmax.f32 %v5101_v42, 0.0  ;;  %v5282_v18 = vmul.f32 %v9530_v46, %v5256_v20  ;;  %v5505_v15 = vpop.f32.mrf.mxu3 }
 0x5a3   : > { %v5630_v44 = vpack.c.bf16 %v5614_v28, %v5614_v28  ;;  %v5864_v7 = vmax.f32 %v5848_v24, 0.0  ;;  %v5531_v41 = vmul.f32 %v9536_v17, %v5505_v15  ;;  %v5009_v49 = vpop.f32.mrf.mxu1  ;;  %v5320_v24 = vld [vmem:[%s8644_s6 + $0xe4] sm:$0xff]  }
 0x5a4   : > { %5397 = vst [vmem:[%s8873_s17 + $0xb4] sm:$0xf] %v5381_v16  ;;  %v5133_v52 = vpack.c.bf16 %v5117_v38, %v5117_v38  ;;  %v5302_v47 = vadd.f32 %v9541_v59, %v5282_v18  ;;  %v5034_v56 = vmul.f32 %v9505_v43, %v5009_v49  ;;  %v5756_v29 = vpop.f32.mrf.mxu0  ;;  %v5585_v49 = vunpack.c.h.bf16 %v5320_v24 }
 0x5a5   : > { %5646 = vst [vmem:[%s8873_s17 + $0xb8] sm:$0xf] %v5630_v44  ;;  %v5880_v32 = vpack.c.bf16 %v5864_v7, %v5864_v7  ;;  %v5551_v30 = vadd.f32 %v9547_v6, %v5531_v41  ;;  %v5781_v8 = vmul.f32 %v9511_v40, %v5756_v29  ;;  %v5336_v44 = vunpack.c.l.bf16 %v5320_v24  ;;  %v5819_v7 = vld [vmem:[%s8644_s6 + $0xfc] sm:$0xf] }
 0x5a6   : > { %5149 = vst [vmem:[%s8873_s17 + $0xc0] sm:$0xf] %v5133_v52  ;;  %v5350_v19 = vadd.f32 %v5334_v33, %v5302_v47  ;;  %v5054_v45 = vadd.f32 %v9516_v58, %v5034_v56 }
 0x5a7   : > { %5896 = vst [vmem:[%s8873_s17 + $0xcc] sm:$0xf] %v5880_v32  ;;  %v5599_v9 = vadd.f32 %v5583_v12, %v5551_v30  ;;  %v5801_v62 = vadd.f32 %v9522_v31, %v5781_v8  ;;  %v7793_v30 = vld [vmem:[%s9971_s1 + $0x3] ss:$0 sm:$0xff] }
 0x5a8   : > { %v5366_v21 = vmax.f32 %v5350_v19, 0.0  ;;  %v5102_v39 = vadd.f32 %v5086_v26, %v5054_v45  ;;  %v5088_v26 = vunpack.c.h.bf16 %v9731_v1 }
 0x5a9   : > { %v5615_v61 = vmax.f32 %v5599_v9, 0.0  ;;  %v5849_v51 = vadd.f32 %v5833_v0, %v5801_v62  ;;  %v5258_v63 = vpop.f32.mrf.mxu2  ;;  %v5835_v0 = vunpack.c.l.bf16 %v5819_v7  ;;  %v5321_v62 = vld [vmem:[%s8644_s6 + $0xf4] sm:$0xff]  }
 0x5aa   : > { %v5382_v5 = vpack.c.bf16 %v5366_v21, %v5366_v21  ;;  %v5118_v36 = vmax.f32 %v5102_v39, 0.0  ;;  %v5283_v14 = vmul.f32 %v9530_v46, %v5258_v63  ;;  %v5507_v10 = vpop.f32.mrf.mxu3 }
 0x5ab   : > { %v5631_v60 = vpack.c.bf16 %v5615_v61, %v5615_v61  ;;  %v5865_v22 = vmax.f32 %v5849_v51, 0.0  ;;  %v5532_v48 = vmul.f32 %v9536_v17, %v5507_v10  ;;  %v5012_v57 = vpop.f32.mrf.mxu1 }
 0x5ac   : > { %5398 = vst [vmem:[%s8873_s17 + $0xc4] sm:$0xf] %v5382_v5  ;;  %v5134_v25 = vpack.c.bf16 %v5118_v36, %v5118_v36  ;;  %v5303_v54 = vadd.f32 %v9541_v59, %v5283_v14  ;;  %v5035_v13 = vmul.f32 %v9505_v43, %v5012_v57  ;;  %v5759_v34 = vpop.f32.mrf.mxu0  ;;  %v7796_v36 = vld [vmem:[%s9971_s1 + $0x1] ss:$0 sm:$0xff] }
 0x5ad   : > { %5647 = vst [vmem:[%s8873_s17 + $0xc8] sm:$0xf] %v5631_v60  ;;  %v5881_v55 = vpack.c.bf16 %v5865_v22, %v5865_v22  ;;  %v5552_v53 = vadd.f32 %v9547_v6, %v5532_v48  ;;  %v5782_v35 = vmul.f32 %v9511_v40, %v5759_v34  ;;  %v7797_v22 = vld [vmem:[%s9971_s1 + $0x2] ss:$0 sm:$0xff] }
 0x5ae   : > { %5150 = vst [vmem:[%s8873_s17 + $0xd0] sm:$0xf] %v5134_v25  ;;  %v5351_v50 = vadd.f32 %v5335_v37, %v5303_v54  ;;  %v5055_v4 = vadd.f32 %v9516_v58, %v5035_v13  ;;  %v5337_v37 = vunpack.c.l.bf16 %v5321_v62  ;;  %v7798_v25 = vld [vmem:[%s9972_s19 + $0x1] ss:$0 sm:$0xff] }
 0x5af   : > { %5897 = vst [vmem:[%s8873_s17 + $0xdc] sm:$0xf] %v5881_v55  ;;  %v5600_v42 = vadd.f32 %v5584_v27, %v5552_v53  ;;  %v5802_v28 = vadd.f32 %v9522_v31, %v5782_v35  ;;  %v5586_v27 = vunpack.c.h.bf16 %v5321_v62 }
 0x5b0   : > { %v5367_v20 = vmax.f32 %v5351_v50, 0.0  ;;  %v5103_v16 = vadd.f32 %v5087_v23, %v5055_v4  ;;  %v7799_v23 = vld [vmem:[%s9972_s19 + $0x2] ss:$0 sm:$0xff] }
 0x5b1   : > { %v5616_v38 = vmax.f32 %v5600_v42, 0.0  ;;  %v5850_v18 = vadd.f32 %v5834_v2, %v5802_v28  ;;  %v5261_v40 = vpop.f32.mrf.mxu2 }
 0x5b2   : > { %v5383_v33 = vpack.c.bf16 %v5367_v20, %v5367_v20  ;;  %v5119_v15 = vmax.f32 %v5103_v16, 0.0  ;;  %v5284_v3 = vmul.f32 %v9530_v46, %v5261_v40  ;;  %v5510_v58 = vpop.f32.mrf.mxu3 }
 0x5b3   : > { %v5632_v41 = vpack.c.bf16 %v5616_v38, %v5616_v38  ;;  %v5866_v12 = vmax.f32 %v5850_v18, 0.0  ;;  %v5533_v31 = vmul.f32 %v9536_v17, %v5510_v58  ;;  %v5014_v52 = vpop.f32.mrf.mxu1 }
 0x5b4   : > { %5399 = vst [vmem:[%s8873_s17 + $0xd4] sm:$0xf] %v5383_v33  ;;  %v5135_v47 = vpack.c.bf16 %v5119_v15, %v5119_v15  ;;  %v5304_v56 = vadd.f32 %v9541_v59, %v5284_v3  ;;  %v5036_v46 = vmul.f32 %v9505_v43, %v5014_v52  ;;  %v5761_v29 = vpop.f32.mrf.mxu0  ;;  %v7794_v43 = vld [vmem:[%s9972_s19] ss:$0 sm:$0xff] }
 0x5b5   : > { %5648 = vst [vmem:[%s8873_s17 + $0xd8] sm:$0xf] %v5632_v41  ;;  %v5882_v32 = vpack.c.bf16 %v5866_v12, %v5866_v12  ;;  %v5553_v17 = vadd.f32 %v9547_v6, %v5533_v31  ;;  %v5783_v8 = vmul.f32 %v7793_v30, %v5761_v29  ;;  %v7795_v6 = vld [vmem:[%s9972_s19 + $0x3] ss:$0 sm:$0xff] }
 0x5b6   : > { %5151 = vst [vmem:[%s8873_s17 + $0xe0] sm:$0xf] %v5135_v47  ;;  %v5352_v19 = vadd.f32 %v5336_v44, %v5304_v56  ;;  %v5056_v59 = vadd.f32 %v7794_v43, %v5036_v46 }
 0x5b7   : > { %5898 = vst [vmem:[%s8873_s17 + $0xec] sm:$0xf] %v5882_v32  ;;  %v5601_v45 = vadd.f32 %v5585_v49, %v5553_v17  ;;  %v5803_v9 = vadd.f32 %v7795_v6, %v5783_v8 }
 0x5b8   : > { %v5368_v11 = vmax.f32 %v5352_v19, 0.0  ;;  %v5104_v21 = vadd.f32 %v5088_v26, %v5056_v59 }
 0x5b9   : > { %v5617_v39 = vmax.f32 %v5601_v45, 0.0  ;;  %v5851_v61 = vadd.f32 %v5835_v0, %v5803_v9  ;;  %v5263_v51 = vpop.f32.mrf.mxu2 }
 0x5ba   : > { %v5384_v63 = vpack.c.bf16 %v5368_v11, %v5368_v11  ;;  %v5120_v5 = vmax.f32 %v5104_v21, 0.0  ;;  %v5285_v14 = vmul.f32 %v7796_v36, %v5263_v51  ;;  %v5512_v10 = vpop.f32.mrf.mxu3 }
 0x5bb   : > { %v5633_v1 = vpack.c.bf16 %v5617_v39, %v5617_v39  ;;  %v5867_v60 = vmax.f32 %v5851_v61, 0.0  ;;  %v5534_v48 = vmul.f32 %v7797_v22, %v5512_v10 }
 0x5bc   : > { %5400 = vst [vmem:[%s8873_s17 + $0xe4] sm:$0xf] %v5384_v63  ;;  %v5136_v57 = vpack.c.bf16 %v5120_v5, %v5120_v5  ;;  %v5305_v54 = vadd.f32 %v7798_v25, %v5285_v14 }
 0x5bd   : > { %5649 = vst [vmem:[%s8873_s17 + $0xe8] sm:$0xf] %v5633_v1  ;;  %v5883_v13 = vpack.c.bf16 %v5867_v60, %v5867_v60  ;;  %v5554_v34 = vadd.f32 %v7799_v23, %v5534_v48 }
 0x5be   : > { %5152 = vst [vmem:[%s8873_s17 + $0xf0] sm:$0xf] %v5136_v57  ;;  %v5353_v55 = vadd.f32 %v5337_v37, %v5305_v54 }
 0x5bf   : > { %5899 = vst [vmem:[%s8873_s17 + $0xfc] sm:$0xf] %v5883_v13  ;;  %v5602_v53 = vadd.f32 %v5586_v27, %v5554_v34 }
 0x5c0   : > { %v5369_v35 = vmax.f32 %v5353_v55, 0.0 }
 0x5c1   : > { %v5618_v2 = vmax.f32 %v5602_v53, 0.0 }
 0x5c2   : > { %v5385_v50 = vpack.c.bf16 %v5369_v35, %v5369_v35 }
 0x5c3   : > { %v5634_v4 = vpack.c.bf16 %v5618_v2, %v5618_v2 }
 0x5c4   : > { %5401 = vst [vmem:[%s8873_s17 + $0xf4] sm:$0xf] %v5385_v50 }
 0x5c5   : > { %5650 = vst [vmem:[%s8873_s17 + $0xf8] sm:$0xf] %v5634_v4 }
 0x5c6   : > { %8127 = shalt.err (!%p8124_p13)
}
 0x5c7   : > { %s8284_s24 = smov 256   ;;  %s8285_s17 = smov 16  }
 0x5c8   : > { %7589 = dma.vmem_to_hbm [thread:$0]  (%p8575_p5), %s5917_s11, 4096, %s5919_s4, %s5901_s5, %s8284_s24, %s8284_s24, %s8285_s17  }
 0x5c9 PF: > { %p7642_p12 = scmp.ge.s32.totalorder %s8270_s16, 2  ;;  %s5933_s25 = sand.u32 1, %s8242_s27  }
 0x5ca   : > { %s5934_s21 = scalar_lea.sflag [#allocation5], %s5933_s25 }
 0x5cb   : > { %p7624_p7 = pnand %p7642_p12, %p8579_p11 }
 0x5cd   : > { %p7625_p6 = pneg %p7624_p7 }
 0x5cf   : > { %8213 = dma.done.wait (%p7625_p6), %s5934_s21, 4096  }
 0x5d0   : > { %8215 = vsyncadd (%p7625_p6), %s5934_s21, 4294963200  ;;  %s35_s16 = sadd.s32 1, %s8270_s16   ;;  %s9977_s21 = sld [smem:[#allocation30_spill]] }
 0x5d1   : > { %p9807_p1 = scmp.ge.s32.totalorder %s35_s16, 6   ;;  %s9978_s22 = sld [smem:[#allocation31_spill]] }
 0x5d2   : > { %s9979_s24 = sld [smem:[#allocation32_spill]]  ;;  %s9986_s23 = smov %s10005_s12 }
 0x5d3   : > { %s9980_s25 = sld [smem:[#allocation33_spill]]  ;;  %s9987_s27 = smov %s8246_s28 }
 0x5d4   : > { %s9981_s26 = sld [smem:[#allocation45_spill]]  ;;  %s9988_s28 = smov %s8250_s29 }
 0x5d5   : > { %s9982_s30 = sld [smem:[#allocation36_spill]]  ;;  %s9989_s29 = smov %s8557_s2 }
 0x5d6   : > { %s9983_s13 = sld [smem:[#allocation37_spill]]  ;;  %34 = sbr.rel (!%p9807_p1) target bundleno = 30 (0x1e), region = 184 }
 0x5d7   : > { %s9984_s14 = sld [smem:[#allocation39_spill]] }
 0x5d8   : > { %s9985_s15 = sld [smem:[#allocation40_spill]] }
 0x5db   :  { %5940 = vsyncpa [#allocation4], 1 }
 0x5dc   :  { %5942 = vsyncpa [#allocation4 + $0x1], 1 }
 0x5dd   :  { %5943 = vsyncpa [#allocation7], 1 }
 0x5de   :  { %5945 = vsyncpa [#allocation7 + $0x1], 1 }
 0x5df   :  { %5946 = vsyncpa [#allocation10], 1 }
 0x5e0   :  { %5947 = vsyncpa [#allocation13], 1 }
 0x5e1   :  { %5948 = vsyncpa [#allocation16], 1 }
 0x5e2   :  { %5949 = vsyncpa [#allocation19], 1 }
 0x5e3   :  { %5950 = vsyncpa [#allocation5], 1 }
 0x5e4   :  { %5952 = vsyncpa [#allocation5 + $0x1], 1 }

</bundles_post_ra>
